<compile_context>
chip_gen: v6e
topology: v6e:2x2x1
jax: 0.10.0
libtpu: 0.0.40
codegen_flags: <defaults>
</compile_context>

<pallas_src>
import functools
import math

import jax
import jax.numpy as jnp
from jax.experimental import pallas as pl
from jax.experimental.pallas import tpu as pltpu


# MXU operand dtype (bf16 halves HBM/VMEM traffic; accumulation is fp32 via
# preferred_element_type).  Elementwise / LN / softmax math stays fp32.
_MM_DTYPE = jnp.bfloat16

_VMEM_LIMIT = 32 * 1024 * 1024  # well under v7x's 64 MiB physical VMEM


# ----------------------------- in-kernel math helpers -----------------------------

def _layer_norm(x, w, b, eps):
    """Reference custom LayerNorm: unbiased std (N-1), eps added to std.
    Column-wise reciprocal + broadcast multiply (no L*D elementwise divide)."""
    d = x.shape[-1]
    mean = jnp.mean(x, axis=-1, keepdims=True)
    xc = x - mean
    var = jnp.sum(xc * xc, axis=-1, keepdims=True) * (1.0 / (d - 1))
    inv = pl.reciprocal(jnp.sqrt(var) + eps, approx=False)   # (L, 1) column
    return w * (xc * inv) + b


def _mha_core(q, k, v, keep2d):
    """Batched-head attention.  q:(H,Lq,dh) k,v:(H,Lk,dh) fp32; keep2d:(Lq,Lk) bool."""
    s = jax.lax.dot_general(q.astype(_MM_DTYPE), k.astype(_MM_DTYPE),
                            (((2,), (2,)), ((0,), (0,))),
                            preferred_element_type=jnp.float32)          # (H, Lq, Lk)
    s = jnp.where(keep2d[None, :, :], s, -1e9)
    s = s - jnp.max(s, axis=-1, keepdims=True)
    p = jnp.exp(s)
    denom = jnp.sum(p, axis=-1, keepdims=True)
    p = p * pl.reciprocal(denom, approx=True)                            # EUP slot
    return jax.lax.dot_general(p.astype(_MM_DTYPE), v.astype(_MM_DTYPE),
                               (((2,), (1,)), ((0,), (0,))),
                               preferred_element_type=jnp.float32)       # (H, Lq, dh)


def _out_proj(a, wo, bo):
    """a:(H,L,dh) fp32, wo:(H,dh,D) bf16, bo:(1,D) fp32 -> (L,D) fp32 (no lane concat)."""
    oh = jax.lax.dot_general(a.astype(_MM_DTYPE), wo,
                             (((2,), (1,)), ((0,), (0,))),
                             preferred_element_type=jnp.float32)         # (H, L, D)
    return jnp.sum(oh, axis=0) + bo


def _self_attn_block(x, keep2d, lnw, lnb, wqkv, bqkv, wo, bo, *, head, eps):
    """MHA(LN(x), LN(x), LN(x)); 1/sqrt(dh) already folded into the Q weights."""
    L, D = x.shape
    n = _layer_norm(x, lnw, lnb, eps).astype(_MM_DTYPE)                  # (L, D)
    nb = jnp.broadcast_to(n[None, :, :], (3 * head, L, D))
    qkv = jax.lax.dot_general(nb, wqkv, (((2,), (1,)), ((0,), (0,))),
                              preferred_element_type=jnp.float32) + bqkv  # (3H, L, dh)
    q = qkv[:head]
    k = qkv[head:2 * head]
    v = qkv[2 * head:]
    a = _mha_core(q, k, v, keep2d)
    return _out_proj(a, wo, bo)


def _cross_attn_block(x, mem, keep2d, lnw, lnb, wq, bq, wkv, bkv, wo, bo, *, head, eps):
    """MHA(LN(x), memory, memory); memory is the raw (un-normalized) encoder output."""
    L, D = x.shape
    Lk = mem.shape[0]
    n = _layer_norm(x, lnw, lnb, eps).astype(_MM_DTYPE)
    qb = jnp.broadcast_to(n[None, :, :], (head, L, D))
    q = jax.lax.dot_general(qb, wq, (((2,), (1,)), ((0,), (0,))),
                            preferred_element_type=jnp.float32) + bq     # (H, L, dh)
    mb = jnp.broadcast_to(mem.astype(_MM_DTYPE)[None, :, :], (2 * head, Lk, D))
    kv = jax.lax.dot_general(mb, wkv, (((2,), (1,)), ((0,), (0,))),
                             preferred_element_type=jnp.float32) + bkv   # (2H, Lk, dh)
    k = kv[:head]
    v = kv[head:]
    a = _mha_core(q, k, v, keep2d)
    return _out_proj(a, wo, bo)


def _ffn_block(x, lnw, lnb, w1, b1, w2, b2, *, eps):
    n = _layer_norm(x, lnw, lnb, eps).astype(_MM_DTYPE)
    h = jnp.dot(n, w1, preferred_element_type=jnp.float32) + b1
    h = jnp.maximum(h, 0.0)
    return jnp.dot(h.astype(_MM_DTYPE), w2, preferred_element_type=jnp.float32) + b2


# ----------------------------- fused ENCODER stack kernel -----------------------------

def _encoder_kernel(x_ref, kmask_ref,
                    ln1w_ref, ln1b_ref, wqkv_ref, bqkv_ref, wo_ref, bo_ref,
                    ln2w_ref, ln2b_ref, w1_ref, b1_ref, w2_ref, b2_ref,
                    fnw_ref, fnb_ref,
                    out_ref, x_vmem, *, head, eps):
    """grid = (batch, n_layers); residual stream lives in the fp32 VMEM scratch."""
    l = pl.program_id(1)

    @pl.when(l == 0)
    def _():
        x_vmem[...] = x_ref[...]                       # load the embedding once per batch

    x = x_vmem[...]                                    # (Ls, D) fp32
    ls = x.shape[0]
    keep2d = jnp.broadcast_to(kmask_ref[...] > 0.0, (ls, ls))   # broadcast ONCE

    x = x + _self_attn_block(x, keep2d, ln1w_ref[...], ln1b_ref[...],
                             wqkv_ref[...], bqkv_ref[...], wo_ref[...], bo_ref[...],
                             head=head, eps=eps)
    x = x + _ffn_block(x, ln2w_ref[...], ln2b_ref[...],
                       w1_ref[...], b1_ref[...], w2_ref[...], b2_ref[...], eps=eps)
    x_vmem[...] = x

    @pl.when(l == pl.num_programs(1) - 1)              # fold the final Encoder.norm in
    def _():
        out_ref[...] = _layer_norm(x, fnw_ref[...], fnb_ref[...], eps).astype(out_ref.dtype)


def encoder_stack(x, src_key_mask, p, *, head, eps=1e-6):
    """x: (B, Ls, D) fp32 embeddings; returns encoder memory (B, Ls, D) bf16."""
    B, Ls, D = x.shape
    nl = p['ln1_w'].shape[0]
    dh = D // head
    FF = p['w1'].shape[2]

    def lspec(shape):                                  # per-layer stacked weight
        nd = len(shape)
        return pl.BlockSpec((None,) + tuple(shape), lambda b, l, _n=nd: (l,) + (0,) * _n)

    def cspec(shape):                                  # shared (layer-independent) weight
        nd = len(shape)
        return pl.BlockSpec(tuple(shape), lambda b, l, _n=nd: (0,) * _n)

    return pl.pallas_call(
        functools.partial(_encoder_kernel, head=head, eps=eps),
        out_shape=jax.ShapeDtypeStruct((B, Ls, D), jnp.bfloat16),   # bf16 memory stream
        grid=(B, nl),
        in_specs=[
            pl.BlockSpec((None, Ls, D), lambda b, l: (b, 0, 0)),    # x embeddings
            pl.BlockSpec((None, 1, Ls), lambda b, l: (b, 0, 0)),    # key padding mask
            lspec((1, D)), lspec((1, D)),                           # ln1 w/b
            lspec((3 * head, D, dh)), lspec((3 * head, 1, dh)),     # wqkv / bqkv
            lspec((head, dh, D)), lspec((1, D)),                    # wo / bo
            lspec((1, D)), lspec((1, D)),                           # ln2 w/b
            lspec((D, FF)), lspec((1, FF)),                         # w1 / b1
            lspec((FF, D)), lspec((1, D)),                          # w2 / b2
            cspec((1, D)), cspec((1, D)),                           # final Encoder.norm
        ],
        out_specs=pl.BlockSpec((None, Ls, D), lambda b, l: (b, 0, 0)),
        scratch_shapes=[pltpu.VMEM((Ls, D), jnp.float32)],
        compiler_params=pltpu.CompilerParams(
            dimension_semantics=("parallel", "arbitrary"),
            vmem_limit_bytes=_VMEM_LIMIT),
    )(x, src_key_mask,
      p['ln1_w'], p['ln1_b'], p['wqkv'], p['bqkv'], p['wo'], p['bo'],
      p['ln2_w'], p['ln2_b'], p['w1'], p['b1'], p['w2'], p['b2'],
      p['fn_w'], p['fn_b'])


# ----------------------------- fused DECODER stack kernel -----------------------------

def _decoder_kernel(y_ref, mem_ref, kmask_ref,
                    lnsw_ref, lnsb_ref, wqkvs_ref, bqkvs_ref, wos_ref, bos_ref,
                    lncw_ref, lncb_ref, wqc_ref, bqc_ref, wkvc_ref, bkvc_ref,
                    woc_ref, boc_ref,
                    lnfw_ref, lnfb_ref, w1_ref, b1_ref, w2_ref, b2_ref,
                    fnw_ref, fnb_ref,
                    out_ref, y_vmem, *, head, eps):
    """grid = (batch, n_layers); self-attn (causal) + cross-attn + FFN per step."""
    l = pl.program_id(1)

    @pl.when(l == 0)
    def _():
        y_vmem[...] = y_ref[...]

    y = y_vmem[...]                                    # (Lt, D) fp32
    lt = y.shape[0]
    mem = mem_ref[...]                                 # (Ls, D) bf16, resident across l
    ls = mem.shape[0]

    # Causal (subsequent) mask built in-kernel; src padding mask broadcast once.
    row = jax.lax.broadcasted_iota(jnp.int32, (lt, lt), 0)
    col = jax.lax.broadcasted_iota(jnp.int32, (lt, lt), 1)
    keep_self = row >= col
    keep_cross = jnp.broadcast_to(kmask_ref[...] > 0.0, (lt, ls))

    y = y + _self_attn_block(y, keep_self, lnsw_ref[...], lnsb_ref[...],
                             wqkvs_ref[...], bqkvs_ref[...], wos_ref[...], bos_ref[...],
                             head=head, eps=eps)
    y = y + _cross_attn_block(y, mem, keep_cross, lncw_ref[...], lncb_ref[...],
                              wqc_ref[...], bqc_ref[...], wkvc_ref[...], bkvc_ref[...],
                              woc_ref[...], boc_ref[...], head=head, eps=eps)
    y = y + _ffn_block(y, lnfw_ref[...], lnfb_ref[...],
                       w1_ref[...], b1_ref[...], w2_ref[...], b2_ref[...], eps=eps)
    y_vmem[...] = y

    @pl.when(l == pl.num_programs(1) - 1)              # fold the final Decoder.norm in
    def _():
        out_ref[...] = _layer_norm(y, fnw_ref[...], fnb_ref[...], eps).astype(out_ref.dtype)


def decoder_stack(y, memory, src_key_mask, p, *, head, eps=1e-6):
    """y: (B, Lt, D) fp32; memory: (B, Ls, D) bf16; returns decoding (B, Lt, D) fp32."""
    B, Lt, D = y.shape
    Ls = memory.shape[1]
    nl = p['lns_w'].shape[0]
    dh = D // head
    FF = p['w1'].shape[2]

    def lspec(shape):
        nd = len(shape)
        return pl.BlockSpec((None,) + tuple(shape), lambda b, l, _n=nd: (l,) + (0,) * _n)

    def cspec(shape):
        nd = len(shape)
        return pl.BlockSpec(tuple(shape), lambda b, l, _n=nd: (0,) * _n)

    return pl.pallas_call(
        functools.partial(_decoder_kernel, head=head, eps=eps),
        out_shape=jax.ShapeDtypeStruct((B, Lt, D), jnp.float32),
        grid=(B, nl),
        in_specs=[
            pl.BlockSpec((None, Lt, D), lambda b, l: (b, 0, 0)),    # target embeddings
            pl.BlockSpec((None, Ls, D), lambda b, l: (b, 0, 0)),    # encoder memory (bf16)
            pl.BlockSpec((None, 1, Ls), lambda b, l: (b, 0, 0)),    # src key padding mask
            lspec((1, D)), lspec((1, D)),                           # ln (self-attn)
            lspec((3 * head, D, dh)), lspec((3 * head, 1, dh)),     # wqkv_s / bqkv_s
            lspec((head, dh, D)), lspec((1, D)),                    # wo_s / bo_s
            lspec((1, D)), lspec((1, D)),                           # ln (cross-attn)
            lspec((head, D, dh)), lspec((head, 1, dh)),             # wq_c / bq_c
            lspec((2 * head, D, dh)), lspec((2 * head, 1, dh)),     # wkv_c / bkv_c
            lspec((head, dh, D)), lspec((1, D)),                    # wo_c / bo_c
            lspec((1, D)), lspec((1, D)),                           # ln (ffn)
            lspec((D, FF)), lspec((1, FF)),                         # w1 / b1
            lspec((FF, D)), lspec((1, D)),                          # w2 / b2
            cspec((1, D)), cspec((1, D)),                           # final Decoder.norm
        ],
        out_specs=pl.BlockSpec((None, Lt, D), lambda b, l: (b, 0, 0)),
        scratch_shapes=[pltpu.VMEM((Lt, D), jnp.float32)],
        compiler_params=pltpu.CompilerParams(
            dimension_semantics=("parallel", "arbitrary"),
            vmem_limit_bytes=_VMEM_LIMIT),
    )(y, memory, src_key_mask,
      p['lns_w'], p['lns_b'], p['wqkv_s'], p['bqkv_s'], p['wo_s'], p['bo_s'],
      p['lnc_w'], p['lnc_b'], p['wq_c'], p['bq_c'], p['wkv_c'], p['bkv_c'],
      p['wo_c'], p['boc'] if 'boc' in p else p['bo_c'],
      p['lnf_w'], p['lnf_b'], p['w1'], p['b1'], p['w2'], p['b2'],
      p['fn_w'], p['fn_b'])


# ----------------------------- model glue (plain JAX) -----------------------------

def model_forward(params, src, target, src_key_mask, *, head):
    """src/target: int32 (B, L); src_key_mask: (B, 1, Ls) float {0,1}.

    Returns the decoder output (the reference Model.forward does not apply
    output_layer / log_softmax)."""
    D = params['src_embed'].shape[1]
    sqrt_d = math.sqrt(D)

    # Embedding gather stays in XLA (data-dependent, tiny); * sqrt(D) as in the reference.
    x = jnp.take(params['src_embed'], src, axis=0) * sqrt_d
    memory = encoder_stack(x, src_key_mask, params['enc'], head=head)        # bf16 memory

    y = jnp.take(params['tgt_embed'], target, axis=0) * sqrt_d
    decoding = decoder_stack(y, memory, src_key_mask, params['dec'], head=head)
    return decoding


# ----------------------------- parameter init (torch-module-shaped) -----------------------------

def _init_linear_params(key, din, dout):
    kw, kb = jax.random.split(key)
    return {'w': 0.05 * jax.random.normal(kw, (din, dout), jnp.float32),
            'b': 0.05 * jax.random.normal(kb, (dout,), jnp.float32)}


def _init_mha(key, D):
    ks = jax.random.split(key, 4)
    return {'q': _init_linear_params(ks[0], D, D),
            'k': _init_linear_params(ks[1], D, D),
            'v': _init_linear_params(ks[2], D, D),
            'o': _init_linear_params(ks[3], D, D)}


def _init_ffn(key, D, H):
    k1, k2 = jax.random.split(key)
    return {'fc1': _init_linear_params(k1, D, H),
            'fc2': _init_linear_params(k2, H, D)}


def _init_ln(D):
    return {'w': jnp.ones((D,), jnp.float32), 'b': jnp.zeros((D,), jnp.float32)}


def init_raw_params(key, vocab, D, ff_hidden, n_layers):
    keys = jax.random.split(key, 2 + 2 * n_layers)
    params = {
        'src_embed': 0.05 * jax.random.normal(keys[0], (vocab, D), jnp.float32),
        'tgt_embed': 0.05 * jax.random.normal(keys[1], (vocab, D), jnp.float32),
        'encoder_layers': [], 'decoder_layers': [],
        'enc_norm': _init_ln(D), 'dec_norm': _init_ln(D),
    }
    for i in range(n_layers):
        ka, kf = jax.random.split(keys[2 + i])
        params['encoder_layers'].append({
            'self_attn': _init_mha(ka, D), 'ff': _init_ffn(kf, D, ff_hidden),
            'ln0': _init_ln(D), 'ln1': _init_ln(D)})
    for i in range(n_layers):
        ka, kb, kf = jax.random.split(keys[2 + n_layers + i], 3)
        params['decoder_layers'].append({
            'self_attn': _init_mha(ka, D), 'src_attn': _init_mha(kb, D),
            'ff': _init_ffn(kf, D, ff_hidden),
            'ln0': _init_ln(D), 'ln1': _init_ln(D), 'ln2': _init_ln(D)})
    return params


# ----------------------------- parameter prep: head-batch, fuse, stack, cast -----------------------------

def _split_heads_cols(w, b, head, scale=1.0):
    """Linear (D, head*dh) column-packed -> per-head (head, D, dh) and (head, 1, dh)."""
    D, Dout = w.shape
    dh = Dout // head
    ws = (w * scale).reshape(D, head, dh).transpose(1, 0, 2)
    bs = (b * scale).reshape(head, 1, dh)
    return ws, bs


def _prep_attn_self(mha, ln, D, head):
    dh = D // head
    scale = 1.0 / math.sqrt(dh)                 # fold the attention scale into Q
    wq, bq = _split_heads_cols(mha['q']['w'], mha['q']['b'], head, scale)
    wk, bk = _split_heads_cols(mha['k']['w'], mha['k']['b'], head)
    wv, bv = _split_heads_cols(mha['v']['w'], mha['v']['b'], head)
    return {'ln_w': ln['w'].reshape(1, D), 'ln_b': ln['b'].reshape(1, D),
            'wqkv': jnp.concatenate([wq, wk, wv], axis=0).astype(_MM_DTYPE),
            'bqkv': jnp.concatenate([bq, bk, bv], axis=0),
            'wo': mha['o']['w'].reshape(head, dh, D).astype(_MM_DTYPE),
            'bo': mha['o']['b'].reshape(1, D)}


def _prep_attn_cross(mha, ln, D, head):
    dh = D // head
    scale = 1.0 / math.sqrt(dh)
    wq, bq = _split_heads_cols(mha['q']['w'], mha['q']['b'], head, scale)
    wk, bk = _split_heads_cols(mha['k']['w'], mha['k']['b'], head)
    wv, bv = _split_heads_cols(mha['v']['w'], mha['v']['b'], head)
    return {'ln_w': ln['w'].reshape(1, D), 'ln_b': ln['b'].reshape(1, D),
            'wq': wq.astype(_MM_DTYPE), 'bq': bq,
            'wkv': jnp.concatenate([wk, wv], axis=0).astype(_MM_DTYPE),
            'bkv': jnp.concatenate([bk, bv], axis=0),
            'wo': mha['o']['w'].reshape(head, dh, D).astype(_MM_DTYPE),
            'bo': mha['o']['b'].reshape(1, D)}


def _prep_ffn(ff, ln, D):
    FF = ff['fc1']['w'].shape[1]
    return {'ln_w': ln['w'].reshape(1, D), 'ln_b': ln['b'].reshape(1, D),
            'w1': ff['fc1']['w'].astype(_MM_DTYPE), 'b1': ff['fc1']['b'].reshape(1, FF),
            'w2': ff['fc2']['w'].astype(_MM_DTYPE), 'b2': ff['fc2']['b'].reshape(1, D)}


def _stack_layers(dicts):
    return {k: jnp.stack([d[k] for d in dicts], axis=0) for k in dicts[0]}


def prepare_params(raw, head):
    D = raw['src_embed'].shape[1]

    ea = _stack_layers([_prep_attn_self(lp['self_attn'], lp['ln0'], D, head)
                        for lp in raw['encoder_layers']])
    ef = _stack_layers([_prep_ffn(lp['ff'], lp['ln1'], D)
                        for lp in raw['encoder_layers']])
    enc = {'ln1_w': ea['ln_w'], 'ln1_b': ea['ln_b'],
           'wqkv': ea['wqkv'], 'bqkv': ea['bqkv'], 'wo': ea['wo'], 'bo': ea['bo'],
           'ln2_w': ef['ln_w'], 'ln2_b': ef['ln_b'],
           'w1': ef['w1'], 'b1': ef['b1'], 'w2': ef['w2'], 'b2': ef['b2'],
           'fn_w': raw['enc_norm']['w'].reshape(1, D),
           'fn_b': raw['enc_norm']['b'].reshape(1, D)}

    ds = _stack_layers([_prep_attn_self(lp['self_attn'], lp['ln0'], D, head)
                        for lp in raw['decoder_layers']])
    dc = _stack_layers([_prep_attn_cross(lp['src_attn'], lp['ln1'], D, head)
                        for lp in raw['decoder_layers']])
    df = _stack_layers([_prep_ffn(lp['ff'], lp['ln2'], D)
                        for lp in raw['decoder_layers']])
    dec = {'lns_w': ds['ln_w'], 'lns_b': ds['ln_b'],
           'wqkv_s': ds['wqkv'], 'bqkv_s': ds['bqkv'], 'wo_s': ds['wo'], 'bo_s': ds['bo'],
           'lnc_w': dc['ln_w'], 'lnc_b': dc['ln_b'],
           'wq_c': dc['wq'], 'bq_c': dc['bq'], 'wkv_c': dc['wkv'], 'bkv_c': dc['bkv'],
           'wo_c': dc['wo'], 'bo_c': dc['bo'],
           'lnf_w': df['ln_w'], 'lnf_b': df['ln_b'],
           'w1': df['w1'], 'b1': df['b1'], 'w2': df['w2'], 'b2': df['b2'],
           'fn_w': raw['dec_norm']['w'].reshape(1, D),
           'fn_b': raw['dec_norm']['b'].reshape(1, D)}

    return {'src_embed': raw['src_embed'], 'tgt_embed': raw['tgt_embed'],
            'enc': enc, 'dec': dec}


# ----------------------------- main -----------------------------

if __name__ == "__main__":
    # Lane-aligned toy config: D and FF are multiples of 128 (head_dim = 32).
    B, SRC_LEN, TGT_LEN = 2, 8, 8
    D, HEAD, FF_HIDDEN, VOCAB, N_LAYERS = 128, 4, 256, 16, 2

    key = jax.random.PRNGKey(0)
    kp, ks, kt = jax.random.split(key, 3)
    raw = init_raw_params(kp, VOCAB, D, FF_HIDDEN, N_LAYERS)
    params = prepare_params(raw, HEAD)

    src = jax.random.randint(ks, (B, SRC_LEN), 0, VOCAB, dtype=jnp.int32)
    target = jax.random.randint(kt, (B, TGT_LEN), 0, VOCAB, dtype=jnp.int32)
    src_key_mask = jnp.ones((B, 1, SRC_LEN), jnp.float32)   # all-true, as in the reference

    fwd = jax.jit(lambda p, s, t, m: model_forward(p, s, t, m, head=HEAD))
    out = fwd(params, src, target, src_key_mask)
    out = jax.block_until_ready(out)

    assert out.shape == (B, TGT_LEN, D)
    assert bool(jnp.all(jnp.isfinite(out)))
    print("KERNEL_OK")
</pallas_src>

<mosaic_0001>
module attributes {stable_mosaic.version = 11 : i64} {
  func.func @_encoder_kernel(%arg0: i32, %arg1: i32, %arg2: memref<1x8x128xf32, #tpu.memory_space<vmem>>, %arg3: memref<1x1x8xf32, #tpu.memory_space<vmem>>, %arg4: memref<1x1x128xf32, #tpu.memory_space<vmem>>, %arg5: memref<1x1x128xf32, #tpu.memory_space<vmem>>, %arg6: memref<1x12x128x32xbf16, #tpu.memory_space<vmem>>, %arg7: memref<1x12x1x32xf32, #tpu.memory_space<vmem>>, %arg8: memref<1x4x32x128xbf16, #tpu.memory_space<vmem>>, %arg9: memref<1x1x128xf32, #tpu.memory_space<vmem>>, %arg10: memref<1x1x128xf32, #tpu.memory_space<vmem>>, %arg11: memref<1x1x128xf32, #tpu.memory_space<vmem>>, %arg12: memref<1x128x256xbf16, #tpu.memory_space<vmem>>, %arg13: memref<1x1x256xf32, #tpu.memory_space<vmem>>, %arg14: memref<1x256x128xbf16, #tpu.memory_space<vmem>>, %arg15: memref<1x1x128xf32, #tpu.memory_space<vmem>>, %arg16: memref<1x128xf32, #tpu.memory_space<vmem>>, %arg17: memref<1x128xf32, #tpu.memory_space<vmem>>, %arg18: memref<1x8x128xbf16, #tpu.memory_space<vmem>>, %arg19: memref<8x128xf32, #tpu.memory_space<vmem>>) attributes {dimension_semantics = [#tpu.dimension_semantics<parallel>, #tpu.dimension_semantics<arbitrary>], iteration_bounds = array<i64: 2, 2>, scalar_prefetch = 0 : i64, scratch_operands = 1 : i64, tpu.core_type = #tpu.core_type<tc>, window_params = [{transform_indices = @transform_0, window_bounds = array<i64: 1, 8, 128>}, {transform_indices = @transform_1, window_bounds = array<i64: 1, 1, 8>}, {transform_indices = @transform_2, window_bounds = array<i64: 1, 1, 128>}, {transform_indices = @transform_3, window_bounds = array<i64: 1, 1, 128>}, {transform_indices = @transform_4, window_bounds = array<i64: 1, 12, 128, 32>}, {transform_indices = @transform_5, window_bounds = array<i64: 1, 12, 1, 32>}, {transform_indices = @transform_6, window_bounds = array<i64: 1, 4, 32, 128>}, {transform_indices = @transform_7, window_bounds = array<i64: 1, 1, 128>}, {transform_indices = @transform_8, window_bounds = array<i64: 1, 1, 128>}, {transform_indices = @transform_9, window_bounds = array<i64: 1, 1, 128>}, {transform_indices = @transform_10, window_bounds = array<i64: 1, 128, 256>}, {transform_indices = @transform_11, window_bounds = array<i64: 1, 1, 256>}, {transform_indices = @transform_12, window_bounds = array<i64: 1, 256, 128>}, {transform_indices = @transform_13, window_bounds = array<i64: 1, 1, 128>}, {pipeline_mode = #tpu.pipeline_mode<synchronous>, transform_indices = @transform_14, window_bounds = array<i64: 1, 128>}, {pipeline_mode = #tpu.pipeline_mode<synchronous>, transform_indices = @transform_15, window_bounds = array<i64: 1, 128>}, {transform_indices = @transform_16, window_bounds = array<i64: 1, 8, 128>}]} {
    %c0_i32 = arith.constant 0 : i32
    %0 = arith.cmpi eq, %arg1, %c0_i32 : i32
    %1 = arith.extui %0 : i1 to i32
    %c0_i32_0 = arith.constant 0 : i32
    %2 = arith.cmpi ne, %1, %c0_i32_0 : i32
    scf.if %2 {
      %c0_68 = arith.constant 0 : index
      %c0_69 = arith.constant 0 : index
      %c0_70 = arith.constant 0 : index
      %128 = vector.load %arg2[%c0_68, %c0_69, %c0_70] : memref<1x8x128xf32, #tpu.memory_space<vmem>>, vector<1x8x128xf32>
      %129 = vector.shape_cast %128 : vector<1x8x128xf32> to vector<8x128xf32>
      %c0_71 = arith.constant 0 : index
      %c0_72 = arith.constant 0 : index
      %130 = vector.load %arg19[%c0_71, %c0_72] : memref<8x128xf32, #tpu.memory_space<vmem>>, vector<8x128xf32>
      tpu.vector_store %arg19[%c0_71, %c0_72], %129 {strides = array<i32>} : memref<8x128xf32, #tpu.memory_space<vmem>>, vector<8x128xf32>,
    } else {
    }
    %c0 = arith.constant 0 : index
    %c0_1 = arith.constant 0 : index
    %3 = vector.load %arg19[%c0, %c0_1] : memref<8x128xf32, #tpu.memory_space<vmem>>, vector<8x128xf32>
    %c0_2 = arith.constant 0 : index
    %c0_3 = arith.constant 0 : index
    %c0_4 = arith.constant 0 : index
    %4 = vector.load %arg3[%c0_2, %c0_3, %c0_4] : memref<1x1x8xf32, #tpu.memory_space<vmem>>, vector<1x1x8xf32>
    %5 = vector.shape_cast %4 : vector<1x1x8xf32> to vector<1x8xf32>
    %cst = arith.constant 0.000000e+00 : f32
    %6 = vector.broadcast %cst : f32 to vector<1x8xf32>
    %7 = arith.cmpf ogt, %5, %6 : vector<1x8xf32>
    %8 = vector.shape_cast %7 : vector<1x8xi1> to vector<1x8xi1>
    %9 = vector.broadcast %8 : vector<1x8xi1> to vector<8x8xi1>
    %c0_5 = arith.constant 0 : index
    %c0_6 = arith.constant 0 : index
    %c0_7 = arith.constant 0 : index
    %10 = vector.load %arg4[%c0_5, %c0_6, %c0_7] : memref<1x1x128xf32, #tpu.memory_space<vmem>>, vector<1x1x128xf32>
    %11 = vector.shape_cast %10 : vector<1x1x128xf32> to vector<1x128xf32>
    %c0_8 = arith.constant 0 : index
    %c0_9 = arith.constant 0 : index
    %c0_10 = arith.constant 0 : index
    %12 = vector.load %arg5[%c0_8, %c0_9, %c0_10] : memref<1x1x128xf32, #tpu.memory_space<vmem>>, vector<1x1x128xf32>
    %13 = vector.shape_cast %12 : vector<1x1x128xf32> to vector<1x128xf32>
    %c0_11 = arith.constant 0 : index
    %c0_12 = arith.constant 0 : index
    %c0_13 = arith.constant 0 : index
    %c0_14 = arith.constant 0 : index
    %14 = vector.load %arg6[%c0_11, %c0_12, %c0_13, %c0_14] : memref<1x12x128x32xbf16, #tpu.memory_space<vmem>>, vector<1x12x128x32xbf16>
    %15 = vector.shape_cast %14 : vector<1x12x128x32xbf16> to vector<12x128x32xbf16>
    %c0_15 = arith.constant 0 : index
    %c0_16 = arith.constant 0 : index
    %c0_17 = arith.constant 0 : index
    %c0_18 = arith.constant 0 : index
    %16 = vector.load %arg7[%c0_15, %c0_16, %c0_17, %c0_18] : memref<1x12x1x32xf32, #tpu.memory_space<vmem>>, vector<1x12x1x32xf32>
    %17 = vector.shape_cast %16 : vector<1x12x1x32xf32> to vector<12x1x32xf32>
    %c0_19 = arith.constant 0 : index
    %c0_20 = arith.constant 0 : index
    %c0_21 = arith.constant 0 : index
    %c0_22 = arith.constant 0 : index
    %18 = vector.load %arg8[%c0_19, %c0_20, %c0_21, %c0_22] : memref<1x4x32x128xbf16, #tpu.memory_space<vmem>>, vector<1x4x32x128xbf16>
    %19 = vector.shape_cast %18 : vector<1x4x32x128xbf16> to vector<4x32x128xbf16>
    %c0_23 = arith.constant 0 : index
    %c0_24 = arith.constant 0 : index
    %c0_25 = arith.constant 0 : index
    %20 = vector.load %arg9[%c0_23, %c0_24, %c0_25] : memref<1x1x128xf32, #tpu.memory_space<vmem>>, vector<1x1x128xf32>
    %21 = vector.shape_cast %20 : vector<1x1x128xf32> to vector<1x128xf32>
    %cst_26 = arith.constant dense<0.000000e+00> : vector<8xf32>
    %22 = vector.multi_reduction <add>, %3, %cst_26 [1] : vector<8x128xf32> to vector<8xf32>
    %23 = vector.shape_cast %22 : vector<8xf32> to vector<8x1xf32>
    %cst_27 = arith.constant 1.280000e+02 : f32
    %24 = vector.broadcast %cst_27 : f32 to vector<8x1xf32>
    %25 = arith.divf %23, %24 : vector<8x1xf32>
    %26 = vector.broadcast %25 : vector<8x1xf32> to vector<8x128xf32>
    %27 = arith.subf %3, %26 : vector<8x128xf32>
    %28 = arith.mulf %27, %27 : vector<8x128xf32>
    %cst_28 = arith.constant dense<0.000000e+00> : vector<8xf32>
    %29 = vector.multi_reduction <add>, %28, %cst_28 [1] : vector<8x128xf32> to vector<8xf32>
    %30 = vector.shape_cast %29 : vector<8xf32> to vector<8x1xf32>
    %cst_29 = arith.constant 0.00787401571 : f32
    %31 = vector.broadcast %cst_29 : f32 to vector<8x1xf32>
    %32 = arith.mulf %30, %31 : vector<8x1xf32>
    %33 = math.sqrt %32 : vector<8x1xf32>
    %cst_30 = arith.constant 9.99999997E-7 : f32
    %34 = vector.broadcast %cst_30 : f32 to vector<8x1xf32>
    %35 = arith.addf %33, %34 : vector<8x1xf32>
    %36 = tpu.reciprocal %35 : vector<8x1xf32> -> vector<8x1xf32>
    %37 = vector.broadcast %36 : vector<8x1xf32> to vector<8x128xf32>
    %38 = arith.mulf %27, %37 : vector<8x128xf32>
    %39 = vector.broadcast %11 : vector<1x128xf32> to vector<8x128xf32>
    %40 = arith.mulf %39, %38 : vector<8x128xf32>
    %41 = vector.broadcast %13 : vector<1x128xf32> to vector<8x128xf32>
    %42 = arith.addf %40, %41 : vector<8x128xf32>
    %43 = arith.truncf %42 : vector<8x128xf32> to vector<8x128xbf16>
    %44 = vector.shape_cast %43 : vector<8x128xbf16> to vector<1x8x128xbf16>
    %45 = vector.shape_cast %44 : vector<1x8x128xbf16> to vector<1x8x128xbf16>
    %46 = vector.broadcast %45 : vector<1x8x128xbf16> to vector<12x8x128xbf16>
    %cst_31 = arith.constant dense<0.000000e+00> : vector<12x8x32xf32>
    %47 = tpu.matmul %46, %15, %cst_31 {dimension_numbers = #tpu.dot_dimension_numbers<[2], [1], [1], [2], [0, 0, 0, 1, 1, 2], [0], [0]>} : vector<12x8x128xbf16>, vector<12x128x32xbf16>, vector<12x8x32xf32> -> vector<12x8x32xf32>
    %48 = vector.broadcast %17 : vector<12x1x32xf32> to vector<12x8x32xf32>
    %49 = arith.addf %47, %48 : vector<12x8x32xf32>
    %50 = vector.extract_strided_slice %49 {offsets = [0, 0, 0], sizes = [4, 8, 32], strides = [1, 1, 1]} : vector<12x8x32xf32> to vector<4x8x32xf32>
    %51 = vector.extract_strided_slice %49 {offsets = [4, 0, 0], sizes = [4, 8, 32], strides = [1, 1, 1]} : vector<12x8x32xf32> to vector<4x8x32xf32>
    %52 = vector.extract_strided_slice %49 {offsets = [8, 0, 0], sizes = [4, 8, 32], strides = [1, 1, 1]} : vector<12x8x32xf32> to vector<4x8x32xf32>
    %53 = arith.truncf %50 : vector<4x8x32xf32> to vector<4x8x32xbf16>
    %54 = arith.truncf %51 : vector<4x8x32xf32> to vector<4x8x32xbf16>
    %cst_32 = arith.constant dense<0.000000e+00> : vector<4x8x8xf32>
    %55 = tpu.matmul %53, %54, %cst_32 {dimension_numbers = #tpu.dot_dimension_numbers<[2], [2], [1], [1], [0, 0, 0, 1, 1, 1], [0], [0]>} : vector<4x8x32xbf16>, vector<4x8x32xbf16>, vector<4x8x8xf32> -> vector<4x8x8xf32>
    %56 = vector.shape_cast %9 : vector<8x8xi1> to vector<1x8x8xi1>
    %cst_33 = arith.constant -1.000000e+09 : f32
    %57 = vector.shape_cast %56 : vector<1x8x8xi1> to vector<1x8x8xi1>
    %58 = vector.broadcast %57 : vector<1x8x8xi1> to vector<4x8x8xi1>
    %59 = vector.broadcast %cst_33 : f32 to vector<4x8x8xf32>
    %60 = arith.select %58, %55, %59 : vector<4x8x8xi1>, vector<4x8x8xf32>
    %cst_34 = arith.constant dense<0xFF800000> : vector<4x8xf32>
    %61 = vector.multi_reduction <maximumf>, %60, %cst_34 [2] : vector<4x8x8xf32> to vector<4x8xf32>
    %62 = vector.shape_cast %61 : vector<4x8xf32> to vector<4x8x1xf32>
    %63 = vector.broadcast %62 : vector<4x8x1xf32> to vector<4x8x8xf32>
    %64 = arith.subf %60, %63 : vector<4x8x8xf32>
    %65 = math.exp %64 : vector<4x8x8xf32>
    %cst_35 = arith.constant dense<0.000000e+00> : vector<4x8xf32>
    %66 = vector.multi_reduction <add>, %65, %cst_35 [2] : vector<4x8x8xf32> to vector<4x8xf32>
    %67 = vector.shape_cast %66 : vector<4x8xf32> to vector<4x8x1xf32>
    %68 = tpu.reciprocal %67 {approx = true} : vector<4x8x1xf32> -> vector<4x8x1xf32>
    %69 = vector.broadcast %68 : vector<4x8x1xf32> to vector<4x8x8xf32>
    %70 = arith.mulf %65, %69 : vector<4x8x8xf32>
    %71 = arith.truncf %70 : vector<4x8x8xf32> to vector<4x8x8xbf16>
    %72 = arith.truncf %52 : vector<4x8x32xf32> to vector<4x8x32xbf16>
    %cst_36 = arith.constant dense<0.000000e+00> : vector<4x8x32xf32>
    %73 = tpu.matmul %71, %72, %cst_36 {dimension_numbers = #tpu.dot_dimension_numbers<[2], [1], [1], [2], [0, 0, 0, 1, 1, 2], [0], [0]>} : vector<4x8x8xbf16>, vector<4x8x32xbf16>, vector<4x8x32xf32> -> vector<4x8x32xf32>
    %74 = arith.truncf %73 : vector<4x8x32xf32> to vector<4x8x32xbf16>
    %cst_37 = arith.constant dense<0.000000e+00> : vector<4x8x128xf32>
    %75 = tpu.matmul %74, %19, %cst_37 {dimension_numbers = #tpu.dot_dimension_numbers<[2], [1], [1], [2], [0, 0, 0, 1, 1, 2], [0], [0]>} : vector<4x8x32xbf16>, vector<4x32x128xbf16>, vector<4x8x128xf32> -> vector<4x8x128xf32>
    %cst_38 = arith.constant dense<0.000000e+00> : vector<8x128xf32>
    %76 = vector.multi_reduction <add>, %75, %cst_38 [0] : vector<4x8x128xf32> to vector<8x128xf32>
    %77 = vector.broadcast %21 : vector<1x128xf32> to vector<8x128xf32>
    %78 = arith.addf %76, %77 : vector<8x128xf32>
    %79 = arith.addf %3, %78 : vector<8x128xf32>
    %c0_39 = arith.constant 0 : index
    %c0_40 = arith.constant 0 : index
    %c0_41 = arith.constant 0 : index
    %80 = vector.load %arg10[%c0_39, %c0_40, %c0_41] : memref<1x1x128xf32, #tpu.memory_space<vmem>>, vector<1x1x128xf32>
    %81 = vector.shape_cast %80 : vector<1x1x128xf32> to vector<1x128xf32>
    %c0_42 = arith.constant 0 : index
    %c0_43 = arith.constant 0 : index
    %c0_44 = arith.constant 0 : index
    %82 = vector.load %arg11[%c0_42, %c0_43, %c0_44] : memref<1x1x128xf32, #tpu.memory_space<vmem>>, vector<1x1x128xf32>
    %83 = vector.shape_cast %82 : vector<1x1x128xf32> to vector<1x128xf32>
    %c0_45 = arith.constant 0 : index
    %c0_46 = arith.constant 0 : index
    %c0_47 = arith.constant 0 : index
    %84 = vector.load %arg12[%c0_45, %c0_46, %c0_47] : memref<1x128x256xbf16, #tpu.memory_space<vmem>>, vector<1x128x256xbf16>
    %85 = vector.shape_cast %84 : vector<1x128x256xbf16> to vector<128x256xbf16>
    %c0_48 = arith.constant 0 : index
    %c0_49 = arith.constant 0 : index
    %c0_50 = arith.constant 0 : index
    %86 = vector.load %arg13[%c0_48, %c0_49, %c0_50] : memref<1x1x256xf32, #tpu.memory_space<vmem>>, vector<1x1x256xf32>
    %87 = vector.shape_cast %86 : vector<1x1x256xf32> to vector<1x256xf32>
    %c0_51 = arith.constant 0 : index
    %c0_52 = arith.constant 0 : index
    %c0_53 = arith.constant 0 : index
    %88 = vector.load %arg14[%c0_51, %c0_52, %c0_53] : memref<1x256x128xbf16, #tpu.memory_space<vmem>>, vector<1x256x128xbf16>
    %89 = vector.shape_cast %88 : vector<1x256x128xbf16> to vector<256x128xbf16>
    %c0_54 = arith.constant 0 : index
    %c0_55 = arith.constant 0 : index
    %c0_56 = arith.constant 0 : index
    %90 = vector.load %arg15[%c0_54, %c0_55, %c0_56] : memref<1x1x128xf32, #tpu.memory_space<vmem>>, vector<1x1x128xf32>
    %91 = vector.shape_cast %90 : vector<1x1x128xf32> to vector<1x128xf32>
    %cst_57 = arith.constant dense<0.000000e+00> : vector<8xf32>
    %92 = vector.multi_reduction <add>, %79, %cst_57 [1] : vector<8x128xf32> to vector<8xf32>
    %93 = vector.shape_cast %92 : vector<8xf32> to vector<8x1xf32>
    %cst_58 = arith.constant 1.280000e+02 : f32
    %94 = vector.broadcast %cst_58 : f32 to vector<8x1xf32>
    %95 = arith.divf %93, %94 : vector<8x1xf32>
    %96 = vector.broadcast %95 : vector<8x1xf32> to vector<8x128xf32>
    %97 = arith.subf %79, %96 : vector<8x128xf32>
    %98 = arith.mulf %97, %97 : vector<8x128xf32>
    %cst_59 = arith.constant dense<0.000000e+00> : vector<8xf32>
    %99 = vector.multi_reduction <add>, %98, %cst_59 [1] : vector<8x128xf32> to vector<8xf32>
    %100 = vector.shape_cast %99 : vector<8xf32> to vector<8x1xf32>
    %cst_60 = arith.constant 0.00787401571 : f32
    %101 = vector.broadcast %cst_60 : f32 to vector<8x1xf32>
    %102 = arith.mulf %100, %101 : vector<8x1xf32>
    %103 = math.sqrt %102 : vector<8x1xf32>
    %cst_61 = arith.constant 9.99999997E-7 : f32
    %104 = vector.broadcast %cst_61 : f32 to vector<8x1xf32>
    %105 = arith.addf %103, %104 : vector<8x1xf32>
    %106 = tpu.reciprocal %105 : vector<8x1xf32> -> vector<8x1xf32>
    %107 = vector.broadcast %106 : vector<8x1xf32> to vector<8x128xf32>
    %108 = arith.mulf %97, %107 : vector<8x128xf32>
    %109 = vector.broadcast %81 : vector<1x128xf32> to vector<8x128xf32>
    %110 = arith.mulf %109, %108 : vector<8x128xf32>
    %111 = vector.broadcast %83 : vector<1x128xf32> to vector<8x128xf32>
    %112 = arith.addf %110, %111 : vector<8x128xf32>
    %113 = arith.truncf %112 : vector<8x128xf32> to vector<8x128xbf16>
    %cst_62 = arith.constant dense<0.000000e+00> : vector<8x256xf32>
    %114 = tpu.matmul %113, %85, %cst_62 {dimension_numbers = #tpu.dot_dimension_numbers<[1], [0], [0], [1], [0, 0, 1, 1], [], []>} : vector<8x128xbf16>, vector<128x256xbf16>, vector<8x256xf32> -> vector<8x256xf32>
    %115 = vector.broadcast %87 : vector<1x256xf32> to vector<8x256xf32>
    %116 = arith.addf %114, %115 : vector<8x256xf32>
    %cst_63 = arith.constant 0.000000e+00 : f32
    %117 = vector.broadcast %cst_63 : f32 to vector<8x256xf32>
    %118 = arith.maximumf %116, %117 : vector<8x256xf32>
    %119 = arith.truncf %118 : vector<8x256xf32> to vector<8x256xbf16>
    %cst_64 = arith.constant dense<0.000000e+00> : vector<8x128xf32>
    %120 = tpu.matmul %119, %89, %cst_64 {dimension_numbers = #tpu.dot_dimension_numbers<[1], [0], [0], [1], [0, 0, 1, 1], [], []>} : vector<8x256xbf16>, vector<256x128xbf16>, vector<8x128xf32> -> vector<8x128xf32>
    %121 = vector.broadcast %91 : vector<1x128xf32> to vector<8x128xf32>
    %122 = arith.addf %120, %121 : vector<8x128xf32>
    %123 = arith.addf %79, %122 : vector<8x128xf32>
    %c0_65 = arith.constant 0 : index
    %c0_66 = arith.constant 0 : index
    %124 = vector.load %arg19[%c0_65, %c0_66] : memref<8x128xf32, #tpu.memory_space<vmem>>, vector<8x128xf32>
    tpu.vector_store %arg19[%c0_65, %c0_66], %123 {strides = array<i32>} : memref<8x128xf32, #tpu.memory_space<vmem>>, vector<8x128xf32>,
    %c1_i32 = arith.constant 1 : i32
    %125 = arith.cmpi eq, %arg1, %c1_i32 : i32
    %126 = arith.extui %125 : i1 to i32
    %c0_i32_67 = arith.constant 0 : i32
    %127 = arith.cmpi ne, %126, %c0_i32_67 : i32
    scf.if %127 {
      %c0_68 = arith.constant 0 : index
      %c0_69 = arith.constant 0 : index
      %128 = vector.load %arg16[%c0_68, %c0_69] : memref<1x128xf32, #tpu.memory_space<vmem>>, vector<1x128xf32>
      %c0_70 = arith.constant 0 : index
      %c0_71 = arith.constant 0 : index
      %129 = vector.load %arg17[%c0_70, %c0_71] : memref<1x128xf32, #tpu.memory_space<vmem>>, vector<1x128xf32>
      %cst_72 = arith.constant dense<0.000000e+00> : vector<8xf32>
      %130 = vector.multi_reduction <add>, %123, %cst_72 [1] : vector<8x128xf32> to vector<8xf32>
      %131 = vector.shape_cast %130 : vector<8xf32> to vector<8x1xf32>
      %cst_73 = arith.constant 1.280000e+02 : f32
      %132 = vector.broadcast %cst_73 : f32 to vector<8x1xf32>
      %133 = arith.divf %131, %132 : vector<8x1xf32>
      %134 = vector.broadcast %133 : vector<8x1xf32> to vector<8x128xf32>
      %135 = arith.subf %123, %134 : vector<8x128xf32>
      %136 = arith.mulf %135, %135 : vector<8x128xf32>
      %cst_74 = arith.constant dense<0.000000e+00> : vector<8xf32>
      %137 = vector.multi_reduction <add>, %136, %cst_74 [1] : vector<8x128xf32> to vector<8xf32>
      %138 = vector.shape_cast %137 : vector<8xf32> to vector<8x1xf32>
      %cst_75 = arith.constant 0.00787401571 : f32
      %139 = vector.broadcast %cst_75 : f32 to vector<8x1xf32>
      %140 = arith.mulf %138, %139 : vector<8x1xf32>
      %141 = math.sqrt %140 : vector<8x1xf32>
      %cst_76 = arith.constant 9.99999997E-7 : f32
      %142 = vector.broadcast %cst_76 : f32 to vector<8x1xf32>
      %143 = arith.addf %141, %142 : vector<8x1xf32>
      %144 = tpu.reciprocal %143 : vector<8x1xf32> -> vector<8x1xf32>
      %145 = vector.broadcast %144 : vector<8x1xf32> to vector<8x128xf32>
      %146 = arith.mulf %135, %145 : vector<8x128xf32>
      %147 = vector.broadcast %128 : vector<1x128xf32> to vector<8x128xf32>
      %148 = arith.mulf %147, %146 : vector<8x128xf32>
      %149 = vector.broadcast %129 : vector<1x128xf32> to vector<8x128xf32>
      %150 = arith.addf %148, %149 : vector<8x128xf32>
      %151 = arith.truncf %150 : vector<8x128xf32> to vector<8x128xbf16>
      %c0_77 = arith.constant 0 : index
      %c0_78 = arith.constant 0 : index
      %c0_79 = arith.constant 0 : index
      %152 = vector.load %arg18[%c0_77, %c0_78, %c0_79] : memref<1x8x128xbf16, #tpu.memory_space<vmem>>, vector<1x8x128xbf16>
      %153 = vector.shape_cast %152 : vector<1x8x128xbf16> to vector<8x128xbf16>
      %154 = vector.shape_cast %151 : vector<8x128xbf16> to vector<1x8x128xbf16>
      tpu.vector_store %arg18[%c0_77, %c0_78, %c0_79], %154 {strides = array<i32>} : memref<1x8x128xbf16, #tpu.memory_space<vmem>>, vector<1x8x128xbf16>,
    } else {
    }
    return
  }
  func.func @transform_0(%arg0: i32, %arg1: i32) -> (i32, i32, i32) {
    %c0_i32 = arith.constant 0 : i32
    %c0_i32_0 = arith.constant 0 : i32
    %c0_i32_1 = arith.constant 0 : i32
    return %arg0, %c0_i32, %c0_i32_0 : i32, i32, i32
  }
  func.func @transform_1(%arg0: i32, %arg1: i32) -> (i32, i32, i32) {
    %c0_i32 = arith.constant 0 : i32
    %c0_i32_0 = arith.constant 0 : i32
    %c0_i32_1 = arith.constant 0 : i32
    return %arg0, %c0_i32, %c0_i32_0 : i32, i32, i32
  }
  func.func @transform_2(%arg0: i32, %arg1: i32) -> (i32, i32, i32) {
    %c0_i32 = arith.constant 0 : i32
    %c0_i32_0 = arith.constant 0 : i32
    %c0_i32_1 = arith.constant 0 : i32
    return %arg1, %c0_i32, %c0_i32_0 : i32, i32, i32
  }
  func.func @transform_3(%arg0: i32, %arg1: i32) -> (i32, i32, i32) {
    %c0_i32 = arith.constant 0 : i32
    %c0_i32_0 = arith.constant 0 : i32
    %c0_i32_1 = arith.constant 0 : i32
    return %arg1, %c0_i32, %c0_i32_0 : i32, i32, i32
  }
  func.func @transform_4(%arg0: i32, %arg1: i32) -> (i32, i32, i32, i32) {
    %c0_i32 = arith.constant 0 : i32
    %c0_i32_0 = arith.constant 0 : i32
    %c0_i32_1 = arith.constant 0 : i32
    %c0_i32_2 = arith.constant 0 : i32
    return %arg1, %c0_i32, %c0_i32_0, %c0_i32_1 : i32, i32, i32, i32
  }
  func.func @transform_5(%arg0: i32, %arg1: i32) -> (i32, i32, i32, i32) {
    %c0_i32 = arith.constant 0 : i32
    %c0_i32_0 = arith.constant 0 : i32
    %c0_i32_1 = arith.constant 0 : i32
    %c0_i32_2 = arith.constant 0 : i32
    return %arg1, %c0_i32, %c0_i32_0, %c0_i32_1 : i32, i32, i32, i32
  }
  func.func @transform_6(%arg0: i32, %arg1: i32) -> (i32, i32, i32, i32) {
    %c0_i32 = arith.constant 0 : i32
    %c0_i32_0 = arith.constant 0 : i32
    %c0_i32_1 = arith.constant 0 : i32
    %c0_i32_2 = arith.constant 0 : i32
    return %arg1, %c0_i32, %c0_i32_0, %c0_i32_1 : i32, i32, i32, i32
  }
  func.func @transform_7(%arg0: i32, %arg1: i32) -> (i32, i32, i32) {
    %c0_i32 = arith.constant 0 : i32
    %c0_i32_0 = arith.constant 0 : i32
    %c0_i32_1 = arith.constant 0 : i32
    return %arg1, %c0_i32, %c0_i32_0 : i32, i32, i32
  }
  func.func @transform_8(%arg0: i32, %arg1: i32) -> (i32, i32, i32) {
    %c0_i32 = arith.constant 0 : i32
    %c0_i32_0 = arith.constant 0 : i32
    %c0_i32_1 = arith.constant 0 : i32
    return %arg1, %c0_i32, %c0_i32_0 : i32, i32, i32
  }
  func.func @transform_9(%arg0: i32, %arg1: i32) -> (i32, i32, i32) {
    %c0_i32 = arith.constant 0 : i32
    %c0_i32_0 = arith.constant 0 : i32
    %c0_i32_1 = arith.constant 0 : i32
    return %arg1, %c0_i32, %c0_i32_0 : i32, i32, i32
  }
  func.func @transform_10(%arg0: i32, %arg1: i32) -> (i32, i32, i32) {
    %c0_i32 = arith.constant 0 : i32
    %c0_i32_0 = arith.constant 0 : i32
    %c0_i32_1 = arith.constant 0 : i32
    return %arg1, %c0_i32, %c0_i32_0 : i32, i32, i32
  }
  func.func @transform_11(%arg0: i32, %arg1: i32) -> (i32, i32, i32) {
    %c0_i32 = arith.constant 0 : i32
    %c0_i32_0 = arith.constant 0 : i32
    %c0_i32_1 = arith.constant 0 : i32
    return %arg1, %c0_i32, %c0_i32_0 : i32, i32, i32
  }
  func.func @transform_12(%arg0: i32, %arg1: i32) -> (i32, i32, i32) {
    %c0_i32 = arith.constant 0 : i32
    %c0_i32_0 = arith.constant 0 : i32
    %c0_i32_1 = arith.constant 0 : i32
    return %arg1, %c0_i32, %c0_i32_0 : i32, i32, i32
  }
  func.func @transform_13(%arg0: i32, %arg1: i32) -> (i32, i32, i32) {
    %c0_i32 = arith.constant 0 : i32
    %c0_i32_0 = arith.constant 0 : i32
    %c0_i32_1 = arith.constant 0 : i32
    return %arg1, %c0_i32, %c0_i32_0 : i32, i32, i32
  }
  func.func @transform_14(%arg0: i32, %arg1: i32) -> (i32, i32) {
    %c0_i32 = arith.constant 0 : i32
    %c0_i32_0 = arith.constant 0 : i32
    %c0_i32_1 = arith.constant 0 : i32
    return %c0_i32, %c0_i32_0 : i32, i32
  }
  func.func @transform_15(%arg0: i32, %arg1: i32) -> (i32, i32) {
    %c0_i32 = arith.constant 0 : i32
    %c0_i32_0 = arith.constant 0 : i32
    %c0_i32_1 = arith.constant 0 : i32
    return %c0_i32, %c0_i32_0 : i32, i32
  }
  func.func @transform_16(%arg0: i32, %arg1: i32) -> (i32, i32, i32) {
    %c0_i32 = arith.constant 0 : i32
    %c0_i32_0 = arith.constant 0 : i32
    %c0_i32_1 = arith.constant 0 : i32
    return %arg0, %c0_i32, %c0_i32_0 : i32, i32, i32
  }
}

module attributes {stable_mosaic.version = 11 : i64} {
  func.func @_decoder_kernel(%arg0: i32, %arg1: i32, %arg2: memref<1x8x128xf32, #tpu.memory_space<vmem>>, %arg3: memref<1x8x128xbf16, #tpu.memory_space<vmem>>, %arg4: memref<1x1x8xf32, #tpu.memory_space<vmem>>, %arg5: memref<1x1x128xf32, #tpu.memory_space<vmem>>, %arg6: memref<1x1x128xf32, #tpu.memory_space<vmem>>, %arg7: memref<1x12x128x32xbf16, #tpu.memory_space<vmem>>, %arg8: memref<1x12x1x32xf32, #tpu.memory_space<vmem>>, %arg9: memref<1x4x32x128xbf16, #tpu.memory_space<vmem>>, %arg10: memref<1x1x128xf32, #tpu.memory_space<vmem>>, %arg11: memref<1x1x128xf32, #tpu.memory_space<vmem>>, %arg12: memref<1x1x128xf32, #tpu.memory_space<vmem>>, %arg13: memref<1x4x128x32xbf16, #tpu.memory_space<vmem>>, %arg14: memref<1x4x1x32xf32, #tpu.memory_space<vmem>>, %arg15: memref<1x8x128x32xbf16, #tpu.memory_space<vmem>>, %arg16: memref<1x8x1x32xf32, #tpu.memory_space<vmem>>, %arg17: memref<1x4x32x128xbf16, #tpu.memory_space<vmem>>, %arg18: memref<1x1x128xf32, #tpu.memory_space<vmem>>, %arg19: memref<1x1x128xf32, #tpu.memory_space<vmem>>, %arg20: memref<1x1x128xf32, #tpu.memory_space<vmem>>, %arg21: memref<1x128x256xbf16, #tpu.memory_space<vmem>>, %arg22: memref<1x1x256xf32, #tpu.memory_space<vmem>>, %arg23: memref<1x256x128xbf16, #tpu.memory_space<vmem>>, %arg24: memref<1x1x128xf32, #tpu.memory_space<vmem>>, %arg25: memref<1x128xf32, #tpu.memory_space<vmem>>, %arg26: memref<1x128xf32, #tpu.memory_space<vmem>>, %arg27: memref<1x8x128xf32, #tpu.memory_space<vmem>>, %arg28: memref<8x128xf32, #tpu.memory_space<vmem>>) attributes {dimension_semantics = [#tpu.dimension_semantics<parallel>, #tpu.dimension_semantics<arbitrary>], iteration_bounds = array<i64: 2, 2>, scalar_prefetch = 0 : i64, scratch_operands = 1 : i64, tpu.core_type = #tpu.core_type<tc>, window_params = [{transform_indices = @transform_0, window_bounds = array<i64: 1, 8, 128>}, {transform_indices = @transform_1, window_bounds = array<i64: 1, 8, 128>}, {transform_indices = @transform_2, window_bounds = array<i64: 1, 1, 8>}, {transform_indices = @transform_3, window_bounds = array<i64: 1, 1, 128>}, {transform_indices = @transform_4, window_bounds = array<i64: 1, 1, 128>}, {transform_indices = @transform_5, window_bounds = array<i64: 1, 12, 128, 32>}, {transform_indices = @transform_6, window_bounds = array<i64: 1, 12, 1, 32>}, {transform_indices = @transform_7, window_bounds = array<i64: 1, 4, 32, 128>}, {transform_indices = @transform_8, window_bounds = array<i64: 1, 1, 128>}, {transform_indices = @transform_9, window_bounds = array<i64: 1, 1, 128>}, {transform_indices = @transform_10, window_bounds = array<i64: 1, 1, 128>}, {transform_indices = @transform_11, window_bounds = array<i64: 1, 4, 128, 32>}, {transform_indices = @transform_12, window_bounds = array<i64: 1, 4, 1, 32>}, {transform_indices = @transform_13, window_bounds = array<i64: 1, 8, 128, 32>}, {transform_indices = @transform_14, window_bounds = array<i64: 1, 8, 1, 32>}, {transform_indices = @transform_15, window_bounds = array<i64: 1, 4, 32, 128>}, {transform_indices = @transform_16, window_bounds = array<i64: 1, 1, 128>}, {transform_indices = @transform_17, window_bounds = array<i64: 1, 1, 128>}, {transform_indices = @transform_18, window_bounds = array<i64: 1, 1, 128>}, {transform_indices = @transform_19, window_bounds = array<i64: 1, 128, 256>}, {transform_indices = @transform_20, window_bounds = array<i64: 1, 1, 256>}, {transform_indices = @transform_21, window_bounds = array<i64: 1, 256, 128>}, {transform_indices = @transform_22, window_bounds = array<i64: 1, 1, 128>}, {pipeline_mode = #tpu.pipeline_mode<synchronous>, transform_indices = @transform_23, window_bounds = array<i64: 1, 128>}, {pipeline_mode = #tpu.pipeline_mode<synchronous>, transform_indices = @transform_24, window_bounds = array<i64: 1, 128>}, {transform_indices = @transform_25, window_bounds = array<i64: 1, 8, 128>}]} {
    %c0_i32 = arith.constant 0 : i32
    %0 = arith.cmpi eq, %arg1, %c0_i32 : i32
    %1 = arith.extui %0 : i1 to i32
    %c0_i32_0 = arith.constant 0 : i32
    %2 = arith.cmpi ne, %1, %c0_i32_0 : i32
    scf.if %2 {
      %c0_114 = arith.constant 0 : index
      %c0_115 = arith.constant 0 : index
      %c0_116 = arith.constant 0 : index
      %212 = vector.load %arg2[%c0_114, %c0_115, %c0_116] : memref<1x8x128xf32, #tpu.memory_space<vmem>>, vector<1x8x128xf32>
      %213 = vector.shape_cast %212 : vector<1x8x128xf32> to vector<8x128xf32>
      %c0_117 = arith.constant 0 : index
      %c0_118 = arith.constant 0 : index
      %214 = vector.load %arg28[%c0_117, %c0_118] : memref<8x128xf32, #tpu.memory_space<vmem>>, vector<8x128xf32>
      tpu.vector_store %arg28[%c0_117, %c0_118], %213 {strides = array<i32>} : memref<8x128xf32, #tpu.memory_space<vmem>>, vector<8x128xf32>,
    } else {
    }
    %c0 = arith.constant 0 : index
    %c0_1 = arith.constant 0 : index
    %3 = vector.load %arg28[%c0, %c0_1] : memref<8x128xf32, #tpu.memory_space<vmem>>, vector<8x128xf32>
    %c0_2 = arith.constant 0 : index
    %c0_3 = arith.constant 0 : index
    %c0_4 = arith.constant 0 : index
    %4 = vector.load %arg3[%c0_2, %c0_3, %c0_4] : memref<1x8x128xbf16, #tpu.memory_space<vmem>>, vector<1x8x128xbf16>
    %5 = vector.shape_cast %4 : vector<1x8x128xbf16> to vector<8x128xbf16>
    %6 = tpu.iota {dimensions = array<i32: 0>} : vector<8x8xi32>
    %7 = tpu.iota {dimensions = array<i32: 1>} : vector<8x8xi32>
    %8 = arith.cmpi sge, %6, %7 : vector<8x8xi32>
    %c0_5 = arith.constant 0 : index
    %c0_6 = arith.constant 0 : index
    %c0_7 = arith.constant 0 : index
    %9 = vector.load %arg4[%c0_5, %c0_6, %c0_7] : memref<1x1x8xf32, #tpu.memory_space<vmem>>, vector<1x1x8xf32>
    %10 = vector.shape_cast %9 : vector<1x1x8xf32> to vector<1x8xf32>
    %cst = arith.constant 0.000000e+00 : f32
    %11 = vector.broadcast %cst : f32 to vector<1x8xf32>
    %12 = arith.cmpf ogt, %10, %11 : vector<1x8xf32>
    %13 = vector.shape_cast %12 : vector<1x8xi1> to vector<1x8xi1>
    %14 = vector.broadcast %13 : vector<1x8xi1> to vector<8x8xi1>
    %c0_8 = arith.constant 0 : index
    %c0_9 = arith.constant 0 : index
    %c0_10 = arith.constant 0 : index
    %15 = vector.load %arg5[%c0_8, %c0_9, %c0_10] : memref<1x1x128xf32, #tpu.memory_space<vmem>>, vector<1x1x128xf32>
    %16 = vector.shape_cast %15 : vector<1x1x128xf32> to vector<1x128xf32>
    %c0_11 = arith.constant 0 : index
    %c0_12 = arith.constant 0 : index
    %c0_13 = arith.constant 0 : index
    %17 = vector.load %arg6[%c0_11, %c0_12, %c0_13] : memref<1x1x128xf32, #tpu.memory_space<vmem>>, vector<1x1x128xf32>
    %18 = vector.shape_cast %17 : vector<1x1x128xf32> to vector<1x128xf32>
    %c0_14 = arith.constant 0 : index
    %c0_15 = arith.constant 0 : index
    %c0_16 = arith.constant 0 : index
    %c0_17 = arith.constant 0 : index
    %19 = vector.load %arg7[%c0_14, %c0_15, %c0_16, %c0_17] : memref<1x12x128x32xbf16, #tpu.memory_space<vmem>>, vector<1x12x128x32xbf16>
    %20 = vector.shape_cast %19 : vector<1x12x128x32xbf16> to vector<12x128x32xbf16>
    %c0_18 = arith.constant 0 : index
    %c0_19 = arith.constant 0 : index
    %c0_20 = arith.constant 0 : index
    %c0_21 = arith.constant 0 : index
    %21 = vector.load %arg8[%c0_18, %c0_19, %c0_20, %c0_21] : memref<1x12x1x32xf32, #tpu.memory_space<vmem>>, vector<1x12x1x32xf32>
    %22 = vector.shape_cast %21 : vector<1x12x1x32xf32> to vector<12x1x32xf32>
    %c0_22 = arith.constant 0 : index
    %c0_23 = arith.constant 0 : index
    %c0_24 = arith.constant 0 : index
    %c0_25 = arith.constant 0 : index
    %23 = vector.load %arg9[%c0_22, %c0_23, %c0_24, %c0_25] : memref<1x4x32x128xbf16, #tpu.memory_space<vmem>>, vector<1x4x32x128xbf16>
    %24 = vector.shape_cast %23 : vector<1x4x32x128xbf16> to vector<4x32x128xbf16>
    %c0_26 = arith.constant 0 : index
    %c0_27 = arith.constant 0 : index
    %c0_28 = arith.constant 0 : index
    %25 = vector.load %arg10[%c0_26, %c0_27, %c0_28] : memref<1x1x128xf32, #tpu.memory_space<vmem>>, vector<1x1x128xf32>
    %26 = vector.shape_cast %25 : vector<1x1x128xf32> to vector<1x128xf32>
    %cst_29 = arith.constant dense<0.000000e+00> : vector<8xf32>
    %27 = vector.multi_reduction <add>, %3, %cst_29 [1] : vector<8x128xf32> to vector<8xf32>
    %28 = vector.shape_cast %27 : vector<8xf32> to vector<8x1xf32>
    %cst_30 = arith.constant 1.280000e+02 : f32
    %29 = vector.broadcast %cst_30 : f32 to vector<8x1xf32>
    %30 = arith.divf %28, %29 : vector<8x1xf32>
    %31 = vector.broadcast %30 : vector<8x1xf32> to vector<8x128xf32>
    %32 = arith.subf %3, %31 : vector<8x128xf32>
    %33 = arith.mulf %32, %32 : vector<8x128xf32>
    %cst_31 = arith.constant dense<0.000000e+00> : vector<8xf32>
    %34 = vector.multi_reduction <add>, %33, %cst_31 [1] : vector<8x128xf32> to vector<8xf32>
    %35 = vector.shape_cast %34 : vector<8xf32> to vector<8x1xf32>
    %cst_32 = arith.constant 0.00787401571 : f32
    %36 = vector.broadcast %cst_32 : f32 to vector<8x1xf32>
    %37 = arith.mulf %35, %36 : vector<8x1xf32>
    %38 = math.sqrt %37 : vector<8x1xf32>
    %cst_33 = arith.constant 9.99999997E-7 : f32
    %39 = vector.broadcast %cst_33 : f32 to vector<8x1xf32>
    %40 = arith.addf %38, %39 : vector<8x1xf32>
    %41 = tpu.reciprocal %40 : vector<8x1xf32> -> vector<8x1xf32>
    %42 = vector.broadcast %41 : vector<8x1xf32> to vector<8x128xf32>
    %43 = arith.mulf %32, %42 : vector<8x128xf32>
    %44 = vector.broadcast %16 : vector<1x128xf32> to vector<8x128xf32>
    %45 = arith.mulf %44, %43 : vector<8x128xf32>
    %46 = vector.broadcast %18 : vector<1x128xf32> to vector<8x128xf32>
    %47 = arith.addf %45, %46 : vector<8x128xf32>
    %48 = arith.truncf %47 : vector<8x128xf32> to vector<8x128xbf16>
    %49 = vector.shape_cast %48 : vector<8x128xbf16> to vector<1x8x128xbf16>
    %50 = vector.shape_cast %49 : vector<1x8x128xbf16> to vector<1x8x128xbf16>
    %51 = vector.broadcast %50 : vector<1x8x128xbf16> to vector<12x8x128xbf16>
    %cst_34 = arith.constant dense<0.000000e+00> : vector<12x8x32xf32>
    %52 = tpu.matmul %51, %20, %cst_34 {dimension_numbers = #tpu.dot_dimension_numbers<[2], [1], [1], [2], [0, 0, 0, 1, 1, 2], [0], [0]>} : vector<12x8x128xbf16>, vector<12x128x32xbf16>, vector<12x8x32xf32> -> vector<12x8x32xf32>
    %53 = vector.broadcast %22 : vector<12x1x32xf32> to vector<12x8x32xf32>
    %54 = arith.addf %52, %53 : vector<12x8x32xf32>
    %55 = vector.extract_strided_slice %54 {offsets = [0, 0, 0], sizes = [4, 8, 32], strides = [1, 1, 1]} : vector<12x8x32xf32> to vector<4x8x32xf32>
    %56 = vector.extract_strided_slice %54 {offsets = [4, 0, 0], sizes = [4, 8, 32], strides = [1, 1, 1]} : vector<12x8x32xf32> to vector<4x8x32xf32>
    %57 = vector.extract_strided_slice %54 {offsets = [8, 0, 0], sizes = [4, 8, 32], strides = [1, 1, 1]} : vector<12x8x32xf32> to vector<4x8x32xf32>
    %58 = arith.truncf %55 : vector<4x8x32xf32> to vector<4x8x32xbf16>
    %59 = arith.truncf %56 : vector<4x8x32xf32> to vector<4x8x32xbf16>
    %cst_35 = arith.constant dense<0.000000e+00> : vector<4x8x8xf32>
    %60 = tpu.matmul %58, %59, %cst_35 {dimension_numbers = #tpu.dot_dimension_numbers<[2], [2], [1], [1], [0, 0, 0, 1, 1, 1], [0], [0]>} : vector<4x8x32xbf16>, vector<4x8x32xbf16>, vector<4x8x8xf32> -> vector<4x8x8xf32>
    %61 = vector.shape_cast %8 : vector<8x8xi1> to vector<1x8x8xi1>
    %cst_36 = arith.constant -1.000000e+09 : f32
    %62 = vector.shape_cast %61 : vector<1x8x8xi1> to vector<1x8x8xi1>
    %63 = vector.broadcast %62 : vector<1x8x8xi1> to vector<4x8x8xi1>
    %64 = vector.broadcast %cst_36 : f32 to vector<4x8x8xf32>
    %65 = arith.select %63, %60, %64 : vector<4x8x8xi1>, vector<4x8x8xf32>
    %cst_37 = arith.constant dense<0xFF800000> : vector<4x8xf32>
    %66 = vector.multi_reduction <maximumf>, %65, %cst_37 [2] : vector<4x8x8xf32> to vector<4x8xf32>
    %67 = vector.shape_cast %66 : vector<4x8xf32> to vector<4x8x1xf32>
    %68 = vector.broadcast %67 : vector<4x8x1xf32> to vector<4x8x8xf32>
    %69 = arith.subf %65, %68 : vector<4x8x8xf32>
    %70 = math.exp %69 : vector<4x8x8xf32>
    %cst_38 = arith.constant dense<0.000000e+00> : vector<4x8xf32>
    %71 = vector.multi_reduction <add>, %70, %cst_38 [2] : vector<4x8x8xf32> to vector<4x8xf32>
    %72 = vector.shape_cast %71 : vector<4x8xf32> to vector<4x8x1xf32>
    %73 = tpu.reciprocal %72 {approx = true} : vector<4x8x1xf32> -> vector<4x8x1xf32>
    %74 = vector.broadcast %73 : vector<4x8x1xf32> to vector<4x8x8xf32>
    %75 = arith.mulf %70, %74 : vector<4x8x8xf32>
    %76 = arith.truncf %75 : vector<4x8x8xf32> to vector<4x8x8xbf16>
    %77 = arith.truncf %57 : vector<4x8x32xf32> to vector<4x8x32xbf16>
    %cst_39 = arith.constant dense<0.000000e+00> : vector<4x8x32xf32>
    %78 = tpu.matmul %76, %77, %cst_39 {dimension_numbers = #tpu.dot_dimension_numbers<[2], [1], [1], [2], [0, 0, 0, 1, 1, 2], [0], [0]>} : vector<4x8x8xbf16>, vector<4x8x32xbf16>, vector<4x8x32xf32> -> vector<4x8x32xf32>
    %79 = arith.truncf %78 : vector<4x8x32xf32> to vector<4x8x32xbf16>
    %cst_40 = arith.constant dense<0.000000e+00> : vector<4x8x128xf32>
    %80 = tpu.matmul %79, %24, %cst_40 {dimension_numbers = #tpu.dot_dimension_numbers<[2], [1], [1], [2], [0, 0, 0, 1, 1, 2], [0], [0]>} : vector<4x8x32xbf16>, vector<4x32x128xbf16>, vector<4x8x128xf32> -> vector<4x8x128xf32>
    %cst_41 = arith.constant dense<0.000000e+00> : vector<8x128xf32>
    %81 = vector.multi_reduction <add>, %80, %cst_41 [0] : vector<4x8x128xf32> to vector<8x128xf32>
    %82 = vector.broadcast %26 : vector<1x128xf32> to vector<8x128xf32>
    %83 = arith.addf %81, %82 : vector<8x128xf32>
    %84 = arith.addf %3, %83 : vector<8x128xf32>
    %c0_42 = arith.constant 0 : index
    %c0_43 = arith.constant 0 : index
    %c0_44 = arith.constant 0 : index
    %85 = vector.load %arg11[%c0_42, %c0_43, %c0_44] : memref<1x1x128xf32, #tpu.memory_space<vmem>>, vector<1x1x128xf32>
    %86 = vector.shape_cast %85 : vector<1x1x128xf32> to vector<1x128xf32>
    %c0_45 = arith.constant 0 : index
    %c0_46 = arith.constant 0 : index
    %c0_47 = arith.constant 0 : index
    %87 = vector.load %arg12[%c0_45, %c0_46, %c0_47] : memref<1x1x128xf32, #tpu.memory_space<vmem>>, vector<1x1x128xf32>
    %88 = vector.shape_cast %87 : vector<1x1x128xf32> to vector<1x128xf32>
    %c0_48 = arith.constant 0 : index
    %c0_49 = arith.constant 0 : index
    %c0_50 = arith.constant 0 : index
    %c0_51 = arith.constant 0 : index
    %89 = vector.load %arg13[%c0_48, %c0_49, %c0_50, %c0_51] : memref<1x4x128x32xbf16, #tpu.memory_space<vmem>>, vector<1x4x128x32xbf16>
    %90 = vector.shape_cast %89 : vector<1x4x128x32xbf16> to vector<4x128x32xbf16>
    %c0_52 = arith.constant 0 : index
    %c0_53 = arith.constant 0 : index
    %c0_54 = arith.constant 0 : index
    %c0_55 = arith.constant 0 : index
    %91 = vector.load %arg14[%c0_52, %c0_53, %c0_54, %c0_55] : memref<1x4x1x32xf32, #tpu.memory_space<vmem>>, vector<1x4x1x32xf32>
    %92 = vector.shape_cast %91 : vector<1x4x1x32xf32> to vector<4x1x32xf32>
    %c0_56 = arith.constant 0 : index
    %c0_57 = arith.constant 0 : index
    %c0_58 = arith.constant 0 : index
    %c0_59 = arith.constant 0 : index
    %93 = vector.load %arg15[%c0_56, %c0_57, %c0_58, %c0_59] : memref<1x8x128x32xbf16, #tpu.memory_space<vmem>>, vector<1x8x128x32xbf16>
    %94 = vector.shape_cast %93 : vector<1x8x128x32xbf16> to vector<8x128x32xbf16>
    %c0_60 = arith.constant 0 : index
    %c0_61 = arith.constant 0 : index
    %c0_62 = arith.constant 0 : index
    %c0_63 = arith.constant 0 : index
    %95 = vector.load %arg16[%c0_60, %c0_61, %c0_62, %c0_63] : memref<1x8x1x32xf32, #tpu.memory_space<vmem>>, vector<1x8x1x32xf32>
    %96 = vector.shape_cast %95 : vector<1x8x1x32xf32> to vector<8x1x32xf32>
    %c0_64 = arith.constant 0 : index
    %c0_65 = arith.constant 0 : index
    %c0_66 = arith.constant 0 : index
    %c0_67 = arith.constant 0 : index
    %97 = vector.load %arg17[%c0_64, %c0_65, %c0_66, %c0_67] : memref<1x4x32x128xbf16, #tpu.memory_space<vmem>>, vector<1x4x32x128xbf16>
    %98 = vector.shape_cast %97 : vector<1x4x32x128xbf16> to vector<4x32x128xbf16>
    %c0_68 = arith.constant 0 : index
    %c0_69 = arith.constant 0 : index
    %c0_70 = arith.constant 0 : index
    %99 = vector.load %arg18[%c0_68, %c0_69, %c0_70] : memref<1x1x128xf32, #tpu.memory_space<vmem>>, vector<1x1x128xf32>
    %100 = vector.shape_cast %99 : vector<1x1x128xf32> to vector<1x128xf32>
    %cst_71 = arith.constant dense<0.000000e+00> : vector<8xf32>
    %101 = vector.multi_reduction <add>, %84, %cst_71 [1] : vector<8x128xf32> to vector<8xf32>
    %102 = vector.shape_cast %101 : vector<8xf32> to vector<8x1xf32>
    %cst_72 = arith.constant 1.280000e+02 : f32
    %103 = vector.broadcast %cst_72 : f32 to vector<8x1xf32>
    %104 = arith.divf %102, %103 : vector<8x1xf32>
    %105 = vector.broadcast %104 : vector<8x1xf32> to vector<8x128xf32>
    %106 = arith.subf %84, %105 : vector<8x128xf32>
    %107 = arith.mulf %106, %106 : vector<8x128xf32>
    %cst_73 = arith.constant dense<0.000000e+00> : vector<8xf32>
    %108 = vector.multi_reduction <add>, %107, %cst_73 [1] : vector<8x128xf32> to vector<8xf32>
    %109 = vector.shape_cast %108 : vector<8xf32> to vector<8x1xf32>
    %cst_74 = arith.constant 0.00787401571 : f32
    %110 = vector.broadcast %cst_74 : f32 to vector<8x1xf32>
    %111 = arith.mulf %109, %110 : vector<8x1xf32>
    %112 = math.sqrt %111 : vector<8x1xf32>
    %cst_75 = arith.constant 9.99999997E-7 : f32
    %113 = vector.broadcast %cst_75 : f32 to vector<8x1xf32>
    %114 = arith.addf %112, %113 : vector<8x1xf32>
    %115 = tpu.reciprocal %114 : vector<8x1xf32> -> vector<8x1xf32>
    %116 = vector.broadcast %115 : vector<8x1xf32> to vector<8x128xf32>
    %117 = arith.mulf %106, %116 : vector<8x128xf32>
    %118 = vector.broadcast %86 : vector<1x128xf32> to vector<8x128xf32>
    %119 = arith.mulf %118, %117 : vector<8x128xf32>
    %120 = vector.broadcast %88 : vector<1x128xf32> to vector<8x128xf32>
    %121 = arith.addf %119, %120 : vector<8x128xf32>
    %122 = arith.truncf %121 : vector<8x128xf32> to vector<8x128xbf16>
    %123 = vector.shape_cast %122 : vector<8x128xbf16> to vector<1x8x128xbf16>
    %124 = vector.shape_cast %123 : vector<1x8x128xbf16> to vector<1x8x128xbf16>
    %125 = vector.broadcast %124 : vector<1x8x128xbf16> to vector<4x8x128xbf16>
    %cst_76 = arith.constant dense<0.000000e+00> : vector<4x8x32xf32>
    %126 = tpu.matmul %125, %90, %cst_76 {dimension_numbers = #tpu.dot_dimension_numbers<[2], [1], [1], [2], [0, 0, 0, 1, 1, 2], [0], [0]>} : vector<4x8x128xbf16>, vector<4x128x32xbf16>, vector<4x8x32xf32> -> vector<4x8x32xf32>
    %127 = vector.broadcast %92 : vector<4x1x32xf32> to vector<4x8x32xf32>
    %128 = arith.addf %126, %127 : vector<4x8x32xf32>
    %129 = vector.shape_cast %5 : vector<8x128xbf16> to vector<1x8x128xbf16>
    %130 = vector.shape_cast %129 : vector<1x8x128xbf16> to vector<1x8x128xbf16>
    %131 = vector.broadcast %130 : vector<1x8x128xbf16> to vector<8x8x128xbf16>
    %cst_77 = arith.constant dense<0.000000e+00> : vector<8x8x32xf32>
    %132 = tpu.matmul %131, %94, %cst_77 {dimension_numbers = #tpu.dot_dimension_numbers<[2], [1], [1], [2], [0, 0, 0, 1, 1, 2], [0], [0]>} : vector<8x8x128xbf16>, vector<8x128x32xbf16>, vector<8x8x32xf32> -> vector<8x8x32xf32>
    %133 = vector.broadcast %96 : vector<8x1x32xf32> to vector<8x8x32xf32>
    %134 = arith.addf %132, %133 : vector<8x8x32xf32>
    %135 = vector.extract_strided_slice %134 {offsets = [0, 0, 0], sizes = [4, 8, 32], strides = [1, 1, 1]} : vector<8x8x32xf32> to vector<4x8x32xf32>
    %136 = vector.extract_strided_slice %134 {offsets = [4, 0, 0], sizes = [4, 8, 32], strides = [1, 1, 1]} : vector<8x8x32xf32> to vector<4x8x32xf32>
    %137 = arith.truncf %128 : vector<4x8x32xf32> to vector<4x8x32xbf16>
    %138 = arith.truncf %135 : vector<4x8x32xf32> to vector<4x8x32xbf16>
    %cst_78 = arith.constant dense<0.000000e+00> : vector<4x8x8xf32>
    %139 = tpu.matmul %137, %138, %cst_78 {dimension_numbers = #tpu.dot_dimension_numbers<[2], [2], [1], [1], [0, 0, 0, 1, 1, 1], [0], [0]>} : vector<4x8x32xbf16>, vector<4x8x32xbf16>, vector<4x8x8xf32> -> vector<4x8x8xf32>
    %140 = vector.shape_cast %14 : vector<8x8xi1> to vector<1x8x8xi1>
    %cst_79 = arith.constant -1.000000e+09 : f32
    %141 = vector.shape_cast %140 : vector<1x8x8xi1> to vector<1x8x8xi1>
    %142 = vector.broadcast %141 : vector<1x8x8xi1> to vector<4x8x8xi1>
    %143 = vector.broadcast %cst_79 : f32 to vector<4x8x8xf32>
    %144 = arith.select %142, %139, %143 : vector<4x8x8xi1>, vector<4x8x8xf32>
    %cst_80 = arith.constant dense<0xFF800000> : vector<4x8xf32>
    %145 = vector.multi_reduction <maximumf>, %144, %cst_80 [2] : vector<4x8x8xf32> to vector<4x8xf32>
    %146 = vector.shape_cast %145 : vector<4x8xf32> to vector<4x8x1xf32>
    %147 = vector.broadcast %146 : vector<4x8x1xf32> to vector<4x8x8xf32>
    %148 = arith.subf %144, %147 : vector<4x8x8xf32>
    %149 = math.exp %148 : vector<4x8x8xf32>
    %cst_81 = arith.constant dense<0.000000e+00> : vector<4x8xf32>
    %150 = vector.multi_reduction <add>, %149, %cst_81 [2] : vector<4x8x8xf32> to vector<4x8xf32>
    %151 = vector.shape_cast %150 : vector<4x8xf32> to vector<4x8x1xf32>
    %152 = tpu.reciprocal %151 {approx = true} : vector<4x8x1xf32> -> vector<4x8x1xf32>
    %153 = vector.broadcast %152 : vector<4x8x1xf32> to vector<4x8x8xf32>
    %154 = arith.mulf %149, %153 : vector<4x8x8xf32>
    %155 = arith.truncf %154 : vector<4x8x8xf32> to vector<4x8x8xbf16>
    %156 = arith.truncf %136 : vector<4x8x32xf32> to vector<4x8x32xbf16>
    %cst_82 = arith.constant dense<0.000000e+00> : vector<4x8x32xf32>
    %157 = tpu.matmul %155, %156, %cst_82 {dimension_numbers = #tpu.dot_dimension_numbers<[2], [1], [1], [2], [0, 0, 0, 1, 1, 2], [0], [0]>} : vector<4x8x8xbf16>, vector<4x8x32xbf16>, vector<4x8x32xf32> -> vector<4x8x32xf32>
    %158 = arith.truncf %157 : vector<4x8x32xf32> to vector<4x8x32xbf16>
    %cst_83 = arith.constant dense<0.000000e+00> : vector<4x8x128xf32>
    %159 = tpu.matmul %158, %98, %cst_83 {dimension_numbers = #tpu.dot_dimension_numbers<[2], [1], [1], [2], [0, 0, 0, 1, 1, 2], [0], [0]>} : vector<4x8x32xbf16>, vector<4x32x128xbf16>, vector<4x8x128xf32> -> vector<4x8x128xf32>
    %cst_84 = arith.constant dense<0.000000e+00> : vector<8x128xf32>
    %160 = vector.multi_reduction <add>, %159, %cst_84 [0] : vector<4x8x128xf32> to vector<8x128xf32>
    %161 = vector.broadcast %100 : vector<1x128xf32> to vector<8x128xf32>
    %162 = arith.addf %160, %161 : vector<8x128xf32>
    %163 = arith.addf %84, %162 : vector<8x128xf32>
    %c0_85 = arith.constant 0 : index
    %c0_86 = arith.constant 0 : index
    %c0_87 = arith.constant 0 : index
    %164 = vector.load %arg19[%c0_85, %c0_86, %c0_87] : memref<1x1x128xf32, #tpu.memory_space<vmem>>, vector<1x1x128xf32>
    %165 = vector.shape_cast %164 : vector<1x1x128xf32> to vector<1x128xf32>
    %c0_88 = arith.constant 0 : index
    %c0_89 = arith.constant 0 : index
    %c0_90 = arith.constant 0 : index
    %166 = vector.load %arg20[%c0_88, %c0_89, %c0_90] : memref<1x1x128xf32, #tpu.memory_space<vmem>>, vector<1x1x128xf32>
    %167 = vector.shape_cast %166 : vector<1x1x128xf32> to vector<1x128xf32>
    %c0_91 = arith.constant 0 : index
    %c0_92 = arith.constant 0 : index
    %c0_93 = arith.constant 0 : index
    %168 = vector.load %arg21[%c0_91, %c0_92, %c0_93] : memref<1x128x256xbf16, #tpu.memory_space<vmem>>, vector<1x128x256xbf16>
    %169 = vector.shape_cast %168 : vector<1x128x256xbf16> to vector<128x256xbf16>
    %c0_94 = arith.constant 0 : index
    %c0_95 = arith.constant 0 : index
    %c0_96 = arith.constant 0 : index
    %170 = vector.load %arg22[%c0_94, %c0_95, %c0_96] : memref<1x1x256xf32, #tpu.memory_space<vmem>>, vector<1x1x256xf32>
    %171 = vector.shape_cast %170 : vector<1x1x256xf32> to vector<1x256xf32>
    %c0_97 = arith.constant 0 : index
    %c0_98 = arith.constant 0 : index
    %c0_99 = arith.constant 0 : index
    %172 = vector.load %arg23[%c0_97, %c0_98, %c0_99] : memref<1x256x128xbf16, #tpu.memory_space<vmem>>, vector<1x256x128xbf16>
    %173 = vector.shape_cast %172 : vector<1x256x128xbf16> to vector<256x128xbf16>
    %c0_100 = arith.constant 0 : index
    %c0_101 = arith.constant 0 : index
    %c0_102 = arith.constant 0 : index
    %174 = vector.load %arg24[%c0_100, %c0_101, %c0_102] : memref<1x1x128xf32, #tpu.memory_space<vmem>>, vector<1x1x128xf32>
    %175 = vector.shape_cast %174 : vector<1x1x128xf32> to vector<1x128xf32>
    %cst_103 = arith.constant dense<0.000000e+00> : vector<8xf32>
    %176 = vector.multi_reduction <add>, %163, %cst_103 [1] : vector<8x128xf32> to vector<8xf32>
    %177 = vector.shape_cast %176 : vector<8xf32> to vector<8x1xf32>
    %cst_104 = arith.constant 1.280000e+02 : f32
    %178 = vector.broadcast %cst_104 : f32 to vector<8x1xf32>
    %179 = arith.divf %177, %178 : vector<8x1xf32>
    %180 = vector.broadcast %179 : vector<8x1xf32> to vector<8x128xf32>
    %181 = arith.subf %163, %180 : vector<8x128xf32>
    %182 = arith.mulf %181, %181 : vector<8x128xf32>
    %cst_105 = arith.constant dense<0.000000e+00> : vector<8xf32>
    %183 = vector.multi_reduction <add>, %182, %cst_105 [1] : vector<8x128xf32> to vector<8xf32>
    %184 = vector.shape_cast %183 : vector<8xf32> to vector<8x1xf32>
    %cst_106 = arith.constant 0.00787401571 : f32
    %185 = vector.broadcast %cst_106 : f32 to vector<8x1xf32>
    %186 = arith.mulf %184, %185 : vector<8x1xf32>
    %187 = math.sqrt %186 : vector<8x1xf32>
    %cst_107 = arith.constant 9.99999997E-7 : f32
    %188 = vector.broadcast %cst_107 : f32 to vector<8x1xf32>
    %189 = arith.addf %187, %188 : vector<8x1xf32>
    %190 = tpu.reciprocal %189 : vector<8x1xf32> -> vector<8x1xf32>
    %191 = vector.broadcast %190 : vector<8x1xf32> to vector<8x128xf32>
    %192 = arith.mulf %181, %191 : vector<8x128xf32>
    %193 = vector.broadcast %165 : vector<1x128xf32> to vector<8x128xf32>
    %194 = arith.mulf %193, %192 : vector<8x128xf32>
    %195 = vector.broadcast %167 : vector<1x128xf32> to vector<8x128xf32>
    %196 = arith.addf %194, %195 : vector<8x128xf32>
    %197 = arith.truncf %196 : vector<8x128xf32> to vector<8x128xbf16>
    %cst_108 = arith.constant dense<0.000000e+00> : vector<8x256xf32>
    %198 = tpu.matmul %197, %169, %cst_108 {dimension_numbers = #tpu.dot_dimension_numbers<[1], [0], [0], [1], [0, 0, 1, 1], [], []>} : vector<8x128xbf16>, vector<128x256xbf16>, vector<8x256xf32> -> vector<8x256xf32>
    %199 = vector.broadcast %171 : vector<1x256xf32> to vector<8x256xf32>
    %200 = arith.addf %198, %199 : vector<8x256xf32>
    %cst_109 = arith.constant 0.000000e+00 : f32
    %201 = vector.broadcast %cst_109 : f32 to vector<8x256xf32>
    %202 = arith.maximumf %200, %201 : vector<8x256xf32>
    %203 = arith.truncf %202 : vector<8x256xf32> to vector<8x256xbf16>
    %cst_110 = arith.constant dense<0.000000e+00> : vector<8x128xf32>
    %204 = tpu.matmul %203, %173, %cst_110 {dimension_numbers = #tpu.dot_dimension_numbers<[1], [0], [0], [1], [0, 0, 1, 1], [], []>} : vector<8x256xbf16>, vector<256x128xbf16>, vector<8x128xf32> -> vector<8x128xf32>
    %205 = vector.broadcast %175 : vector<1x128xf32> to vector<8x128xf32>
    %206 = arith.addf %204, %205 : vector<8x128xf32>
    %207 = arith.addf %163, %206 : vector<8x128xf32>
    %c0_111 = arith.constant 0 : index
    %c0_112 = arith.constant 0 : index
    %208 = vector.load %arg28[%c0_111, %c0_112] : memref<8x128xf32, #tpu.memory_space<vmem>>, vector<8x128xf32>
    tpu.vector_store %arg28[%c0_111, %c0_112], %207 {strides = array<i32>} : memref<8x128xf32, #tpu.memory_space<vmem>>, vector<8x128xf32>,
    %c1_i32 = arith.constant 1 : i32
    %209 = arith.cmpi eq, %arg1, %c1_i32 : i32
    %210 = arith.extui %209 : i1 to i32
    %c0_i32_113 = arith.constant 0 : i32
    %211 = arith.cmpi ne, %210, %c0_i32_113 : i32
    scf.if %211 {
      %c0_114 = arith.constant 0 : index
      %c0_115 = arith.constant 0 : index
      %212 = vector.load %arg25[%c0_114, %c0_115] : memref<1x128xf32, #tpu.memory_space<vmem>>, vector<1x128xf32>
      %c0_116 = arith.constant 0 : index
      %c0_117 = arith.constant 0 : index
      %213 = vector.load %arg26[%c0_116, %c0_117] : memref<1x128xf32, #tpu.memory_space<vmem>>, vector<1x128xf32>
      %cst_118 = arith.constant dense<0.000000e+00> : vector<8xf32>
      %214 = vector.multi_reduction <add>, %207, %cst_118 [1] : vector<8x128xf32> to vector<8xf32>
      %215 = vector.shape_cast %214 : vector<8xf32> to vector<8x1xf32>
      %cst_119 = arith.constant 1.280000e+02 : f32
      %216 = vector.broadcast %cst_119 : f32 to vector<8x1xf32>
      %217 = arith.divf %215, %216 : vector<8x1xf32>
      %218 = vector.broadcast %217 : vector<8x1xf32> to vector<8x128xf32>
      %219 = arith.subf %207, %218 : vector<8x128xf32>
      %220 = arith.mulf %219, %219 : vector<8x128xf32>
      %cst_120 = arith.constant dense<0.000000e+00> : vector<8xf32>
      %221 = vector.multi_reduction <add>, %220, %cst_120 [1] : vector<8x128xf32> to vector<8xf32>
      %222 = vector.shape_cast %221 : vector<8xf32> to vector<8x1xf32>
      %cst_121 = arith.constant 0.00787401571 : f32
      %223 = vector.broadcast %cst_121 : f32 to vector<8x1xf32>
      %224 = arith.mulf %222, %223 : vector<8x1xf32>
      %225 = math.sqrt %224 : vector<8x1xf32>
      %cst_122 = arith.constant 9.99999997E-7 : f32
      %226 = vector.broadcast %cst_122 : f32 to vector<8x1xf32>
      %227 = arith.addf %225, %226 : vector<8x1xf32>
      %228 = tpu.reciprocal %227 : vector<8x1xf32> -> vector<8x1xf32>
      %229 = vector.broadcast %228 : vector<8x1xf32> to vector<8x128xf32>
      %230 = arith.mulf %219, %229 : vector<8x128xf32>
      %231 = vector.broadcast %212 : vector<1x128xf32> to vector<8x128xf32>
      %232 = arith.mulf %231, %230 : vector<8x128xf32>
      %233 = vector.broadcast %213 : vector<1x128xf32> to vector<8x128xf32>
      %234 = arith.addf %232, %233 : vector<8x128xf32>
      %c0_123 = arith.constant 0 : index
      %c0_124 = arith.constant 0 : index
      %c0_125 = arith.constant 0 : index
      %235 = vector.load %arg27[%c0_123, %c0_124, %c0_125] : memref<1x8x128xf32, #tpu.memory_space<vmem>>, vector<1x8x128xf32>
      %236 = vector.shape_cast %235 : vector<1x8x128xf32> to vector<8x128xf32>
      %237 = vector.shape_cast %234 : vector<8x128xf32> to vector<1x8x128xf32>
      tpu.vector_store %arg27[%c0_123, %c0_124, %c0_125], %237 {strides = array<i32>} : memref<1x8x128xf32, #tpu.memory_space<vmem>>, vector<1x8x128xf32>,
    } else {
    }
    return
  }
  func.func @transform_0(%arg0: i32, %arg1: i32) -> (i32, i32, i32) {
    %c0_i32 = arith.constant 0 : i32
    %c0_i32_0 = arith.constant 0 : i32
    %c0_i32_1 = arith.constant 0 : i32
    return %arg0, %c0_i32, %c0_i32_0 : i32, i32, i32
  }
  func.func @transform_1(%arg0: i32, %arg1: i32) -> (i32, i32, i32) {
    %c0_i32 = arith.constant 0 : i32
    %c0_i32_0 = arith.constant 0 : i32
    %c0_i32_1 = arith.constant 0 : i32
    return %arg0, %c0_i32, %c0_i32_0 : i32, i32, i32
  }
  func.func @transform_2(%arg0: i32, %arg1: i32) -> (i32, i32, i32) {
    %c0_i32 = arith.constant 0 : i32
    %c0_i32_0 = arith.constant 0 : i32
    %c0_i32_1 = arith.constant 0 : i32
    return %arg0, %c0_i32, %c0_i32_0 : i32, i32, i32
  }
  func.func @transform_3(%arg0: i32, %arg1: i32) -> (i32, i32, i32) {
    %c0_i32 = arith.constant 0 : i32
    %c0_i32_0 = arith.constant 0 : i32
    %c0_i32_1 = arith.constant 0 : i32
    return %arg1, %c0_i32, %c0_i32_0 : i32, i32, i32
  }
  func.func @transform_4(%arg0: i32, %arg1: i32) -> (i32, i32, i32) {
    %c0_i32 = arith.constant 0 : i32
    %c0_i32_0 = arith.constant 0 : i32
    %c0_i32_1 = arith.constant 0 : i32
    return %arg1, %c0_i32, %c0_i32_0 : i32, i32, i32
  }
  func.func @transform_5(%arg0: i32, %arg1: i32) -> (i32, i32, i32, i32) {
    %c0_i32 = arith.constant 0 : i32
    %c0_i32_0 = arith.constant 0 : i32
    %c0_i32_1 = arith.constant 0 : i32
    %c0_i32_2 = arith.constant 0 : i32
    return %arg1, %c0_i32, %c0_i32_0, %c0_i32_1 : i32, i32, i32, i32
  }
  func.func @transform_6(%arg0: i32, %arg1: i32) -> (i32, i32, i32, i32) {
    %c0_i32 = arith.constant 0 : i32
    %c0_i32_0 = arith.constant 0 : i32
    %c0_i32_1 = arith.constant 0 : i32
    %c0_i32_2 = arith.constant 0 : i32
    return %arg1, %c0_i32, %c0_i32_0, %c0_i32_1 : i32, i32, i32, i32
  }
  func.func @transform_7(%arg0: i32, %arg1: i32) -> (i32, i32, i32, i32) {
    %c0_i32 = arith.constant 0 : i32
    %c0_i32_0 = arith.constant 0 : i32
    %c0_i32_1 = arith.constant 0 : i32
    %c0_i32_2 = arith.constant 0 : i32
    return %arg1, %c0_i32, %c0_i32_0, %c0_i32_1 : i32, i32, i32, i32
  }
  func.func @transform_8(%arg0: i32, %arg1: i32) -> (i32, i32, i32) {
    %c0_i32 = arith.constant 0 : i32
    %c0_i32_0 = arith.constant 0 : i32
    %c0_i32_1 = arith.constant 0 : i32
    return %arg1, %c0_i32, %c0_i32_0 : i32, i32, i32
  }
  func.func @transform_9(%arg0: i32, %arg1: i32) -> (i32, i32, i32) {
    %c0_i32 = arith.constant 0 : i32
    %c0_i32_0 = arith.constant 0 : i32
    %c0_i32_1 = arith.constant 0 : i32
    return %arg1, %c0_i32, %c0_i32_0 : i32, i32, i32
  }
  func.func @transform_10(%arg0: i32, %arg1: i32) -> (i32, i32, i32) {
    %c0_i32 = arith.constant 0 : i32
    %c0_i32_0 = arith.constant 0 : i32
    %c0_i32_1 = arith.constant 0 : i32
    return %arg1, %c0_i32, %c0_i32_0 : i32, i32, i32
  }
  func.func @transform_11(%arg0: i32, %arg1: i32) -> (i32, i32, i32, i32) {
    %c0_i32 = arith.constant 0 : i32
    %c0_i32_0 = arith.constant 0 : i32
    %c0_i32_1 = arith.constant 0 : i32
    %c0_i32_2 = arith.constant 0 : i32
    return %arg1, %c0_i32, %c0_i32_0, %c0_i32_1 : i32, i32, i32, i32
  }
  func.func @transform_12(%arg0: i32, %arg1: i32) -> (i32, i32, i32, i32) {
    %c0_i32 = arith.constant 0 : i32
    %c0_i32_0 = arith.constant 0 : i32
    %c0_i32_1 = arith.constant 0 : i32
    %c0_i32_2 = arith.constant 0 : i32
    return %arg1, %c0_i32, %c0_i32_0, %c0_i32_1 : i32, i32, i32, i32
  }
  func.func @transform_13(%arg0: i32, %arg1: i32) -> (i32, i32, i32, i32) {
    %c0_i32 = arith.constant 0 : i32
    %c0_i32_0 = arith.constant 0 : i32
    %c0_i32_1 = arith.constant 0 : i32
    %c0_i32_2 = arith.constant 0 : i32
    return %arg1, %c0_i32, %c0_i32_0, %c0_i32_1 : i32, i32, i32, i32
  }
  func.func @transform_14(%arg0: i32, %arg1: i32) -> (i32, i32, i32, i32) {
    %c0_i32 = arith.constant 0 : i32
    %c0_i32_0 = arith.constant 0 : i32
    %c0_i32_1 = arith.constant 0 : i32
    %c0_i32_2 = arith.constant 0 : i32
    return %arg1, %c0_i32, %c0_i32_0, %c0_i32_1 : i32, i32, i32, i32
  }
  func.func @transform_15(%arg0: i32, %arg1: i32) -> (i32, i32, i32, i32) {
    %c0_i32 = arith.constant 0 : i32
    %c0_i32_0 = arith.constant 0 : i32
    %c0_i32_1 = arith.constant 0 : i32
    %c0_i32_2 = arith.constant 0 : i32
    return %arg1, %c0_i32, %c0_i32_0, %c0_i32_1 : i32, i32, i32, i32
  }
  func.func @transform_16(%arg0: i32, %arg1: i32) -> (i32, i32, i32) {
    %c0_i32 = arith.constant 0 : i32
    %c0_i32_0 = arith.constant 0 : i32
    %c0_i32_1 = arith.constant 0 : i32
    return %arg1, %c0_i32, %c0_i32_0 : i32, i32, i32
  }
  func.func @transform_17(%arg0: i32, %arg1: i32) -> (i32, i32, i32) {
    %c0_i32 = arith.constant 0 : i32
    %c0_i32_0 = arith.constant 0 : i32
    %c0_i32_1 = arith.constant 0 : i32
    return %arg1, %c0_i32, %c0_i32_0 : i32, i32, i32
  }
  func.func @transform_18(%arg0: i32, %arg1: i32) -> (i32, i32, i32) {
    %c0_i32 = arith.constant 0 : i32
    %c0_i32_0 = arith.constant 0 : i32
    %c0_i32_1 = arith.constant 0 : i32
    return %arg1, %c0_i32, %c0_i32_0 : i32, i32, i32
  }
  func.func @transform_19(%arg0: i32, %arg1: i32) -> (i32, i32, i32) {
    %c0_i32 = arith.constant 0 : i32
    %c0_i32_0 = arith.constant 0 : i32
    %c0_i32_1 = arith.constant 0 : i32
    return %arg1, %c0_i32, %c0_i32_0 : i32, i32, i32
  }
  func.func @transform_20(%arg0: i32, %arg1: i32) -> (i32, i32, i32) {
    %c0_i32 = arith.constant 0 : i32
    %c0_i32_0 = arith.constant 0 : i32
    %c0_i32_1 = arith.constant 0 : i32
    return %arg1, %c0_i32, %c0_i32_0 : i32, i32, i32
  }
  func.func @transform_21(%arg0: i32, %arg1: i32) -> (i32, i32, i32) {
    %c0_i32 = arith.constant 0 : i32
    %c0_i32_0 = arith.constant 0 : i32
    %c0_i32_1 = arith.constant 0 : i32
    return %arg1, %c0_i32, %c0_i32_0 : i32, i32, i32
  }
  func.func @transform_22(%arg0: i32, %arg1: i32) -> (i32, i32, i32) {
    %c0_i32 = arith.constant 0 : i32
    %c0_i32_0 = arith.constant 0 : i32
    %c0_i32_1 = arith.constant 0 : i32
    return %arg1, %c0_i32, %c0_i32_0 : i32, i32, i32
  }
  func.func @transform_23(%arg0: i32, %arg1: i32) -> (i32, i32) {
    %c0_i32 = arith.constant 0 : i32
    %c0_i32_0 = arith.constant 0 : i32
    %c0_i32_1 = arith.constant 0 : i32
    return %c0_i32, %c0_i32_0 : i32, i32
  }
  func.func @transform_24(%arg0: i32, %arg1: i32) -> (i32, i32) {
    %c0_i32 = arith.constant 0 : i32
    %c0_i32_0 = arith.constant 0 : i32
    %c0_i32_1 = arith.constant 0 : i32
    return %c0_i32, %c0_i32_0 : i32, i32
  }
  func.func @transform_25(%arg0: i32, %arg1: i32) -> (i32, i32, i32) {
    %c0_i32 = arith.constant 0 : i32
    %c0_i32_0 = arith.constant 0 : i32
    %c0_i32_1 = arith.constant 0 : i32
    return %arg0, %c0_i32, %c0_i32_0 : i32, i32, i32
  }
}

</mosaic_0001>

<bundles_post_ra>
// kernel: _lambda_.2
= control target key start
LH: loop header
LB: loop body
LE: loop exit
PB: predicated region body
PF: predicated region fallthrough
CT: control target
= control target key end

     0   :  { %s4430_s21 = smov 0   ;;  %s4432_s22 = smov 0   ;;  %s4986_s0 = inlined_call_operand.vmem [shape: f32[2,8,128], index: 0, kind: input, shape index: {}]   ;;  %s4987_s1 = inlined_call_operand.vmem [shape: f32[2,1,8], index: 1, kind: input, shape index: {}]   ;;  %s4988_s2 = inlined_call_operand.vmem [shape: f32[2,1,128], index: 2, kind: input, shape index: {}]   ;;  %s4989_s3 = inlined_call_operand.vmem [shape: f32[2,1,128], index: 3, kind: input, shape index: {}]   ;;  %s4990_s4 = inlined_call_operand.vmem [shape: bf16[2,12,128,32], index: 4, kind: input, shape index: {}]   ;;  %s4991_s5 = inlined_call_operand.vmem [shape: f32[2,12,1,32], index: 5, kind: input, shape index: {}]   ;;  %s4992_s6 = inlined_call_operand.vmem [shape: bf16[2,4,32,128], index: 6, kind: input, shape index: {}]   ;;  %s4993_s7 = inlined_call_operand.vmem [shape: f32[2,1,128], index: 7, kind: input, shape index: {}]   ;;  %s4994_s8 = inlined_call_operand.vmem [shape: f32[2,1,128], index: 8, kind: input, shape index: {}]   ;;  %s4995_s9 = inlined_call_operand.vmem [shape: f32[2,1,128], index: 9, kind: input, shape index: {}]   ;;  %s4996_s10 = inlined_call_operand.vmem [shape: bf16[2,128,256], index: 10, kind: input, shape index: {}]   ;;  %s4997_s11 = inlined_call_operand.vmem [shape: f32[2,1,256], index: 11, kind: input, shape index: {}]   ;;  %s4998_s12 = inlined_call_operand.vmem [shape: bf16[2,256,128], index: 12, kind: input, shape index: {}]   ;;  %s4999_s13 = inlined_call_operand.vmem [shape: f32[2,1,128], index: 13, kind: input, shape index: {}]   ;;  %s5000_s14 = inlined_call_operand.vmem [shape: f32[1,128], index: 14, kind: input, shape index: {}]   ;;  %s5001_s15 = inlined_call_operand.vmem [shape: f32[1,128], index: 15, kind: input, shape index: {}]   ;;  %s5002_s16 = inlined_call_operand.vmem [shape: bf16[2,8,128], index: 16, kind: output, shape index: {}]  }
   0x1   :  { %5007 = sst [smem:[#allocation9_spill]] %s4986_s0  ;;  %s4434_s23 = smov 0  }
   0x2   :  { %5008 = sst [smem:[#allocation10_spill]] %s4990_s4  ;;  %s4436_s24 = smov 0  }
   0x3   :  { %5009 = sst [smem:[#allocation11_spill]] %s4991_s5  ;;  %s4438_s25 = smov 0  }
   0x4   :  { %5010 = sst [smem:[#allocation12_spill]] %s4992_s6 }
   0x5   :  { %5011 = sst [smem:[#allocation13_spill]] %s4994_s8 }
   0x6   :  { %5012 = sst [smem:[#allocation14_spill]] %s4995_s9 }
   0x7   :  { %5013 = sst [smem:[#allocation15_spill]] %s4996_s10 }
   0x8   :  { %5014 = sst [smem:[#allocation16_spill]] %s4998_s12 }
   0x9   :  { %5015 = sst [smem:[#allocation17_spill]] %s4999_s13 }
   0xa   :  { %5016 = sst [smem:[#allocation18_spill]] %s5000_s14 }
   0xb   :  { %5017 = sst [smem:[#allocation19_spill]] %s5001_s15 }
   0xc   :  { %5018 = sst [smem:[#allocation20_spill]] %s5002_s16 }
   0xd LB: > { %5019 = sst [smem:[#allocation3_spill]] %s4324_s21  ;;  %s35_s26 = sadd.s32 1, %s4332_s23  ;;  %s4340_s25 = sphi %s4438_s25, %s26_s25   ;;  %s4336_s24 = sphi %s4436_s24, %s5052_s24   ;;  %s4332_s23 = sphi %s4434_s23, %s5051_s23   ;;  %s4328_s22 = sphi %s4432_s22, %s5050_s22   ;;  %s4324_s21 = sphi %s4430_s21, %s5049_s21  }
   0xe   : > { %5020 = sst [smem:[#allocation4_spill]] %s4332_s23  ;;  %s38_s27 = sadd.s32 1, %s4336_s24 }
   0xf   : > { %5021 = sst [smem:[#allocation5_spill]] %s4336_s24  ;;  %p36_p0 = scmp.ge.s32.totalorder %s35_s26, 2 }
  0x10   : > { %5022 = sst [smem:[#allocation6_spill]] %s4340_s25  ;;  %p3420_p1 = scmp.ge.s32.totalorder %s4340_s25, 1 }
  0x11   : > { %p587_p2 = scmp.lt.s32.totalorder %s4340_s25, 5  ;;  %s5054_s26 = smov (%p36_p0, %s35_s26), 0 }
  0x12   : > { %5023 = sst [smem:[#allocation7_spill]] %s5054_s26  ;;  %s5056_s27 = smov (!%p36_p0, %s38_s27), %s4336_s24 }
  0x13   : > { %p588_p3 = pnand %p3420_p1, %p587_p2  ;;  %p40_p4 = scmp.ge.s32.totalorder %s5056_s27, 2 }
  0x14   : > { %p684_p5 = scmp.lt.s32.totalorder (!%p588_p3), %s4328_s22, 1  ;;  %p691_p6 = scmp.lt.s32.totalorder (!%p588_p3), %s4324_s21, 1 }
  0x15   : > { %s5058_s27 = smov (%p40_p4, %s5056_s27), 0  ;;  %591 = sbr.rel (%p588_p3) target bundleno = 2648 (0xa58), region = 84 }
  0x16   : > { %5024 = sst [smem:[#allocation8_spill]] %s5058_s27 }
  0x17   : > { %s5025_s20 = sld [smem:[#allocation9_spill]] (!%p588_p3) }
  0x18   : > { %s5026_s4 = sld [smem:[#allocation10_spill]] (!%p588_p3) }
  0x19   : > { %s5027_s6 = sld [smem:[#allocation12_spill]] (!%p588_p3) }
  0x1a   : > { %s5060_s22 = smov (!%p684_p5, %s4328_s22), 1  ;;  %s5028_s5 = sld [smem:[#allocation11_spill]] }
  0x1b   : > { %s4466_s28 = scalar_select %p691_p6, %s4324_s21, 1 }
  0x1c   : > { %s3421_s29 = sshll.u32 %s5060_s22, 3  ;;  %s5031_s10 = sld [smem:[#allocation15_spill]] }
  0x1d   : > { %s687_s27 = scalar_lea.vmem %s5025_s20, %s3421_s29  ;;  %s4084_s21 = smul.u32 768, %s4466_s28 }
  0x1e   : > { %s4085_s16 = smul.u32 12, %s4466_s28  ;;  %s3603_s13 = sshll.u32 %s4466_s28, 6 }
  0x1f   : > { %s4490_s0 = scalar_lea.vmem %s5026_s4, %s4084_s21  ;;  %s4495_s19 = scalar_lea.vmem %s5027_s6, %s3603_s13 }
  0x20   : > { %s4500_s15 = scalar_lea.vmem %s5028_s5, %s4085_s16  ;;  %s3604_s18 = sshll.u32 %s4466_s28, 7 }
  0x21   : > { %s3427_s13 = sshll.u32 %s4466_s28, 1  ;;  %s5032_s14 = sld [smem:[#allocation16_spill]] }
  0x22   : > { %s4519_s24 = scalar_lea.vmem %s5031_s10, %s3604_s18  ;;  %s4524_s25 = scalar_lea.vmem %s4997_s11, %s3427_s13 }
  0x23   : > { %s5033_s30 = sld [smem:[#allocation17_spill]]  ;;  %s3430_s5 = sshll.u32 %s5060_s22, 2 }
  0x24   : > { %s5034_s6 = sld [smem:[#allocation20_spill]] }
  0x25   : > { %s5035_s10 = sld [smem:[#allocation3_spill]] }
  0x27   : > { %s4529_s23 = scalar_lea.vmem %s5032_s14, %s3604_s18 }
  0x29   : > { %s736_s4 = scalar_lea.vmem %s5033_s30, %s4466_s28 }
  0x2a   : > { %s4539_s29 = scalar_lea.vmem %s5034_s6, %s3430_s5 }
  0x2b   : > { %p3431_p7 = scmp.ne.s32.totalorder %s5035_s10, 0 }
  0x2d   : > { %745 = sbr.rel (%p3431_p7) target bundleno = 52 (0x34), region = 88 }
  0x32   : > { %v746_v0 = vld [vmem:[%s687_s27] sm:$0xff] }
  0x33   : > { %747 = vst [vmem:[#allocation2] sm:$0xff] %v746_v0 }
  0x34 PF: > { %v4129_v6 = vld [vmem:[%s4490_s0 + $0x38] sm:$0xff]   ;;  %v4342_v8 = vmov 0.0   ;;  %v4131_v9 = vld [vmem:[%s4490_s0 + $0x30] sm:$0xff]   ;;  %v4133_v11 = vld [vmem:[%s4490_s0 + $0x28] sm:$0xff]   ;;  %vm4343_vm0 = vmmov 0   ;;  %s5036_s9 = scalar_lea.vmem %s4988_s2, %s4466_s28  ;;  %s5037_s17 = scalar_lea.vmem %s4989_s3, %s4466_s28  ;;  %vm2144_vm3 = vcmask 261120  }
  0x35   : > { %v4130_v7 = vld [vmem:[%s4490_s0 + $0x78] sm:$0xff]   ;;  %3764 = vmatprep.subr.bf16.mxu0 %v4342_v8  ;;  %3784 = vmatprep.subr.bf16.mxu1 %v4342_v8  ;;  %v4132_v10 = vld [vmem:[%s4490_s0 + $0x70] sm:$0xff]   ;;  %v4134_v12 = vld [vmem:[%s4490_s0 + $0x68] sm:$0xff]   ;;  %vm2395_vm4 = vcmask 1043456   ;;  %s5038_s12 = scalar_lea.vmem %s4987_s1, %s5060_s22  ;;  %vm2339_vm7 = vcmask 64512   ;;  %s5039_s18 = scalar_lea.vmem %s4993_s7, %s4466_s28 }
  0x36   : > { %3765 = vmatpush3.bf16.msra.mxu0 %v4129_v6  ;;  %3785 = vmatpush3.bf16.msra.mxu1 %v4130_v7  ;;  %v4135_v13 = vld [vmem:[%s4490_s0 + $0x20] sm:$0xff]   ;;  %v4137_v15 = vld [vmem:[%s4490_s0 + $0x18] sm:$0xff]   ;;  %v4139_v17 = vld [vmem:[%s4490_s0 + $0x10] sm:$0xff]   ;;  %s5040_s16 = sld [smem:[#allocation13_spill]] }
  0x37   : > { %3766 = vmatprep.subr.bf16.mxu0 %v4342_v8  ;;  %3786 = vmatprep.subr.bf16.mxu1 %v4342_v8  ;;  %v4136_v14 = vld [vmem:[%s4490_s0 + $0x60] sm:$0xff]   ;;  %v4138_v16 = vld [vmem:[%s4490_s0 + $0x58] sm:$0xff]   ;;  %v4140_v18 = vld [vmem:[%s4490_s0 + $0x50] sm:$0xff]   ;;  %s5042_s21 = sld [smem:[#allocation14_spill]] }
  0x38   : > { %v4141_v19 = vld [vmem:[%s4490_s0 + $0x8] sm:$0xff]   ;;  %v4143_v21 = vld [vmem:[%s4490_s0] sm:$0xff]   ;;  %3780 = vmatprep.mubr.msk.bf16.mxu0 %vm4343_vm0, %v4342_v8  ;;  %3800 = vmatprep.mubr.msk.bf16.mxu1 %vm4343_vm0, %v4342_v8  ;;  %v4145_v37 = vld [vmem:[%s4490_s0 + $0xb8] sm:$0xff]   ;;  %s5045_s5 = sld [smem:[#allocation3_spill]] }
  0x39   : > { %v4142_v20 = vld [vmem:[%s4490_s0 + $0x48] sm:$0xff]   ;;  %v4144_v22 = vld [vmem:[%s4490_s0 + $0x40] sm:$0xff]   ;;  %v4146_v38 = vld [vmem:[%s4490_s0 + $0xf8] sm:$0xff]  }
  0x3a   : > { %v748_v1 = vld [vmem:[#allocation2] sm:$0xff]  ;;  %3767 = vmatpush3.bf16.msra.mxu0 %v4131_v9  ;;  %3787 = vmatpush3.bf16.msra.mxu1 %v4132_v10  ;;  %v4147_v40 = vld [vmem:[%s4490_s0 + $0xb0] sm:$0xff]   ;;  %v4149_v42 = vld [vmem:[%s4490_s0 + $0xa8] sm:$0xff]  }
  0x3b   : > { %974 = vadd.xlane.f32.xlu0 %v748_v1  ;;  %3768 = vmatprep.subr.bf16.mxu0 %v4342_v8  ;;  %v3432_v32 = vld [vmem:[%s5036_s9] ss:$0 sm:$0xff]  ;;  %v4148_v41 = vld [vmem:[%s4490_s0 + $0xf0] sm:$0xff]   ;;  %v4150_v43 = vld [vmem:[%s4490_s0 + $0xe8] sm:$0xff]  }
  0x3c   : > { %3788 = vmatprep.subr.bf16.mxu1 %v4342_v8  ;;  %v3433_v34 = vld [vmem:[%s5037_s17] ss:$0 sm:$0xff]  ;;  %v4153_v46 = vld [vmem:[%s4490_s0 + $0x98] sm:$0xff]   ;;  %v4155_v48 = vld [vmem:[%s4490_s0 + $0x90] sm:$0xff]   ;;  %s5041_s26 = scalar_lea.vmem %s5040_s16, %s4466_s28 }
  0x3d   : > { %v4151_v44 = vld [vmem:[%s4490_s0 + $0xa0] sm:$0xff]   ;;  %v4154_v47 = vld [vmem:[%s4490_s0 + $0xd8] sm:$0xff]   ;;  %v4156_v49 = vld [vmem:[%s4490_s0 + $0xd0] sm:$0xff]   ;;  %s5043_s30 = scalar_lea.vmem %s5042_s21, %s4466_s28 }
  0x3e   : > { %3769 = vmatpush3.bf16.msra.mxu0 %v4133_v11  ;;  %3789 = vmatpush3.bf16.msra.mxu1 %v4134_v12  ;;  %v4152_v45 = vld [vmem:[%s4490_s0 + $0xe0] sm:$0xff]   ;;  %v4157_v50 = vld [vmem:[%s4490_s0 + $0x88] sm:$0xff]   ;;  %v4161_v54 = vld [vmem:[%s4490_s0 + $0x138] sm:$0xff]   ;;  %p3598_p8 = scmp.ne.s32.totalorder %s5045_s5, 1 }
  0x3f   : > { %3770 = vmatprep.subr.bf16.mxu0 %v4342_v8  ;;  %3790 = vmatprep.subr.bf16.mxu1 %v4342_v8  ;;  %v4158_v51 = vld [vmem:[%s4490_s0 + $0xc8] sm:$0xff]   ;;  %v4159_v52 = vld [vmem:[%s4490_s0 + $0x80] sm:$0xff]   ;;  %v4162_v55 = vld [vmem:[%s4490_s0 + $0x178] sm:$0xff]   ;;  %s5046_s8 = sld [smem:[#allocation18_spill]] (!%p3598_p8) }
  0x40   : > { %v4160_v53 = vld [vmem:[%s4490_s0 + $0xc0] sm:$0xff]   ;;  %v4163_v56 = vld [vmem:[%s4490_s0 + $0x130] sm:$0xff]   ;;  %v4165_v58 = vld [vmem:[%s4490_s0 + $0x128] sm:$0xff]   ;;  %s5047_s27 = sld [smem:[#allocation19_spill]] (!%p3598_p8) }
  0x41   : > { %v4164_v57 = vld [vmem:[%s4490_s0 + $0x170] sm:$0xff]   ;;  %v4166_v59 = vld [vmem:[%s4490_s0 + $0x168] sm:$0xff]   ;;  %v4167_v60 = vld [vmem:[%s4490_s0 + $0x120] sm:$0xff]  }
  0x42   : > { %3771 = vmatpush3.bf16.msra.mxu0 %v4135_v13  ;;  %3791 = vmatpush3.bf16.msra.mxu1 %v4136_v14  ;;  %v4168_v61 = vld [vmem:[%s4490_s0 + $0x160] sm:$0xff]   ;;  %v4169_v62 = vld [vmem:[%s4490_s0 + $0x118] sm:$0xff]   ;;  %v4171_v0 = vld [vmem:[%s4490_s0 + $0x110] sm:$0xff]  }
  0x43   : > { %3772 = vmatprep.subr.bf16.mxu0 %v4342_v8  ;;  %3792 = vmatprep.subr.bf16.mxu1 %v4342_v8  ;;  %v4170_v63 = vld [vmem:[%s4490_s0 + $0x158] sm:$0xff]   ;;  %v4179_v9 = vld [vmem:[%s4490_s0 + $0x1b0] sm:$0xff]   ;;  %v4181_v11 = vld [vmem:[%s4490_s0 + $0x1a8] sm:$0xff]  }
  0x44   : > { %v4177_v6 = vld [vmem:[%s4490_s0 + $0x1b8] sm:$0xff]   ;;  %v4180_v10 = vld [vmem:[%s4490_s0 + $0x1f0] sm:$0xff]   ;;  %v4182_v12 = vld [vmem:[%s4490_s0 + $0x1e8] sm:$0xff]  }
  0x45   : > { %v4178_v7 = vld [vmem:[%s4490_s0 + $0x1f8] sm:$0xff]   ;;  %v4183_v13 = vld [vmem:[%s4490_s0 + $0x1a0] sm:$0xff]  }
  0x46   : > { %3773 = vmatpush3.bf16.msra.mxu0 %v4137_v15  ;;  %3793 = vmatpush3.bf16.msra.mxu1 %v4138_v16  ;;  %v4184_v14 = vld [vmem:[%s4490_s0 + $0x1e0] sm:$0xff]   ;;  %v4185_v15 = vld [vmem:[%s4490_s0 + $0x198] sm:$0xff]  }
  0x47   : > { %3774 = vmatprep.subr.bf16.mxu0 %v4342_v8  ;;  %3794 = vmatprep.subr.bf16.mxu1 %v4342_v8  ;;  %v4186_v16 = vld [vmem:[%s4490_s0 + $0x1d8] sm:$0xff]  }
  0x4a   : > { %3775 = vmatpush3.bf16.msra.mxu0 %v4139_v17  ;;  %3795 = vmatpush3.bf16.msra.mxu1 %v4140_v18  ;;  %v4187_v17 = vld [vmem:[%s4490_s0 + $0x190] sm:$0xff]  }
  0x4b   : > { %3776 = vmatprep.subr.bf16.mxu0 %v4342_v8  ;;  %3796 = vmatprep.subr.bf16.mxu1 %v4342_v8  ;;  %v4188_v18 = vld [vmem:[%s4490_s0 + $0x1d0] sm:$0xff]  }
  0x4e   : > { %3777 = vmatpush3.bf16.msra.mxu0 %v4141_v19  ;;  %3797 = vmatpush3.bf16.msra.mxu1 %v4142_v20  ;;  %v4189_v19 = vld [vmem:[%s4490_s0 + $0x188] sm:$0xff]  }
  0x4f   : > { %3778 = vmatprep.subr.bf16.mxu0 %v4342_v8  ;;  %3798 = vmatprep.subr.bf16.mxu1 %v4342_v8  ;;  %v4190_v20 = vld [vmem:[%s4490_s0 + $0x1c8] sm:$0xff]  }
  0x52   : > { %3779 = vmatpush3.bf16.msra.mxu0 %v4143_v21  ;;  %3799 = vmatpush3.bf16.msra.mxu1 %v4144_v22  ;;  %v4191_v21 = vld [vmem:[%s4490_s0 + $0x180] sm:$0xff]  }
  0x53   : > { %3804 = vmatprep.subr.bf16.mxu0 %v4342_v8  ;;  %3824 = vmatprep.subr.bf16.mxu1 %v4342_v8  ;;  %v4192_v22 = vld [vmem:[%s4490_s0 + $0x1c0] sm:$0xff]  }
  0xc4   : > { %v975_v2 = vpop.xlane.xlu0 %974 }
  0xc5   : > { %v977_v3 = vmul.f32 0.0078125, %v975_v2  ;;  %v4173_v2 = vld [vmem:[%s4490_s0 + $0x108] sm:$0xff]  }
  0xc7   : > { %v4542_v4 = vsub.f32 %v748_v1, %v977_v3  ;;  %v4172_v1 = vld [vmem:[%s4490_s0 + $0x150] sm:$0xff]   ;;  %v4174_v3 = vld [vmem:[%s4490_s0 + $0x148] sm:$0xff]  }
  0xc9   : > { %v979_v5 = vmul.f32 %v4542_v4, %v4542_v4 }
  0xcb   : > { %980 = vadd.xlane.f32.xlu0 %v979_v5  ;;  %v4176_v5 = vld [vmem:[%s4490_s0 + $0x140] sm:$0xff]  }
 0x154   : > { %v981_v23 = vpop.xlane.xlu0 %980 }
 0x155   : > { %v982_v24 = vmul.f32 0.007874016, %v981_v23  ;;  %v4193_v23 = vld [vmem:[%s4490_s0 + $0x238] sm:$0xff]  }
 0x157   : > { %4273 = vrsqrt.f32 %v982_v24  ;;  %vm985_vm1 = vcmp.eq.f32.partialorder %v982_v24, inf  ;;  %v988_v27 = vand.u32 2147483648, %v982_v24  ;;  %vm987_vm2 = vcmp.eq.f32.partialorder %v982_v24, 0.0 }
 0x164   : > { %v4274_v25 = vpop.eup %4273 }
 0x165   : > { %v984_v26 = vmul.f32 %v4274_v25, %v982_v24  ;;  %v4195_v25 = vld [vmem:[%s4490_s0 + $0x230] sm:$0xff]  }
 0x167   : > { %v986_v28 = vsel %vm985_vm1, %v982_v24, %v984_v26  ;;  %v4194_v24 = vld [vmem:[%s4490_s0 + $0x278] sm:$0xff]   ;;  %v4196_v26 = vld [vmem:[%s4490_s0 + $0x270] sm:$0xff]  }
 0x168   : > { %v989_v29 = vsel %vm987_vm2, %v988_v27, %v986_v28  ;;  %v4197_v27 = vld [vmem:[%s4490_s0 + $0x228] sm:$0xff]  }
 0x169   : > { %v990_v30 = vadd.f32 1e-06, %v989_v29  ;;  %v4198_v28 = vld [vmem:[%s4490_s0 + $0x268] sm:$0xff]   ;;  %v4199_v29 = vld [vmem:[%s4490_s0 + $0x220] sm:$0xff]  }
 0x16b   : > { %4275 = vrcp.f32 %v990_v30  ;;  %v4200_v30 = vld [vmem:[%s4490_s0 + $0x260] sm:$0xff]  }
 0x178   : > { %v4276_v31 = vpop.eup %4275 }
 0x179   : > { %v992_v33 = vmul.f32 %v4276_v31, %v4542_v4  ;;  %v4175_v4 = vld [vmem:[%s4490_s0 + $0x100] sm:$0xff]   ;;  %v4201_v31 = vld [vmem:[%s4490_s0 + $0x218] sm:$0xff]  }
 0x17b   : > { %v999_v35 = vmul.f32 %v3432_v32, %v992_v33  ;;  %v4202_v32 = vld [vmem:[%s4490_s0 + $0x258] sm:$0xff]   ;;  %v4203_v33 = vld [vmem:[%s4490_s0 + $0x210] sm:$0xff]  }
 0x17d   : > { %v1006_v36 = vadd.f32 %v3433_v34, %v999_v35  ;;  %v4204_v34 = vld [vmem:[%s4490_s0 + $0x250] sm:$0xff]   ;;  %v4205_v35 = vld [vmem:[%s4490_s0 + $0x208] sm:$0xff]  }
 0x17f   : > { %v4597_v39 = vpack.c.bf16 %v1006_v36, %v1006_v36  ;;  %v4206_v36 = vld [vmem:[%s4490_s0 + $0x248] sm:$0xff]  }
 0x181   : > { %3781 = vmatmul.mubr.bf16.vlgmr.msra.gmra.mxu0 %v4597_v39  ;;  %3801 = vmatmul.mubr.bf16.vlgmr.msra.gmra.mxu1 %v4597_v39 }
 0x182   : > { %3805 = vmatpush3.bf16.msra.mxu0 %v4145_v37  ;;  %3825 = vmatpush3.bf16.msra.mxu1 %v4146_v38  ;;  %v4207_v37 = vld [vmem:[%s4490_s0 + $0x200] sm:$0xff]  }
 0x183   : > { %3806 = vmatprep.subr.bf16.mxu0 %v4342_v8  ;;  %3826 = vmatprep.subr.bf16.mxu1 %v4342_v8  ;;  %v4208_v38 = vld [vmem:[%s4490_s0 + $0x240] sm:$0xff]  }
 0x184   : > { %3820 = vmatprep.mubr.msk.bf16.mxu0 %vm4343_vm0, %v4342_v8  ;;  %3840 = vmatprep.mubr.msk.bf16.mxu1 %vm4343_vm0, %v4342_v8 }
 0x186   : > { %3807 = vmatpush3.bf16.msra.mxu0 %v4147_v40  ;;  %3827 = vmatpush3.bf16.msra.mxu1 %v4148_v41  ;;  %v4209_v40 = vld [vmem:[%s4490_s0 + $0x2b8] sm:$0xff]  }
 0x187   : > { %3808 = vmatprep.subr.bf16.mxu0 %v4342_v8  ;;  %3828 = vmatprep.subr.bf16.mxu1 %v4342_v8  ;;  %v4210_v41 = vld [vmem:[%s4490_s0 + $0x2f8] sm:$0xff]  }
 0x18a   : > { %3809 = vmatpush3.bf16.msra.mxu0 %v4149_v42  ;;  %3829 = vmatpush3.bf16.msra.mxu1 %v4150_v43  ;;  %v4211_v42 = vld [vmem:[%s4490_s0 + $0x2b0] sm:$0xff]  }
 0x18b   : > { %3810 = vmatprep.subr.bf16.mxu0 %v4342_v8  ;;  %3830 = vmatprep.subr.bf16.mxu1 %v4342_v8  ;;  %v4212_v43 = vld [vmem:[%s4490_s0 + $0x2f0] sm:$0xff]  }
 0x18e   : > { %3811 = vmatpush3.bf16.msra.mxu0 %v4151_v44  ;;  %3831 = vmatpush3.bf16.msra.mxu1 %v4152_v45  ;;  %v4213_v44 = vld [vmem:[%s4490_s0 + $0x2a8] sm:$0xff]  }
 0x18f   : > { %3812 = vmatprep.subr.bf16.mxu0 %v4342_v8  ;;  %3832 = vmatprep.subr.bf16.mxu1 %v4342_v8  ;;  %v4214_v45 = vld [vmem:[%s4490_s0 + $0x2e8] sm:$0xff]  }
 0x192   : > { %3813 = vmatpush3.bf16.msra.mxu0 %v4153_v46  ;;  %3833 = vmatpush3.bf16.msra.mxu1 %v4154_v47  ;;  %v4215_v46 = vld [vmem:[%s4490_s0 + $0x2a0] sm:$0xff]  }
 0x193   : > { %3814 = vmatprep.subr.bf16.mxu0 %v4342_v8  ;;  %3834 = vmatprep.subr.bf16.mxu1 %v4342_v8  ;;  %v4216_v47 = vld [vmem:[%s4490_s0 + $0x2e0] sm:$0xff]  }
 0x196   : > { %3815 = vmatpush3.bf16.msra.mxu0 %v4155_v48  ;;  %3835 = vmatpush3.bf16.msra.mxu1 %v4156_v49  ;;  %v4217_v48 = vld [vmem:[%s4490_s0 + $0x298] sm:$0xff]  }
 0x197   : > { %3816 = vmatprep.subr.bf16.mxu0 %v4342_v8  ;;  %3836 = vmatprep.subr.bf16.mxu1 %v4342_v8  ;;  %v4218_v49 = vld [vmem:[%s4490_s0 + $0x2d8] sm:$0xff]  }
 0x19a   : > { %3817 = vmatpush3.bf16.msra.mxu0 %v4157_v50  ;;  %3837 = vmatpush3.bf16.msra.mxu1 %v4158_v51  ;;  %v4219_v50 = vld [vmem:[%s4490_s0 + $0x290] sm:$0xff]  }
 0x19b   : > { %3818 = vmatprep.subr.bf16.mxu0 %v4342_v8  ;;  %3838 = vmatprep.subr.bf16.mxu1 %v4342_v8  ;;  %v4220_v51 = vld [vmem:[%s4490_s0 + $0x2d0] sm:$0xff]  }
 0x19e   : > { %3819 = vmatpush3.bf16.msra.mxu0 %v4159_v52  ;;  %3839 = vmatpush3.bf16.msra.mxu1 %v4160_v53  ;;  %v4221_v52 = vld [vmem:[%s4490_s0 + $0x288] sm:$0xff]  }
 0x19f   : > { %3844 = vmatprep.subr.bf16.mxu0 %v4342_v8  ;;  %3864 = vmatprep.subr.bf16.mxu1 %v4342_v8  ;;  %v4222_v53 = vld [vmem:[%s4490_s0 + $0x2c8] sm:$0xff]  }
 0x1a1   : > { %3821 = vmatmul.mubr.bf16.vlgmr.msra.gmra.mxu0 %v4597_v39  ;;  %3841 = vmatmul.mubr.bf16.vlgmr.msra.gmra.mxu1 %v4597_v39 }
 0x1a2   : > { %3845 = vmatpush3.bf16.msra.mxu0 %v4161_v54  ;;  %3865 = vmatpush3.bf16.msra.mxu1 %v4162_v55  ;;  %v4223_v54 = vld [vmem:[%s4490_s0 + $0x280] sm:$0xff]  }
 0x1a3   : > { %3846 = vmatprep.subr.bf16.mxu0 %v4342_v8  ;;  %3866 = vmatprep.subr.bf16.mxu1 %v4342_v8  ;;  %v4224_v55 = vld [vmem:[%s4490_s0 + $0x2c0] sm:$0xff]  }
 0x1a4   : > { %3860 = vmatprep.mubr.msk.bf16.mxu0 %vm4343_vm0, %v4342_v8  ;;  %3880 = vmatprep.mubr.msk.bf16.mxu1 %vm4343_vm0, %v4342_v8 }
 0x1a6   : > { %3847 = vmatpush3.bf16.msra.mxu0 %v4163_v56  ;;  %3867 = vmatpush3.bf16.msra.mxu1 %v4164_v57 }
 0x1a7   : > { %3848 = vmatprep.subr.bf16.mxu0 %v4342_v8  ;;  %3868 = vmatprep.subr.bf16.mxu1 %v4342_v8 }
 0x1aa   : > { %3849 = vmatpush3.bf16.msra.mxu0 %v4165_v58  ;;  %3869 = vmatpush3.bf16.msra.mxu1 %v4166_v59 }
 0x1ab   : > { %3850 = vmatprep.subr.bf16.mxu0 %v4342_v8  ;;  %3870 = vmatprep.subr.bf16.mxu1 %v4342_v8 }
 0x1ae   : > { %3851 = vmatpush3.bf16.msra.mxu0 %v4167_v60  ;;  %3871 = vmatpush3.bf16.msra.mxu1 %v4168_v61 }
 0x1af   : > { %3852 = vmatprep.subr.bf16.mxu0 %v4342_v8  ;;  %3872 = vmatprep.subr.bf16.mxu1 %v4342_v8 }
 0x1b2   : > { %3853 = vmatpush3.bf16.msra.mxu0 %v4169_v62  ;;  %3873 = vmatpush3.bf16.msra.mxu1 %v4170_v63 }
 0x1b3   : > { %3854 = vmatprep.subr.bf16.mxu0 %v4342_v8  ;;  %3874 = vmatprep.subr.bf16.mxu1 %v4342_v8 }
 0x1b6   : > { %3855 = vmatpush3.bf16.msra.mxu0 %v4171_v0  ;;  %3875 = vmatpush3.bf16.msra.mxu1 %v4172_v1 }
 0x1b7   : > { %3856 = vmatprep.subr.bf16.mxu0 %v4342_v8  ;;  %3876 = vmatprep.subr.bf16.mxu1 %v4342_v8 }
 0x1ba   : > { %3857 = vmatpush3.bf16.msra.mxu0 %v4173_v2  ;;  %3877 = vmatpush3.bf16.msra.mxu1 %v4174_v3 }
 0x1bb   : > { %3858 = vmatprep.subr.bf16.mxu0 %v4342_v8  ;;  %3878 = vmatprep.subr.bf16.mxu1 %v4342_v8 }
 0x1be   : > { %3859 = vmatpush3.bf16.msra.mxu0 %v4175_v4  ;;  %3879 = vmatpush3.bf16.msra.mxu1 %v4176_v5 }
 0x1bf   : > { %3884 = vmatprep.subr.bf16.mxu0 %v4342_v8  ;;  %3904 = vmatprep.subr.bf16.mxu1 %v4342_v8 }
 0x1c1   : > { %3861 = vmatmul.mubr.bf16.vlgmr.msra.gmra.mxu0 %v4597_v39  ;;  %3881 = vmatmul.mubr.bf16.vlgmr.msra.gmra.mxu1 %v4597_v39 }
 0x1c2   : > { %3885 = vmatpush3.bf16.msra.mxu0 %v4177_v6  ;;  %3905 = vmatpush3.bf16.msra.mxu1 %v4178_v7  ;;  %v3438_v7 = vld [vmem:[%s4500_s15 + $0x4] ss:$0 sm:$0xff] }
 0x1c3   : > { %3886 = vmatprep.subr.bf16.mxu0 %v4342_v8  ;;  %3906 = vmatprep.subr.bf16.mxu1 %v4342_v8 }
 0x1c4   : > { %3900 = vmatprep.mubr.msk.bf16.mxu0 %vm4343_vm0, %v4342_v8  ;;  %3920 = vmatprep.mubr.msk.bf16.mxu1 %vm4343_vm0, %v4342_v8 }
 0x1c6   : > { %3887 = vmatpush3.bf16.msra.mxu0 %v4179_v9  ;;  %3907 = vmatpush3.bf16.msra.mxu1 %v4180_v10  ;;  %v3439_v9 = vld [vmem:[%s4500_s15 + $0x5] ss:$0 sm:$0xff] }
 0x1c7   : > { %3888 = vmatprep.subr.bf16.mxu0 %v4342_v8  ;;  %3908 = vmatprep.subr.bf16.mxu1 %v4342_v8 }
 0x1ca   : > { %3889 = vmatpush3.bf16.msra.mxu0 %v4181_v11  ;;  %3909 = vmatpush3.bf16.msra.mxu1 %v4182_v12 }
 0x1cb   : > { %3890 = vmatprep.subr.bf16.mxu0 %v4342_v8  ;;  %3910 = vmatprep.subr.bf16.mxu1 %v4342_v8 }
 0x1ce   : > { %3891 = vmatpush3.bf16.msra.mxu0 %v4183_v13  ;;  %3911 = vmatpush3.bf16.msra.mxu1 %v4184_v14 }
 0x1cf   : > { %3892 = vmatprep.subr.bf16.mxu0 %v4342_v8  ;;  %3912 = vmatprep.subr.bf16.mxu1 %v4342_v8 }
 0x1d2   : > { %3893 = vmatpush3.bf16.msra.mxu0 %v4185_v15  ;;  %3913 = vmatpush3.bf16.msra.mxu1 %v4186_v16 }
 0x1d3   : > { %3894 = vmatprep.subr.bf16.mxu0 %v4342_v8  ;;  %3914 = vmatprep.subr.bf16.mxu1 %v4342_v8 }
 0x1d6   : > { %3895 = vmatpush3.bf16.msra.mxu0 %v4187_v17  ;;  %3915 = vmatpush3.bf16.msra.mxu1 %v4188_v18  ;;  %v3434_v18 = vld [vmem:[%s4500_s15] ss:$0 sm:$0xff] }
 0x1d7   : > { %3896 = vmatprep.subr.bf16.mxu0 %v4342_v8  ;;  %3916 = vmatprep.subr.bf16.mxu1 %v4342_v8 }
 0x1da   : > { %3897 = vmatpush3.bf16.msra.mxu0 %v4189_v19  ;;  %3917 = vmatpush3.bf16.msra.mxu1 %v4190_v20  ;;  %v3435_v19 = vld [vmem:[%s4500_s15 + $0x1] ss:$0 sm:$0xff] }
 0x1db   : > { %3898 = vmatprep.subr.bf16.mxu0 %v4342_v8  ;;  %3918 = vmatprep.subr.bf16.mxu1 %v4342_v8 }
 0x1de   : > { %3899 = vmatpush3.bf16.msra.mxu0 %v4191_v21  ;;  %3919 = vmatpush3.bf16.msra.mxu1 %v4192_v22 }
 0x1df   : > { %3924 = vmatprep.subr.bf16.mxu0 %v4342_v8  ;;  %3944 = vmatprep.subr.bf16.mxu1 %v4342_v8 }
 0x1e1   : > { %3901 = vmatmul.mubr.bf16.vlgmr.msra.gmra.mxu0 %v4597_v39  ;;  %3921 = vmatmul.mubr.bf16.vlgmr.msra.gmra.mxu1 %v4597_v39 }
 0x1e2   : > { %3925 = vmatpush3.bf16.msra.mxu0 %v4193_v23  ;;  %3945 = vmatpush3.bf16.msra.mxu1 %v4194_v24 }
 0x1e3   : > { %3926 = vmatprep.subr.bf16.mxu0 %v4342_v8  ;;  %3946 = vmatprep.subr.bf16.mxu1 %v4342_v8 }
 0x1e4   : > { %3940 = vmatprep.mubr.msk.bf16.mxu0 %vm4343_vm0, %v4342_v8  ;;  %3960 = vmatprep.mubr.msk.bf16.mxu1 %vm4343_vm0, %v4342_v8 }
 0x1e6   : > { %3927 = vmatpush3.bf16.msra.mxu0 %v4195_v25  ;;  %3947 = vmatpush3.bf16.msra.mxu1 %v4196_v26 }
 0x1e7   : > { %3928 = vmatprep.subr.bf16.mxu0 %v4342_v8  ;;  %3948 = vmatprep.subr.bf16.mxu1 %v4342_v8 }
 0x1ea   : > { %3929 = vmatpush3.bf16.msra.mxu0 %v4197_v27  ;;  %3949 = vmatpush3.bf16.msra.mxu1 %v4198_v28 }
 0x1eb   : > { %3930 = vmatprep.subr.bf16.mxu0 %v4342_v8  ;;  %3950 = vmatprep.subr.bf16.mxu1 %v4342_v8 }
 0x1ee   : > { %3931 = vmatpush3.bf16.msra.mxu0 %v4199_v29  ;;  %3951 = vmatpush3.bf16.msra.mxu1 %v4200_v30  ;;  %v3440_v30 = vld [vmem:[%s4500_s15 + $0x6] ss:$0 sm:$0xff] }
 0x1ef   : > { %3932 = vmatprep.subr.bf16.mxu0 %v4342_v8  ;;  %3952 = vmatprep.subr.bf16.mxu1 %v4342_v8 }
 0x1f2   : > { %3933 = vmatpush3.bf16.msra.mxu0 %v4201_v31  ;;  %3953 = vmatpush3.bf16.msra.mxu1 %v4202_v32  ;;  %v3441_v31 = vld [vmem:[%s4500_s15 + $0x7] ss:$0 sm:$0xff] }
 0x1f3   : > { %3934 = vmatprep.subr.bf16.mxu0 %v4342_v8  ;;  %3954 = vmatprep.subr.bf16.mxu1 %v4342_v8 }
 0x1f6   : > { %3935 = vmatpush3.bf16.msra.mxu0 %v4203_v33  ;;  %3955 = vmatpush3.bf16.msra.mxu1 %v4204_v34 }
 0x1f7   : > { %3936 = vmatprep.subr.bf16.mxu0 %v4342_v8  ;;  %3956 = vmatprep.subr.bf16.mxu1 %v4342_v8 }
 0x1fa   : > { %3937 = vmatpush3.bf16.msra.mxu0 %v4205_v35  ;;  %3957 = vmatpush3.bf16.msra.mxu1 %v4206_v36 }
 0x1fb   : > { %3938 = vmatprep.subr.bf16.mxu0 %v4342_v8  ;;  %3958 = vmatprep.subr.bf16.mxu1 %v4342_v8 }
 0x1fe   : > { %3939 = vmatpush3.bf16.msra.mxu0 %v4207_v37  ;;  %3959 = vmatpush3.bf16.msra.mxu1 %v4208_v38 }
 0x1ff   : > { %3964 = vmatprep.subr.bf16.mxu0 %v4342_v8  ;;  %3984 = vmatprep.subr.bf16.mxu1 %v4342_v8 }
 0x201   : > { %3941 = vmatmul.mubr.bf16.vlgmr.msra.gmra.mxu0 %v4597_v39  ;;  %3961 = vmatmul.mubr.bf16.vlgmr.msra.gmra.mxu1 %v4597_v39 }
 0x202   : > { %3965 = vmatpush3.bf16.msra.mxu0 %v4209_v40  ;;  %3985 = vmatpush3.bf16.msra.mxu1 %v4210_v41  ;;  %v3436_v41 = vld [vmem:[%s4500_s15 + $0x2] ss:$0 sm:$0xff] }
 0x203   : > { %3966 = vmatprep.subr.bf16.mxu0 %v4342_v8  ;;  %3986 = vmatprep.subr.bf16.mxu1 %v4342_v8 }
 0x204   : > { %3980 = vmatprep.mubr.msk.bf16.mxu0 %vm4343_vm0, %v4342_v8  ;;  %4000 = vmatprep.mubr.msk.bf16.mxu1 %vm4343_vm0, %v4342_v8 }
 0x206   : > { %3967 = vmatpush3.bf16.msra.mxu0 %v4211_v42  ;;  %3987 = vmatpush3.bf16.msra.mxu1 %v4212_v43  ;;  %v3437_v42 = vld [vmem:[%s4500_s15 + $0x3] ss:$0 sm:$0xff] }
 0x207   : > { %3968 = vmatprep.subr.bf16.mxu0 %v4342_v8  ;;  %3988 = vmatprep.subr.bf16.mxu1 %v4342_v8 }
 0x20a   : > { %3969 = vmatpush3.bf16.msra.mxu0 %v4213_v44  ;;  %3989 = vmatpush3.bf16.msra.mxu1 %v4214_v45 }
 0x20b   : > { %3970 = vmatprep.subr.bf16.mxu0 %v4342_v8  ;;  %3990 = vmatprep.subr.bf16.mxu1 %v4342_v8 }
 0x20e   : > { %3971 = vmatpush3.bf16.msra.mxu0 %v4215_v46  ;;  %3991 = vmatpush3.bf16.msra.mxu1 %v4216_v47 }
 0x20f   : > { %3972 = vmatprep.subr.bf16.mxu0 %v4342_v8  ;;  %3992 = vmatprep.subr.bf16.mxu1 %v4342_v8 }
 0x212   : > { %3973 = vmatpush3.bf16.msra.mxu0 %v4217_v48  ;;  %3993 = vmatpush3.bf16.msra.mxu1 %v4218_v49 }
 0x213   : > { %3974 = vmatprep.subr.bf16.mxu0 %v4342_v8  ;;  %3994 = vmatprep.subr.bf16.mxu1 %v4342_v8 }
 0x216   : > { %3975 = vmatpush3.bf16.msra.mxu0 %v4219_v50  ;;  %3995 = vmatpush3.bf16.msra.mxu1 %v4220_v51 }
 0x217   : > { %3976 = vmatprep.subr.bf16.mxu0 %v4342_v8  ;;  %3996 = vmatprep.subr.bf16.mxu1 %v4342_v8 }
 0x21a   : > { %3977 = vmatpush3.bf16.msra.mxu0 %v4221_v52  ;;  %3997 = vmatpush3.bf16.msra.mxu1 %v4222_v53  ;;  %v3442_v53 = vld [vmem:[%s4500_s15 + $0x8] ss:$0 sm:$0xff] }
 0x21b   : > { %3978 = vmatprep.subr.bf16.mxu0 %v4342_v8  ;;  %3998 = vmatprep.subr.bf16.mxu1 %v4342_v8 }
 0x21e   : > { %3979 = vmatpush3.bf16.msra.mxu0 %v4223_v54  ;;  %3999 = vmatpush3.bf16.msra.mxu1 %v4224_v55  ;;  %v3443_v54 = vld [vmem:[%s4500_s15 + $0x9] ss:$0 sm:$0xff] }
 0x21f   : > { %4004 = vmatprep.subr.bf16.mxu0 %v4342_v8  ;;  %4010 = vmatprep.subr.bf16.mxu1 %v4342_v8 }
 0x221   : > { %3981 = vmatmul.mubr.bf16.vlgmr.msra.gmra.mxu0 %v4597_v39  ;;  %4001 = vmatmul.mubr.bf16.vlgmr.msra.gmra.mxu1 %v4597_v39 }
 0x222   : > { %4006 = vmatprep.mubr.msk.bf16.mxu0 %vm4343_vm0, %v4342_v8  ;;  %4012 = vmatprep.mubr.msk.bf16.mxu1 %vm4343_vm0, %v4342_v8 }
 0x241   : > { %v1162_v56 = vpop.f32.mrf.mxu0  ;;  %v1250_v57 = vpop.f32.mrf.mxu1 }
 0x242   : > { %v1163_v26 = vadd.f32 %v3434_v18, %v1162_v56  ;;  %v1251_v27 = vadd.f32 %v3435_v19, %v1250_v57 }
 0x243   : > { %v3782_v58 = vpop.f32.mrf.mxu0  ;;  %v3802_v59 = vpop.f32.mrf.mxu1 }
 0x244   : > { %v2136_v28 = vpack.c.bf16 %v1163_v26, %v1163_v26  ;;  %v2137_v29 = vpack.c.bf16 %v1251_v27, %v1251_v27 }
 0x245   : > { %v1165_v60 = vpop.f32.mrf.mxu0  ;;  %v1253_v61 = vpop.f32.mrf.mxu1 }
 0x247   : > { %v3783_v62 = vpop.f32.mrf.mxu0  ;;  %v3803_v63 = vpop.f32.mrf.mxu1 }
 0x261   : > { %v1338_v0 = vpop.f32.mrf.mxu0  ;;  %v1426_v1 = vpop.f32.mrf.mxu1 }
 0x262   : > { %v1339_v49 = vadd.f32 %v3436_v41, %v1338_v0  ;;  %v1427_v50 = vadd.f32 %v3437_v42, %v1426_v1 }
 0x263   : > { %v3822_v2 = vpop.f32.mrf.mxu0  ;;  %v3842_v39 = vpop.f32.mrf.mxu1 }
 0x264   : > { %v2138_v51 = vpack.c.bf16 %v1339_v49, %v1339_v49  ;;  %v2139_v52 = vpack.c.bf16 %v1427_v50, %v1427_v50 }
 0x265   : > { %v1341_v3 = vpop.f32.mrf.mxu0  ;;  %v1429_v4 = vpop.f32.mrf.mxu1 }
 0x266   : > { %v3444_v4 = vld [vmem:[%s4500_s15 + $0xa] ss:$0 sm:$0xff] }
 0x267   : > { %v3823_v5 = vpop.f32.mrf.mxu0  ;;  %v3843_v6 = vpop.f32.mrf.mxu1 }
 0x268   : > { %v3445_v5 = vld [vmem:[%s4500_s15 + $0xb] ss:$0 sm:$0xff] }
 0x281   : > { %v1514_v10 = vpop.f32.mrf.mxu0  ;;  %v1602_v11 = vpop.f32.mrf.mxu1 }
 0x282   : > { %v1515_v12 = vadd.f32 %v3438_v7, %v1514_v10  ;;  %v1603_v13 = vadd.f32 %v3439_v9, %v1602_v11 }
 0x283   : > { %v3862_v14 = vpop.f32.mrf.mxu0  ;;  %v3882_v15 = vpop.f32.mrf.mxu1 }
 0x284   : > { %v2140_v16 = vpack.c.bf16 %v1515_v12, %v1515_v12  ;;  %v2141_v17 = vpack.c.bf16 %v1603_v13, %v1603_v13 }
 0x285   : > { %v1517_v20 = vpop.f32.mrf.mxu0  ;;  %v1605_v21 = vpop.f32.mrf.mxu1 }
 0x286   : > { %v2149_v22 = vsel %vm2144_vm3, %v2140_v16, 0  ;;  %v2195_v23 = vsel %vm2144_vm3, %v2141_v17, 0  ;;  %v2330_v21 = vlaneseq }
 0x287   : > { %v3863_v24 = vpop.f32.mrf.mxu0  ;;  %v3883_v25 = vpop.f32.mrf.mxu1  ;;  %4005 = vmatpush3.bf16.xpose.msra.mxu0 %v2149_v22  ;;  %4011 = vmatpush3.bf16.xpose.msra.mxu1 %v2195_v23  ;;  %v749_v22 = vld [vmem:[%s5038_s12] sm:$0x1] }
 0x288   : > { %4016 = vmatprep.subr.bf16.mxu0 %v4342_v8  ;;  %4022 = vmatprep.subr.bf16.mxu1 %v4342_v8  ;;  %v4840_v23 = vshrl.u32 %v2330_v21, 7  ;;  %vm750_vm5 = vcmp.gt.f32.partialorder %v749_v22, 0.0  ;;  %v4344_v25 = vmov 0  }
 0x289   : > { %v2329_v26 = vsel %vm750_vm5, 1, %v4344_v25 }
 0x28a   : > { %v2332_v24 = vsub.s32 0, %v4840_v23 }
 0x28c   : > { %v2333_v27 = vrot.slane %v2329_v26, %v2332_v24 }
 0x28e   : > { %4007 = vmatmul.mubr.msk.bf16.vlgmr.msra.gmra.mxu0 %vm2144_vm3, %v2136_v28  ;;  %4013 = vmatmul.mubr.msk.bf16.vlgmr.msra.gmra.mxu1 %vm2144_vm3, %v2137_v29  ;;  %vm2334_vm6 = vcmp.eq.s32.totalorder %v2333_v27, 1 }
 0x28f   : > { %4018 = vmatprep.mubr.msk.bf16.mxu0 %vm4343_vm0, %v4342_v8  ;;  %4024 = vmatprep.mubr.msk.bf16.mxu1 %vm4343_vm0, %v4342_v8 }
 0x2a1   : > { %v1690_v32 = vpop.f32.mrf.mxu0  ;;  %v1778_v33 = vpop.f32.mrf.mxu1 }
 0x2a2   : > { %v1691_v34 = vadd.f32 %v3440_v30, %v1690_v32  ;;  %v1779_v35 = vadd.f32 %v3441_v31, %v1778_v33 }
 0x2a3   : > { %v3902_v36 = vpop.f32.mrf.mxu0  ;;  %v3922_v37 = vpop.f32.mrf.mxu1 }
 0x2a4   : > { %v2142_v38 = vpack.c.bf16 %v1691_v34, %v1691_v34  ;;  %v2143_v40 = vpack.c.bf16 %v1779_v35, %v1779_v35 }
 0x2a5   : > { %v1693_v43 = vpop.f32.mrf.mxu0  ;;  %v1781_v44 = vpop.f32.mrf.mxu1 }
 0x2a6   : > { %v2241_v45 = vsel %vm2144_vm3, %v2142_v38, 0  ;;  %v2287_v46 = vsel %vm2144_vm3, %v2143_v40, 0 }
 0x2a7   : > { %v3903_v47 = vpop.f32.mrf.mxu0  ;;  %v3923_v48 = vpop.f32.mrf.mxu1  ;;  %4017 = vmatpush3.bf16.xpose.msra.mxu0 %v2241_v45  ;;  %4023 = vmatpush3.bf16.xpose.msra.mxu1 %v2287_v46 }
 0x2a8   : > { %4028 = vmatprep.subr.bf16.mxu0 %v4342_v8  ;;  %4034 = vmatprep.subr.bf16.mxu1 %v4342_v8 }
 0x2ae   : > { %4019 = vmatmul.mubr.msk.bf16.vlgmr.msra.gmra.mxu0 %vm2144_vm3, %v2138_v51  ;;  %4025 = vmatmul.mubr.msk.bf16.vlgmr.msra.gmra.mxu1 %vm2144_vm3, %v2139_v52 }
 0x2af   : > { %4030 = vmatprep.mubr.msk.bf16.mxu0 %vm4343_vm0, %v4342_v8  ;;  %4036 = vmatprep.mubr.msk.bf16.mxu1 %vm4343_vm0, %v4342_v8 }
 0x2c1   : > { %v1866_v55 = vpop.f32.mrf.mxu0  ;;  %v1954_v56 = vpop.f32.mrf.mxu1 }
 0x2c2   : > { %v1867_v57 = vadd.f32 %v3442_v53, %v1866_v55  ;;  %v1955_v58 = vadd.f32 %v3443_v54, %v1954_v56 }
 0x2c3   : > { %v3942_v59 = vpop.f32.mrf.mxu0  ;;  %v3962_v60 = vpop.f32.mrf.mxu1 }
 0x2c4   : > { %v2388_v61 = vpack.c.bf16 %v1867_v57, %v1867_v57  ;;  %v2389_v62 = vpack.c.bf16 %v1955_v58, %v1955_v58 }
 0x2c5   : > { %v1869_v63 = vpop.f32.mrf.mxu0  ;;  %v1957_v0 = vpop.f32.mrf.mxu1 }
 0x2c6   : > { %v2397_v1 = vsel %vm2395_vm4, %v2388_v61, 0  ;;  %v2443_v2 = vsel %vm2395_vm4, %v2389_v62, 0 }
 0x2c7   : > { %v3943_v39 = vpop.f32.mrf.mxu0  ;;  %v3963_v3 = vpop.f32.mrf.mxu1  ;;  %4029 = vmatpush3.bf16.msra.mxu0 %v2397_v1  ;;  %4035 = vmatpush3.bf16.msra.mxu1 %v2443_v2 }
 0x2c8   : > { %4040 = vmatprep.subr.bf16.mxu0 %v4342_v8  ;;  %4046 = vmatprep.subr.bf16.mxu1 %v4342_v8 }
 0x2e1   : > { %v2042_v6 = vpop.f32.mrf.mxu0  ;;  %v2130_v7 = vpop.f32.mrf.mxu1 }
 0x2e2   : > { %v2043_v9 = vadd.f32 %v3444_v4, %v2042_v6  ;;  %v2131_v10 = vadd.f32 %v3445_v5, %v2130_v7 }
 0x2e3   : > { %v3982_v11 = vpop.f32.mrf.mxu0  ;;  %v4002_v12 = vpop.f32.mrf.mxu1 }
 0x2e4   : > { %v2390_v13 = vpack.c.bf16 %v2043_v9, %v2043_v9  ;;  %v2391_v14 = vpack.c.bf16 %v2131_v10, %v2131_v10 }
 0x2e5   : > { %v2045_v15 = vpop.f32.mrf.mxu0  ;;  %v2133_v16 = vpop.f32.mrf.mxu1 }
 0x2e6   : > { %v4830_v17 = vsel %vm2395_vm4, %v2390_v13, 0  ;;  %v4833_v18 = vsel %vm2395_vm4, %v2391_v14, 0 }
 0x2e7   : > { %v3983_v19 = vpop.f32.mrf.mxu0  ;;  %v4003_v20 = vpop.f32.mrf.mxu1 }
 0x34e   : > { %v2185_v28 = vpop.f32.mrf.mxu0  ;;  %v2231_v29 = vpop.f32.mrf.mxu1 }
 0x34f   : > { %v2335_v30 = vsel %vm2334_vm6, %v2185_v28, -1e+09  ;;  %v2336_v34 = vsel %vm2334_vm6, %v2231_v29, -1e+09  ;;  %v4225_v28 = vld [vmem:[%s4495_s19 + $0x8] sm:$0xff]  }
 0x350   : > { %v4008_v31 = vpop.f32.mrf.mxu0  ;;  %v4014_v32 = vpop.f32.mrf.mxu1  ;;  %v2340_v33 = vsel %vm2339_vm7, %v2335_v30, -inf  ;;  %v2343_v40 = vsel %vm2339_vm7, %v2336_v34, -inf }
 0x351   : > { %2341 = vmax.xlane.f32.xlu1 %v2340_v33  ;;  %v4228_v31 = vld [vmem:[%s4495_s19 + $0x10] sm:$0xff]   ;;  %v4229_v33 = vld [vmem:[%s4495_s19 + $0x28] sm:$0xff]  }
 0x352   : > { %v2188_v35 = vpop.f32.mrf.mxu0  ;;  %v2234_v36 = vpop.f32.mrf.mxu1 }
 0x354   : > { %v4009_v37 = vpop.f32.mrf.mxu0  ;;  %v4015_v38 = vpop.f32.mrf.mxu1 }
 0x355   : > { %2344 = vmax.xlane.f32.xlu1 %v2343_v40  ;;  %v4230_v38 = vld [vmem:[%s4495_s19 + $0x38] sm:$0xff]   ;;  %v4231_v40 = vld [vmem:[%s4495_s19 + $0x20] sm:$0xff]  }
 0x36e   : > { %v2277_v41 = vpop.f32.mrf.mxu0  ;;  %v2323_v42 = vpop.f32.mrf.mxu1 }
 0x36f   : > { %v2337_v43 = vsel %vm2334_vm6, %v2277_v41, -1e+09  ;;  %v2338_v44 = vsel %vm2334_vm6, %v2323_v42, -1e+09 }
 0x370   : > { %v4020_v45 = vpop.f32.mrf.mxu0  ;;  %v4026_v46 = vpop.f32.mrf.mxu1  ;;  %v2349_v47 = vsel %vm2339_vm7, %v2338_v44, -inf  ;;  %v2346_v48 = vsel %vm2339_vm7, %v2337_v43, -inf }
 0x371   : > { %2350 = vmax.xlane.f32.xlu1 %v2349_v47  ;;  %2347 = vmax.xlane.f32.xlu0 %v2346_v48  ;;  %v4232_v45 = vld [vmem:[%s4495_s19 + $0x30] sm:$0xff]  }
 0x372   : > { %v2280_v49 = vpop.f32.mrf.mxu0  ;;  %v2326_v50 = vpop.f32.mrf.mxu1 }
 0x374   : > { %v4021_v51 = vpop.f32.mrf.mxu0  ;;  %v4027_v52 = vpop.f32.mrf.mxu1 }
 0x3da   : > { %v2342_v53 = vpop.xlane.xlu1 %2341 }
 0x3db   : > { %v2352_v54 = vsub.f32 %v2335_v30, %v2342_v53  ;;  %v4227_v30 = vld [vmem:[%s4495_s19 + $0x18] sm:$0xff]  }
 0x3dd   : > { %v2356_v55 = vmul.f32 1.442695, %v2352_v54 }
 0x3de   : > { %v2345_v56 = vpop.xlane.xlu1 %2344 }
 0x3df   : > { %4277 = vpow2.f32 %v2356_v55  ;;  %v2353_v57 = vsub.f32 %v2336_v34, %v2345_v56 }
 0x3e1   : > { %v2358_v58 = vmul.f32 1.442695, %v2353_v57 }
 0x3e3   : > { %4279 = vpow2.f32 %v2358_v58 }
 0x3ec   : > { %v4278_v59 = vpop.eup %4277 }
 0x3ed   : > { %v2364_v60 = vsel %vm2339_vm7, %v4278_v59, 0.0 }
 0x3ee   : > { %2365 = vadd.xlane.f32.xlu0 %v2364_v60 }
 0x3f0   : > { %v4280_v61 = vpop.eup %4279 }
 0x3f1   : > { %v2367_v62 = vsel %vm2339_vm7, %v4280_v61, 0.0 }
 0x3f2   : > { %2368 = vadd.xlane.f32.xlu1 %v2367_v62 }
 0x3fa   : > { %v2351_v63 = vpop.xlane.xlu1 %2350  ;;  %v2348_v0 = vpop.xlane.xlu0 %2347 }
 0x3fb   : > { %v2355_v1 = vsub.f32 %v2338_v44, %v2351_v63  ;;  %v2354_v2 = vsub.f32 %v2337_v43, %v2348_v0 }
 0x3fd   : > { %v2362_v39 = vmul.f32 1.442695, %v2355_v1  ;;  %v2360_v3 = vmul.f32 1.442695, %v2354_v2 }
 0x3ff   : > { %4281 = vpow2.f32 %v2362_v39 }
 0x400   : > { %4283 = vpow2.f32 %v2360_v3 }
 0x40c   : > { %v4282_v4 = vpop.eup %4281 }
 0x40d   : > { %v4284_v5 = vpop.eup %4283  ;;  %v2373_v6 = vsel %vm2339_vm7, %v4282_v4, 0.0 }
 0x40e   : > { %2374 = vadd.xlane.f32.xlu1 %v2373_v6  ;;  %v2370_v7 = vsel %vm2339_vm7, %v4284_v5, 0.0 }
 0x40f   : > { %2371 = vadd.xlane.f32.xlu0 %v2370_v7 }
 0x477   : > { %v2366_v9 = vpop.xlane.xlu0 %2365 }
 0x478   : > { %4285 = vrcp.f32 %v2366_v9 }
 0x47b   : > { %v2369_v10 = vpop.xlane.xlu1 %2368 }
 0x47c   : > { %4287 = vrcp.f32 %v2369_v10 }
 0x485   : > { %v4286_v11 = vpop.eup %4285 }
 0x486   : > { %v2380_v12 = vmul.f32 %v4286_v11, %v4278_v59 }
 0x488   : > { %v2384_v13 = vpack.c.bf16 %v2380_v12, %v2380_v12  ;;  %v4297_v12 = vld [vmem:[#allocation2] sm:$0xff] }
 0x489   : > { %v4288_v14 = vpop.eup %4287 }
 0x48a   : > { %4031 = vmatmul.mubr.msk.bf16.vlgmr.msra.gmra.mxu0 %vm2339_vm7, %v2384_v13  ;;  %v2381_v15 = vmul.f32 %v4288_v14, %v4280_v61 }
 0x48b   : > { %4041 = vmatpush3.bf16.msra.mxu0 %v4830_v17  ;;  %4042 = vmatprep.mubr.msk.bf16.mxu0 %vm4343_vm0, %v4342_v8 }
 0x48c   : > { %v2385_v16 = vpack.c.bf16 %v2381_v15, %v2381_v15  ;;  %4052 = vmatprep.subr.bf16.mxu0 %v4342_v8 }
 0x48e   : > { %4037 = vmatmul.mubr.msk.bf16.vlgmr.msra.gmra.mxu1 %vm2339_vm7, %v2385_v16 }
 0x48f   : > { %4047 = vmatpush3.bf16.msra.mxu1 %v4833_v18  ;;  %4048 = vmatprep.mubr.msk.bf16.mxu1 %vm4343_vm0, %v4342_v8  ;;  %v4226_v18 = vld [vmem:[%s4495_s19] sm:$0xff]  }
 0x490   : > { %4060 = vmatprep.subr.bf16.mxu1 %v4342_v8 }
 0x497   : > { %v2375_v19 = vpop.xlane.xlu1 %2374 }
 0x498   : > { %4289 = vrcp.f32 %v2375_v19  ;;  %v2372_v17 = vpop.xlane.xlu0 %2371 }
 0x499   : > { %4291 = vrcp.f32 %v2372_v17  ;;  %v4235_v17 = vld [vmem:[%s4519_s24 + $0x74] ss:$8 sps:$4 sm:$0xff]  }
 0x4a5   : > { %v4290_v20 = vpop.eup %4289 }
 0x4a6   : > { %v4292_v21 = vpop.eup %4291  ;;  %v2383_v22 = vmul.f32 %v4290_v20, %v4282_v4  ;;  %v4233_v20 = vld [vmem:[%s4519_s24 + $0x70] ss:$8 sps:$4 sm:$0xff]  }
 0x4a7   : > { %v2382_v26 = vmul.f32 %v4292_v21, %v4284_v5  ;;  %v4238_v21 = vld [vmem:[%s4519_s24 + $0x64] ss:$8 sps:$4 sm:$0xff]  }
 0x4a8   : > { %v2387_v27 = vpack.c.bf16 %v2383_v22, %v2383_v22  ;;  %v4236_v22 = vld [vmem:[%s4519_s24 + $0x60] ss:$8 sps:$4 sm:$0xff]  }
 0x4a9   : > { %v2386_v29 = vpack.c.bf16 %v2382_v26, %v2382_v26  ;;  %v4241_v26 = vld [vmem:[%s4519_s24 + $0x54] ss:$8 sps:$4 sm:$0xff]  }
 0x4aa   : > { %4049 = vmatmul.mubr.msk.bf16.vlgmr.msra.gmra.mxu1 %vm2339_vm7, %v2387_v27  ;;  %v4239_v27 = vld [vmem:[%s4519_s24 + $0x50] ss:$8 sps:$4 sm:$0xff]  }
 0x4ab   : > { %4043 = vmatmul.mubr.msk.bf16.vlgmr.msra.gmra.mxu0 %vm2339_vm7, %v2386_v29  ;;  %4064 = vmatprep.mubr.msk.bf16.mxu1 %vm4343_vm0, %v4342_v8  ;;  %v4244_v29 = vld [vmem:[%s4519_s24 + $0x44] ss:$8 sps:$4 sm:$0xff]  }
 0x4ac   : > { %4053 = vmatpush3.bf16.msra.mxu0 %v4225_v28  ;;  %4056 = vmatprep.mubr.msk.bf16.mxu0 %vm4343_vm0, %v4342_v8  ;;  %v4242_v28 = vld [vmem:[%s4519_s24 + $0x40] ss:$8 sps:$4 sm:$0xff]  }
 0x4ad   : > { %4054 = vmatprep.subr.bf16.mxu0 %v4342_v8  ;;  %4061 = vmatpush3.bf16.msra.mxu1 %v4227_v30  ;;  %v4245_v30 = vld [vmem:[%s4519_s24 + $0x30] ss:$8 sps:$4 sm:$0xff]  }
 0x4ae   : > { %4062 = vmatprep.subr.bf16.mxu1 %v4342_v8 }
 0x4b0   : > { %4055 = vmatpush3.bf16.msra.mxu0 %v4226_v18  ;;  %v4247_v18 = vld [vmem:[%s4519_s24 + $0x34] ss:$8 sps:$4 sm:$0xff]  }
 0x4b1   : > { %4068 = vmatprep.subr.bf16.mxu0 %v4342_v8  ;;  %4063 = vmatpush3.bf16.msra.mxu1 %v4228_v31  ;;  %v4250_v31 = vld [vmem:[%s4519_s24 + $0x24] ss:$8 sps:$4 sm:$0xff]  }
 0x4b2   : > { %4076 = vmatprep.subr.bf16.mxu1 %v4342_v8 }
 0x54a   : > { %v2433_v32 = vpop.f32.mrf.mxu0 }
 0x54b   : > { %v2577_v34 = vpack.c.bf16 %v2433_v32, %v2433_v32  ;;  %v4248_v32 = vld [vmem:[%s4519_s24 + $0x20] ss:$8 sps:$4 sm:$0xff]  }
 0x54c   : > { %v4032_v35 = vpop.f32.mrf.mxu0 }
 0x54d   : > { %4057 = vmatmul.mubr.msk.bf16.vlgmr.msra.gmra.mxu0 %vm2144_vm3, %v2577_v34  ;;  %v4251_v34 = vld [vmem:[%s4519_s24 + $0x10] ss:$8 sps:$4 sm:$0xff]   ;;  %v4256_v35 = vld [vmem:[%s4519_s24 + $0x4] ss:$8 sps:$4 sm:$0xff]  }
 0x54e   : > { %v2436_v36 = vpop.f32.mrf.mxu0  ;;  %v2479_v37 = vpop.f32.mrf.mxu1  ;;  %4069 = vmatpush3.bf16.msra.mxu0 %v4229_v33  ;;  %4072 = vmatprep.mubr.msk.bf16.mxu0 %vm4343_vm0, %v4342_v8  ;;  %v4253_v33 = vld [vmem:[%s4519_s24 + $0x14] ss:$8 sps:$4 sm:$0xff]  }
 0x54f   : > { %v2578_v41 = vpack.c.bf16 %v2479_v37, %v2479_v37  ;;  %4070 = vmatprep.subr.bf16.mxu0 %v4342_v8  ;;  %v4254_v36 = vld [vmem:[%s4519_s24] ss:$8 sps:$4 sm:$0xff]   ;;  %v4257_v37 = vld [vmem:[%s4529_s23 + $0x78] sm:$0xff]  }
 0x550   : > { %v4033_v42 = vpop.f32.mrf.mxu0  ;;  %v4038_v43 = vpop.f32.mrf.mxu1 }
 0x551   : > { %4065 = vmatmul.mubr.msk.bf16.vlgmr.msra.gmra.mxu1 %vm2144_vm3, %v2578_v41  ;;  %v4260_v41 = vld [vmem:[%s4529_s23 + $0x30] sm:$0xff]   ;;  %v4261_v42 = vld [vmem:[%s4529_s23 + $0x68] sm:$0xff]  }
 0x552   : > { %v2482_v44 = vpop.f32.mrf.mxu1  ;;  %4077 = vmatpush3.bf16.msra.mxu1 %v4230_v38  ;;  %4071 = vmatpush3.bf16.msra.mxu0 %v4231_v40  ;;  %v4258_v38 = vld [vmem:[%s4529_s23 + $0x38] sm:$0xff]   ;;  %v4259_v40 = vld [vmem:[%s4529_s23 + $0x70] sm:$0xff]   ;;  %v4262_v43 = vld [vmem:[%s4529_s23 + $0x28] sm:$0xff]  }
 0x553   : > { %4078 = vmatprep.subr.bf16.mxu1 %v4342_v8  ;;  %4080 = vmatprep.mubr.msk.bf16.mxu1 %vm4343_vm0, %v4342_v8  ;;  %v4263_v44 = vld [vmem:[%s4529_s23 + $0x60] sm:$0xff]  }
 0x554   : > { %v4039_v46 = vpop.f32.mrf.mxu1  ;;  %2988 = vmatprep.subr.bf16.mxu0 %v4235_v17 }
 0x555   : > { %v4265_v46 = vld [vmem:[%s4529_s23 + $0x58] sm:$0xff]  }
 0x556   : > { %4079 = vmatpush3.bf16.msra.mxu1 %v4232_v45  ;;  %v4264_v45 = vld [vmem:[%s4529_s23 + $0x20] sm:$0xff]  }
 0x557   : > { %3742 = vmatprep.subr.bf16.mxu1 %v4257_v37 }
 0x56a   : > { %v2571_v47 = vpop.f32.mrf.mxu1 }
 0x56b   : > { %v2525_v48 = vpop.f32.mrf.mxu0  ;;  %v2580_v49 = vpack.c.bf16 %v2571_v47, %v2571_v47  ;;  %v4266_v47 = vld [vmem:[%s4529_s23 + $0x18] sm:$0xff]  }
 0x56c   : > { %v2579_v50 = vpack.c.bf16 %v2525_v48, %v2525_v48  ;;  %v4050_v51 = vpop.f32.mrf.mxu1  ;;  %v4267_v48 = vld [vmem:[%s4529_s23 + $0x50] sm:$0xff]  }
 0x56d   : > { %v4044_v52 = vpop.f32.mrf.mxu0  ;;  %4081 = vmatmul.mubr.msk.bf16.vlgmr.msra.gmra.mxu1 %vm2144_vm3, %v2580_v49  ;;  %v4268_v49 = vld [vmem:[%s4529_s23 + $0x10] sm:$0xff]  }
 0x56e   : > { %4073 = vmatmul.mubr.msk.bf16.vlgmr.msra.gmra.mxu0 %vm2144_vm3, %v2579_v50  ;;  %v2574_v53 = vpop.f32.mrf.mxu1  ;;  %3743 = vmatpush3.bf16.msra.mxu1 %v4258_v38 }
 0x56f   : > { %v2528_v54 = vpop.f32.mrf.mxu0  ;;  %3020 = vmatprep.mubr.bf16.mxu0 %v4344_v25  ;;  %v3562_v25 = vld [vmem:[%s5039_s18] ss:$0 sm:$0xff]  ;;  %2989 = vmatpush1.bf16.msra.mxu0 %v4233_v20 }
 0x570   : > { %v4051_v55 = vpop.f32.mrf.mxu1  ;;  %2990 = vmatprep.subr.bf16.mxu0 %v4238_v21  ;;  %3744 = vmatprep.subr.bf16.mxu1 %v4259_v40 }
 0x571   : > { %v4045_v56 = vpop.f32.mrf.mxu0 }
 0x572   : > { %3745 = vmatpush3.bf16.msra.mxu1 %v4260_v41 }
 0x573   : > { %2991 = vmatpush1.bf16.msra.mxu0 %v4236_v22  ;;  %3746 = vmatprep.subr.bf16.mxu1 %v4261_v42 }
 0x574   : > { %2992 = vmatprep.subr.bf16.mxu0 %v4241_v26 }
 0x576   : > { %3747 = vmatpush3.bf16.msra.mxu1 %v4262_v43 }
 0x577   : > { %2993 = vmatpush1.bf16.msra.mxu0 %v4239_v27  ;;  %3748 = vmatprep.subr.bf16.mxu1 %v4263_v44 }
 0x578   : > { %2994 = vmatprep.subr.bf16.mxu0 %v4244_v29 }
 0x57a   : > { %3749 = vmatpush3.bf16.msra.mxu1 %v4264_v45 }
 0x57b   : > { %2995 = vmatpush1.bf16.msra.mxu0 %v4242_v28  ;;  %3750 = vmatprep.subr.bf16.mxu1 %v4265_v46 }
 0x57c   : > { %2996 = vmatprep.subr.bf16.mxu0 %v4247_v18 }
 0x57e   : > { %3751 = vmatpush3.bf16.msra.mxu1 %v4266_v47 }
 0x57f   : > { %2997 = vmatpush1.bf16.msra.mxu0 %v4245_v30  ;;  %3752 = vmatprep.subr.bf16.mxu1 %v4267_v48 }
 0x580   : > { %2998 = vmatprep.subr.bf16.mxu0 %v4250_v31 }
 0x582   : > { %3753 = vmatpush3.bf16.msra.mxu1 %v4268_v49 }
 0x583   : > { %2999 = vmatpush1.bf16.msra.mxu0 %v4248_v32 }
 0x584   : > { %3000 = vmatprep.subr.bf16.mxu0 %v4253_v33 }
 0x587   : > { %3001 = vmatpush1.bf16.msra.mxu0 %v4251_v34 }
 0x588   : > { %3002 = vmatprep.subr.bf16.mxu0 %v4256_v35 }
 0x58b   : > { %3003 = vmatpush1.bf16.msra.mxu0 %v4254_v36 }
 0x60d   : > { %v2630_v8 = vpop.f32.mrf.mxu0 }
 0x60f   : > { %v4058_v57 = vpop.f32.mrf.mxu0 }
 0x611   : > { %v2633_v58 = vpop.f32.mrf.mxu0  ;;  %v2685_v59 = vpop.f32.mrf.mxu1 }
 0x612   : > { %v2801_v0 = vadd.f32 %v2685_v59, %v2630_v8  ;;  %v3563_v58 = vld [vmem:[%s5041_s26] ss:$0 sm:$0xff] }
 0x613   : > { %v4059_v60 = vpop.f32.mrf.mxu0  ;;  %v4066_v61 = vpop.f32.mrf.mxu1 }
 0x614   : > { %v3564_v60 = vld [vmem:[%s5043_s30] ss:$0 sm:$0xff] }
 0x615   : > { %v2688_v62 = vpop.f32.mrf.mxu1 }
 0x617   : > { %v4067_v63 = vpop.f32.mrf.mxu1 }
 0x62d   : > { %v2795_v1 = vpop.f32.mrf.mxu1 }
 0x62e   : > { %v2740_v2 = vpop.f32.mrf.mxu0 }
 0x62f   : > { %v2802_v39 = vadd.f32 %v2801_v0, %v2740_v2  ;;  %v4082_v3 = vpop.f32.mrf.mxu1  ;;  %v4269_v0 = vld [vmem:[%s4529_s23 + $0x48] sm:$0xff]   ;;  %v4271_v2 = vld [vmem:[%s4529_s23 + $0x40] sm:$0xff]  }
 0x630   : > { %v4074_v4 = vpop.f32.mrf.mxu0  ;;  %3754 = vmatprep.subr.bf16.mxu1 %v4269_v0  ;;  %v2830_v3 = vld [vmem:[%s4524_s25] sm:$0x3] }
 0x631   : > { %v2803_v5 = vadd.f32 %v2802_v39, %v2795_v1  ;;  %v2798_v6 = vpop.f32.mrf.mxu1  ;;  %v4270_v1 = vld [vmem:[%s4529_s23 + $0x8] sm:$0xff]   ;;  %v4272_v39 = vld [vmem:[%s4529_s23] sm:$0xff]   ;;  %v2901_v4 = vrot.slane %v2830_v3, %v2332_v24 }
 0x632   : > { %v2743_v7 = vpop.f32.mrf.mxu0  ;;  %3755 = vmatpush3.bf16.msra.mxu1 %v4270_v1 }
 0x633   : > { %v2810_v9 = vadd.f32 %v3562_v25, %v2803_v5  ;;  %v4083_v10 = vpop.f32.mrf.mxu1  ;;  %3756 = vmatprep.subr.bf16.mxu1 %v4271_v2  ;;  %v2904_v25 = vsub.s32 1, %v4840_v23  ;;  %v3581_v23 = vld [vmem:[%s736_s4] ss:$0 sm:$0xff] }
 0x634   : > { %v4075_v11 = vpop.f32.mrf.mxu0 }
 0x635   : > { %v4902_v13 = vadd.f32 %v4297_v12, %v2810_v9  ;;  %v2905_v5 = vrot.slane %v2830_v3, %v2904_v25 }
 0x636   : > { %3757 = vmatpush3.bf16.msra.mxu1 %v4272_v39 }
 0x637   : > { %2864 = vadd.xlane.f32.xlu0 %v4902_v13 }
 0x6c0   : > { %v2865_v14 = vpop.xlane.xlu0 %2864 }
 0x6c1   : > { %v2866_v15 = vmul.f32 0.0078125, %v2865_v14 }
 0x6c3   : > { %v4906_v16 = vsub.f32 %v4902_v13, %v2866_v15 }
 0x6c5   : > { %v2868_v19 = vmul.f32 %v4906_v16, %v4906_v16 }
 0x6c7   : > { %2869 = vadd.xlane.f32.xlu1 %v2868_v19 }
 0x750   : > { %v2870_v50 = vpop.xlane.xlu1 %2869 }
 0x751   : > { %v2871_v51 = vmul.f32 0.007874016, %v2870_v50 }
 0x753   : > { %4293 = vrsqrt.f32 %v2871_v51  ;;  %vm2874_vm8 = vcmp.eq.f32.partialorder %v2871_v51, inf  ;;  %v2877_v54 = vand.u32 2147483648, %v2871_v51  ;;  %vm2876_vm9 = vcmp.eq.f32.partialorder %v2871_v51, 0.0 }
 0x760   : > { %v4294_v52 = vpop.eup %4293 }
 0x761   : > { %v2873_v53 = vmul.f32 %v4294_v52, %v2871_v51 }
 0x763   : > { %v2875_v55 = vsel %vm2874_vm8, %v2871_v51, %v2873_v53 }
 0x764   : > { %v2878_v56 = vsel %vm2876_vm9, %v2877_v54, %v2875_v55 }
 0x765   : > { %v2879_v8 = vadd.f32 1e-06, %v2878_v56 }
 0x767   : > { %4295 = vrcp.f32 %v2879_v8 }
 0x774   : > { %v4296_v57 = vpop.eup %4295 }
 0x775   : > { %v2881_v59 = vmul.f32 %v4296_v57, %v4906_v16 }
 0x777   : > { %v2888_v61 = vmul.f32 %v3563_v58, %v2881_v59 }
 0x779   : > { %v2895_v62 = vadd.f32 %v3564_v60, %v2888_v61 }
 0x77b   : > { %v2896_v63 = vpack.c.bf16 %v2895_v62, %v2895_v62 }
 0x77d   : > { %3021 = vmatmul.mubr.bf16.vlgmr.msra.gmra.mxu0 %v2896_v63 }
 0x83d   : > { %v3022_v6 = vpop.f32.mrf.mxu0 }
 0x83e   : > { %v3023_v7 = vadd.f32 %v3022_v6, %v2901_v4 }
 0x83f   : > { %v3024_v9 = vpop.f32.mrf.mxu0 }
 0x840   : > { %v3025_v10 = vadd.f32 %v3024_v9, %v2905_v5  ;;  %v3029_v11 = vmax.f32 %v3023_v7, 0.0 }
 0x841   : > { %v3026_v12 = vpop.f32.mrf.mxu0 }
 0x842   : > { %v3030_v14 = vmax.f32 %v3025_v10, 0.0  ;;  %v3031_v19 = vpack.c.bf16 %v3029_v11, %v3029_v11 }
 0x843   : > { %v3027_v15 = vpop.f32.mrf.mxu0 }
 0x844   : > { %v3032_v16 = vpack.c.bf16 %v3030_v14, %v3030_v14 }
 0x846   : > { %3167 = vmatprep.mubr.bf16.mxu1 %v3032_v16 }
 0x847   : > { %3168 = vmatmul.mubr.bf16.vlgmr.msra.gmra.mxu1 %v3031_v19 }
 0x907   : > { %v3758_v17 = vpop.f32.mrf.mxu1 }
 0x909   : > { %v3759_v24 = vpop.f32.mrf.mxu1 }
 0x90a   : > { %v3760_v20 = vadd.f32 %v3759_v24, %v3758_v17 }
 0x90b   : > { %v3761_v21 = vpop.f32.mrf.mxu1 }
 0x90c   : > { %v3170_v22 = vadd.f32 %v3760_v20, %v3581_v23  ;;  %3180 = sbr.rel (%p3598_p8) target bundleno = 2648 (0xa58), region = 92 }
 0x90d   : > { %v3762_v26 = vpop.f32.mrf.mxu1 }
 0x90e   : > { %v3175_v27 = vadd.f32 %v3170_v22, %v4902_v13 }
 0x910   : > { %3176 = vst [vmem:[#allocation2] sm:$0xff] %v3175_v27 }
 0x911   : > { %3183 = vadd.xlane.f32.xlu0 %v3175_v27  ;;  %v3599_v40 = vld [vmem:[%s5046_s8] ss:$0 sm:$0xff] }
 0x912   : > { %v3600_v42 = vld [vmem:[%s5047_s27] ss:$0 sm:$0xff] }
 0x99a   : > { %v3184_v28 = vpop.xlane.xlu0 %3183 }
 0x99b   : > { %v3185_v29 = vmul.f32 0.0078125, %v3184_v28 }
 0x99d   : > { %v3186_v18 = vsub.f32 %v3175_v27, %v3185_v29 }
 0x99f   : > { %v3187_v30 = vmul.f32 %v3186_v18, %v3186_v18 }
 0x9a1   : > { %3188 = vadd.xlane.f32.xlu0 %v3187_v30 }
 0xa2a   : > { %v3189_v31 = vpop.xlane.xlu0 %3188 }
 0xa2b   : > { %v3190_v32 = vmul.f32 0.007874016, %v3189_v31 }
 0xa2d   : > { %4298 = vrsqrt.f32 %v3190_v32  ;;  %vm3193_vm10 = vcmp.eq.f32.partialorder %v3190_v32, inf  ;;  %v3196_v35 = vand.u32 2147483648, %v3190_v32  ;;  %vm3195_vm11 = vcmp.eq.f32.partialorder %v3190_v32, 0.0 }
 0xa3a   : > { %v4299_v33 = vpop.eup %4298 }
 0xa3b   : > { %v3192_v34 = vmul.f32 %v4299_v33, %v3190_v32 }
 0xa3d   : > { %v3194_v36 = vsel %vm3193_vm10, %v3190_v32, %v3192_v34 }
 0xa3e   : > { %v3197_v13 = vsel %vm3195_vm11, %v3196_v35, %v3194_v36 }
 0xa3f   : > { %v3198_v37 = vadd.f32 1e-06, %v3197_v13 }
 0xa41   : > { %4300 = vrcp.f32 %v3198_v37 }
 0xa4e   : > { %v4301_v38 = vpop.eup %4300 }
 0xa4f   : > { %v3200_v41 = vmul.f32 %v4301_v38, %v3186_v18 }
 0xa51   : > { %v3207_v43 = vmul.f32 %v3599_v40, %v3200_v41 }
 0xa53   : > { %v3214_v44 = vadd.f32 %v3600_v42, %v3207_v43 }
 0xa55   : > { %v3215_v45 = vpack.c.bf16 %v3214_v44, %v3214_v44 }
 0xa57   : > { %3216 = vst [vmem:[%s4539_s29] sm:$0xf] %v3215_v45 }
 0xa58 PF: > { %s5048_s17 = sld [smem:[#allocation6_spill]] }
 0xa59   : > { %s5049_s21 = sld [smem:[#allocation4_spill]] }
 0xa5a   : > { %s5050_s22 = sld [smem:[#allocation5_spill]] }
 0xa5b   : > { %s5051_s23 = sld [smem:[#allocation7_spill]] }
 0xa5c   : > { %s5052_s24 = sld [smem:[#allocation8_spill]] }
 0xa5e   : > { %s26_s25 = sadd.s32 1, %s5048_s17  }
 0xa5f   : > { %p23_p9 = scmp.ge.s32.totalorder %s26_s25, 6  }
 0xa61   :  { %25 = sbr.rel (!%p23_p9) target bundleno = 13 (0xd), region = 161 }

// kernel: _lambda_.3
= control target key start
LH: loop header
LB: loop body
LE: loop exit
PB: predicated region body
PF: predicated region fallthrough
CT: control target
= control target key end

     0   :  { %s8893_s0 = inlined_call_operand.vmem [shape: f32[2,8,128], index: 0, kind: input, shape index: {}]   ;;  %s8894_s1 = inlined_call_operand.vmem [shape: bf16[2,8,128], index: 1, kind: input, shape index: {}]   ;;  %s8895_s2 = inlined_call_operand.vmem [shape: f32[2,1,8], index: 2, kind: input, shape index: {}]   ;;  %s8896_s3 = inlined_call_operand.vmem [shape: f32[2,1,128], index: 3, kind: input, shape index: {}]   ;;  %s8897_s4 = inlined_call_operand.vmem [shape: f32[2,1,128], index: 4, kind: input, shape index: {}]   ;;  %s8898_s5 = inlined_call_operand.vmem [shape: bf16[2,12,128,32], index: 5, kind: input, shape index: {}]   ;;  %s8899_s6 = inlined_call_operand.vmem [shape: f32[2,12,1,32], index: 6, kind: input, shape index: {}]   ;;  %s8900_s7 = inlined_call_operand.vmem [shape: bf16[2,4,32,128], index: 7, kind: input, shape index: {}]   ;;  %s8901_s8 = inlined_call_operand.vmem [shape: f32[2,1,128], index: 8, kind: input, shape index: {}]   ;;  %s8902_s9 = inlined_call_operand.vmem [shape: f32[2,1,128], index: 9, kind: input, shape index: {}]   ;;  %s8903_s10 = inlined_call_operand.vmem [shape: f32[2,1,128], index: 10, kind: input, shape index: {}]   ;;  %s8904_s11 = inlined_call_operand.vmem [shape: bf16[2,4,128,32], index: 11, kind: input, shape index: {}]   ;;  %s8905_s12 = inlined_call_operand.vmem [shape: f32[2,4,1,32], index: 12, kind: input, shape index: {}]   ;;  %s8906_s13 = inlined_call_operand.vmem [shape: bf16[2,8,128,32], index: 13, kind: input, shape index: {}]   ;;  %s8907_s14 = inlined_call_operand.vmem [shape: f32[2,8,1,32], index: 14, kind: input, shape index: {}]   ;;  %s8908_s15 = inlined_call_operand.vmem [shape: bf16[2,4,32,128], index: 15, kind: input, shape index: {}]   ;;  %s8909_s16 = inlined_call_operand.vmem [shape: f32[2,1,128], index: 16, kind: input, shape index: {}]   ;;  %s8910_s17 = inlined_call_operand.vmem [shape: f32[2,1,128], index: 17, kind: input, shape index: {}]   ;;  %s8911_s18 = inlined_call_operand.vmem [shape: f32[2,1,128], index: 18, kind: input, shape index: {}]   ;;  %s8912_s19 = inlined_call_operand.vmem [shape: bf16[2,128,256], index: 19, kind: input, shape index: {}]   ;;  %s8913_s20 = inlined_call_operand.vmem [shape: f32[2,1,256], index: 20, kind: input, shape index: {}]   ;;  %s8914_s21 = inlined_call_operand.vmem [shape: bf16[2,256,128], index: 21, kind: input, shape index: {}]   ;;  %s8915_s22 = inlined_call_operand.vmem [shape: f32[2,1,128], index: 22, kind: input, shape index: {}]   ;;  %s8916_s23 = inlined_call_operand.vmem [shape: f32[1,128], index: 23, kind: input, shape index: {}]   ;;  %s8917_s24 = inlined_call_operand.vmem [shape: f32[1,128], index: 24, kind: input, shape index: {}]   ;;  %s8918_s25 = inlined_call_operand.hbm [shape: f32[2,8,128], index: 25, kind: output, shape index: {}]  }
   0x1   :  { %8936 = sst [smem:[#allocation23_spill]] %s8893_s0 }
   0x2   :  { %8937 = sst [smem:[#allocation24_spill]] %s8894_s1 }
   0x3   :  { %8938 = sst [smem:[#allocation25_spill]] %s8895_s2 }
   0x4   :  { %8939 = sst [smem:[#allocation26_spill]] %s8896_s3 }
   0x5   :  { %8940 = sst [smem:[#allocation27_spill]] %s8897_s4 }
   0x6   :  { %8941 = sst [smem:[#allocation28_spill]] %s8898_s5 }
   0x7   :  { %8942 = sst [smem:[#allocation29_spill]] %s8899_s6 }
   0x8   :  { %8943 = sst [smem:[#allocation30_spill]] %s8900_s7 }
   0x9   :  { %8944 = sst [smem:[#allocation31_spill]] %s8901_s8 }
   0xa   :  { %8945 = sst [smem:[#allocation32_spill]] %s8902_s9 }
   0xb   :  { %8946 = sst [smem:[#allocation33_spill]] %s8904_s11 }
   0xc   :  { %8947 = sst [smem:[#allocation34_spill]] %s8905_s12 }
   0xd   :  { %8948 = sst [smem:[#allocation35_spill]] %s8906_s13 }
   0xe   :  { %8949 = sst [smem:[#allocation36_spill]] %s8907_s14 }
   0xf   :  { %8950 = sst [smem:[#allocation37_spill]] %s8908_s15 }
  0x10   :  { %8951 = sst [smem:[#allocation38_spill]] %s8910_s17 }
  0x11   :  { %8952 = sst [smem:[#allocation39_spill]] %s8911_s18 }
  0x12   :  { %8953 = sst [smem:[#allocation40_spill]] %s8912_s19 }
  0x13   :  { %8954 = sst [smem:[#allocation41_spill]] %s8913_s20 }
  0x14   :  { %8955 = sst [smem:[#allocation42_spill]] %s8914_s21 }
  0x15   :  { %8956 = sst [smem:[#allocation43_spill]] %s8915_s22 }
  0x16   :  { %8957 = sst [smem:[#allocation44_spill]] %s8916_s23 }
  0x17   :  { %8958 = sst [smem:[#allocation45_spill]] %s8917_s24 }
  0x18   :  { %8959 = sst [smem:[#allocation46_spill]] %s8918_s25 }
  0x19   :  { %30 = vsyncpa [#allocation4], 0 }
  0x1a   :  { %32 = vsyncpa [#allocation4 + $0x1], 0  ;;  %s7859_s29 = smov 0   ;;  %s7861_s2 = smov 0  }
  0x1b   :  { %s7863_s6 = smov 0   ;;  %s7865_s30 = smov 0  }
  0x1c   :  { %s7867_s7 = smov 0   ;;  %s7869_s3 = smov 0  }
  0x1d   :  { %s7871_s26 = smov 0   ;;  %s7873_s1 = smov 0  }
  0x1e LB: > { %8960 = sst [smem:[#allocation6_spill]] %s7695_s29  ;;  %s5989_s8 = sadd.s32 4294967295, %s7723_s1   ;;  %s7723_s1 = sphi %s7873_s1, %s38_s1   ;;  %s7719_s26 = sphi %s7871_s26, %s9039_s26   ;;  %s7715_s3 = sphi %s7869_s3, %s9038_s3   ;;  %s7711_s7 = sphi %s7867_s7, %s9037_s7   ;;  %s7707_s30 = sphi %s7865_s30, %s9036_s30   ;;  %s7703_s6 = sphi %s7863_s6, %s9035_s6   ;;  %s7699_s2 = sphi %s7861_s2, %s9034_s2   ;;  %s7695_s29 = sphi %s7859_s29, %s9033_s29  }
  0x1f   : > { %8961 = sst [smem:[#allocation7_spill]] %s7699_s2  ;;  %s5990_s27 = sadd.s32 4294967294, %s7723_s1  }
  0x20   : > { %8962 = sst [smem:[#allocation8_spill]] %s7703_s6  ;;  %s47_s4 = sadd.s32 1, %s7715_s3 }
  0x21   : > { %8963 = sst [smem:[#allocation9_spill]] %s7707_s30  ;;  %p48_p0 = scmp.ge.s32.totalorder %s47_s4, 2 }
  0x22   : > { %8964 = sst [smem:[#allocation10_spill]] %s7711_s7  ;;  %s50_s28 = sadd.s32 1, %s7719_s26 }
  0x23   : > { %8965 = sst [smem:[#allocation11_spill]] %s7715_s3  ;;  %p707_p1 = scmp.ne.s32.totalorder %s7703_s6, %s7699_s2 }
  0x24   : > { %8966 = sst [smem:[#allocation12_spill]] %s7719_s26  ;;  %p708_p2 = scmp.eq.s32.totalorder %s5989_s8, 3 }
  0x25   : > { %8967 = sst [smem:[#allocation13_spill]] %s7723_s1  ;;  %s9041_s4 = smov (%p48_p0, %s47_s4), 0 }
  0x26   : > { %8968 = sst [smem:[#allocation14_spill]] %s9041_s4  ;;  %s9043_s28 = smov (!%p48_p0, %s50_s28), %s7719_s26 }
  0x27   : > { %p7908_p3 = por %p708_p2, %p707_p1  ;;  %p713_p4 = scmp.ne.s32.totalorder %s7699_s2, %s7695_s29 }
  0x28   : > { %p52_p5 = scmp.ge.s32.totalorder %s9043_s28, 2  ;;  %p714_p6 = scmp.eq.s32.totalorder %s5990_s27, 3 }
  0x29   : > { %s8969_s9 = scalar_select %p7908_p3, 1, 0 }
  0x2a   : > { %p5993_p7 = scmp.ge.s32.totalorder %s7723_s1, 1  ;;  %p896_p8 = scmp.lt.s32.totalorder %s7723_s1, 5 }
  0x2b   : > { %8970 = sst [smem:[#allocation15_spill]] %s8969_s9  ;;  %s9045_s28 = smov (%p52_p5, %s9043_s28), 0 }
  0x2c   : > { %8971 = sst [smem:[#allocation16_spill]] %s9045_s28  ;;  %p7918_p9 = por %p714_p6, %p713_p4 }
  0x2d   : > { %p897_p10 = pnand %p5993_p7, %p896_p8  ;;  %s694_s0 = ssub.s32 %s7719_s26, %s9045_s28 }
  0x2e   : > { %s8972_s5 = scalar_select %p7918_p9, 1, 0 }
  0x2f   : > { %s697_s8 = sadd.s32 1, %s7703_s6  ;;  %p695_p11 = scmp.eq.s32.totalorder %s694_s0, 0 }
  0x30   : > { %8973 = sst [smem:[#allocation17_spill]] %s8972_s5  ;;  %900 = sbr.rel (%p897_p10) target bundleno = 4240 (0x1090), region = 120 }
  0x31   : > { %s7926_s4 = scalar_select %p695_p11, %s7703_s6, %s697_s8  }
  0x33   : > { %8974 = sst [smem:[#allocation18_spill]] %s7926_s4 }
  0x35   : > { %s8921_s27 = sand.u32 1, %s7699_s2   ;;  %p1048_p12 = scmp.lt.s32.totalorder %s7711_s7, 1 }
  0x36   : > { %s7932_s3 = sshll.u32 %s8921_s27, 3  ;;  %p1059_p13 = scmp.lt.s32.totalorder %s7707_s30, 1 }
  0x37   : > { %s7936_s5 = scalar_select %p1048_p12, %s7711_s7, 1 }
  0x38   : > { %s7939_s0 = scalar_select %p1059_p13, %s7707_s30, 1 }
  0x39   : > { %8975 = sst [smem:[#allocation19_spill]] %s7936_s5  ;;  %s5995_s8 = sshll.u32 %s7936_s5, 3 }
  0x3a   : > { %s5996_s27 = sshll.u32 %s7936_s5, 2  ;;  %s8976_s4 = sld [smem:[#allocation23_spill]] }
  0x3b   : > { %s8978_s25 = sld [smem:[#allocation24_spill]]  ;;  %s7258_s28 = smul.u32 768, %s7939_s0 }
  0x3c   : > { %s8983_s1 = sld [smem:[#allocation28_spill]]  ;;  %s6319_s5 = sshll.u32 %s7939_s0, 8 }
  0x3d   : > { %s8984_s7 = sld [smem:[#allocation30_spill]]  ;;  %s6320_s26 = sshll.u32 %s7939_s0, 9 }
  0x3e   : > { %s8985_s18 = sld [smem:[#allocation29_spill]] }
  0x3f   : > { %s8988_s11 = sld [smem:[#allocation33_spill]] }
  0x40   : > { %s7946_s6 = scalar_lea.vmem %s8976_s4, %s5995_s8  ;;  %s7259_s8 = smul.u32 12, %s7939_s0 }
  0x41   : > { %8977 = sst [smem:[#allocation20_spill]] %s7946_s6  ;;  %s7951_s9 = scalar_lea.vmem %s8978_s25, %s5996_s27 }
  0x42   : > { %8979 = sst [smem:[#allocation21_spill]] %s7951_s9  ;;  %s6318_s6 = sshll.u32 %s7939_s0, 6 }
  0x43   : > { %s7971_s27 = scalar_lea.vmem %s8983_s1, %s7258_s28  ;;  %s7976_s22 = scalar_lea.vmem %s8984_s7, %s6318_s6 }
  0x44   : > { %s7981_s19 = scalar_lea.vmem %s8985_s18, %s7259_s8  ;;  %s6002_s9 = sshll.u32 %s7939_s0, 2 }
  0x45   : > { %s8000_s8 = scalar_lea.vmem %s8988_s11, %s6319_s5  ;;  %s8989_s12 = sld [smem:[#allocation34_spill]] }
  0x46   : > { %s6005_s25 = sshll.u32 %s7939_s0, 3  ;;  %s8991_s13 = sld [smem:[#allocation35_spill]] }
  0x47   : > { %s8992_s14 = sld [smem:[#allocation36_spill]]  ;;  %s6322_s7 = sshll.u32 %s7939_s0, 7 }
  0x48   : > { %s8993_s15 = sld [smem:[#allocation37_spill]] }
  0x49   : > { %s8998_s11 = sld [smem:[#allocation42_spill]] }
  0x4a   : > { %s9000_s17 = sld [smem:[#allocation9_spill]] }
  0x4b   : > { %s8005_s4 = scalar_lea.vmem %s8989_s12, %s6002_s9  ;;  %s8999_s12 = sld [smem:[#allocation43_spill]] }
  0x4c   : > { %8990 = sst [smem:[#allocation22_spill]] %s8005_s4  ;;  %s8012_s24 = scalar_lea.vmem %s8991_s13, %s6320_s26 }
  0x4d   : > { %s8017_s21 = scalar_lea.vmem %s8992_s14, %s6005_s25  ;;  %s6010_s25 = sshll.u32 %s7939_s0, 1 }
  0x4e   : > { %s8022_s20 = scalar_lea.vmem %s8993_s15, %s6318_s6  ;;  %s8996_s4 = sld [smem:[#allocation40_spill]] }
  0x4f   : > { %s8997_s15 = sld [smem:[#allocation41_spill]]  ;;  %s8051_s29 = scalar_lea.vmem %s8998_s11, %s6322_s7 }
  0x50   : > { %s1047_s13 = scalar_lea.vmem [#allocation3], %s7932_s3  ;;  %p6013_p0 = scmp.ne.s32.totalorder %s9000_s17, 0 }
  0x51   : > { %s1136_s1 = scalar_lea.vmem %s8999_s12, %s7939_s0  ;;  %s9001_s14 = sld [smem:[#allocation20_spill]] (!%p6013_p0) }
  0x52   : > { %1141 = sbr.rel (%p6013_p0) target bundleno = 89 (0x59), region = 124 }
  0x54   : > { %s8041_s5 = scalar_lea.vmem %s8996_s4, %s6322_s7 }
  0x55   : > { %s8046_s23 = scalar_lea.vmem %s8997_s15, %s6010_s25 }
  0x57   : > { %v1142_v0 = vld [vmem:[%s9001_s14] sm:$0xff] }
  0x58   : > { %1143 = vst [vmem:[#allocation2] sm:$0xff] %v1142_v0 }
  0x59 PF: > { %v7334_v6 = vld [vmem:[%s7971_s27 + $0x38] sm:$0xff]   ;;  %v7725_v8 = vmov 0.0   ;;  %v7336_v9 = vld [vmem:[%s7971_s27 + $0x30] sm:$0xff]   ;;  %v7338_v11 = vld [vmem:[%s7971_s27 + $0x28] sm:$0xff]   ;;  %vm7726_vm0 = vmmov 0   ;;  %s9002_s4 = sld [smem:[#allocation26_spill]]  ;;  %s9010_s15 = scalar_lea.vmem %s8903_s10, %s7939_s0 }
  0x5a   : > { %v7335_v7 = vld [vmem:[%s7971_s27 + $0x78] sm:$0xff]   ;;  %6618 = vmatprep.subr.bf16.mxu0 %v7725_v8  ;;  %6638 = vmatprep.subr.bf16.mxu1 %v7725_v8  ;;  %v7337_v10 = vld [vmem:[%s7971_s27 + $0x70] sm:$0xff]   ;;  %v7339_v12 = vld [vmem:[%s7971_s27 + $0x68] sm:$0xff]   ;;  %s9004_s25 = sld [smem:[#allocation27_spill]]  ;;  %vm2546_vm3 = vcmask 261120   ;;  %vm2793_vm4 = vcmask 1043456  }
  0x5b   : > { %6619 = vmatpush3.bf16.msra.mxu0 %v7334_v6  ;;  %6639 = vmatpush3.bf16.msra.mxu1 %v7335_v7  ;;  %v7340_v13 = vld [vmem:[%s7971_s27 + $0x20] sm:$0xff]   ;;  %v7342_v15 = vld [vmem:[%s7971_s27 + $0x18] sm:$0xff]   ;;  %v7344_v17 = vld [vmem:[%s7971_s27 + $0x10] sm:$0xff]   ;;  %vm2737_vm6 = vcmask 64512   ;;  %s9008_s11 = sld [smem:[#allocation32_spill]] }
  0x5c   : > { %6620 = vmatprep.subr.bf16.mxu0 %v7725_v8  ;;  %6640 = vmatprep.subr.bf16.mxu1 %v7725_v8  ;;  %v7341_v14 = vld [vmem:[%s7971_s27 + $0x60] sm:$0xff]   ;;  %v7343_v16 = vld [vmem:[%s7971_s27 + $0x58] sm:$0xff]   ;;  %v7345_v18 = vld [vmem:[%s7971_s27 + $0x50] sm:$0xff]   ;;  %s9013_s17 = sld [smem:[#allocation19_spill]] }
  0x5d   : > { %v7346_v19 = vld [vmem:[%s7971_s27 + $0x8] sm:$0xff]   ;;  %v7348_v21 = vld [vmem:[%s7971_s27] sm:$0xff]   ;;  %6634 = vmatprep.mubr.msk.bf16.mxu0 %vm7726_vm0, %v7725_v8  ;;  %6654 = vmatprep.mubr.msk.bf16.mxu1 %vm7726_vm0, %v7725_v8  ;;  %v7350_v37 = vld [vmem:[%s7971_s27 + $0xb8] sm:$0xff]   ;;  %s9014_s28 = sld [smem:[#allocation25_spill]] }
  0x5e   : > { %v7347_v20 = vld [vmem:[%s7971_s27 + $0x48] sm:$0xff]   ;;  %v7349_v22 = vld [vmem:[%s7971_s27 + $0x40] sm:$0xff]   ;;  %v7351_v38 = vld [vmem:[%s7971_s27 + $0xf8] sm:$0xff]   ;;  %s9019_s30 = sld [smem:[#allocation39_spill]] }
  0x5f   : > { %v1144_v1 = vld [vmem:[#allocation2] sm:$0xff]  ;;  %6621 = vmatpush3.bf16.msra.mxu0 %v7336_v9  ;;  %6641 = vmatpush3.bf16.msra.mxu1 %v7337_v10  ;;  %s9003_s18 = scalar_lea.vmem %s9002_s4, %s7939_s0  ;;  %v7352_v40 = vld [vmem:[%s7971_s27 + $0xb0] sm:$0xff]   ;;  %v7354_v42 = vld [vmem:[%s7971_s27 + $0xa8] sm:$0xff]  }
  0x60   : > { %1376 = vadd.xlane.f32.xlu0 %v1144_v1  ;;  %6622 = vmatprep.subr.bf16.mxu0 %v7725_v8  ;;  %v6014_v32 = vld [vmem:[%s9003_s18] ss:$0 sm:$0xff]  ;;  %s9005_s2 = scalar_lea.vmem %s9004_s25, %s7939_s0  ;;  %v7353_v41 = vld [vmem:[%s7971_s27 + $0xf0] sm:$0xff]   ;;  %v7355_v43 = vld [vmem:[%s7971_s27 + $0xe8] sm:$0xff]   ;;  %s9016_s25 = scalar_lea.vmem %s8909_s16, %s7939_s0 }
  0x61   : > { %6642 = vmatprep.subr.bf16.mxu1 %v7725_v8  ;;  %v6015_v34 = vld [vmem:[%s9005_s2] ss:$0 sm:$0xff]  ;;  %v7358_v46 = vld [vmem:[%s7971_s27 + $0x98] sm:$0xff]   ;;  %v7360_v48 = vld [vmem:[%s7971_s27 + $0x90] sm:$0xff]   ;;  %s9009_s26 = scalar_lea.vmem %s9008_s11, %s7939_s0 }
  0x62   : > { %v7356_v44 = vld [vmem:[%s7971_s27 + $0xa0] sm:$0xff]   ;;  %v7359_v47 = vld [vmem:[%s7971_s27 + $0xd8] sm:$0xff]   ;;  %v7361_v49 = vld [vmem:[%s7971_s27 + $0xd0] sm:$0xff]  }
  0x63   : > { %6623 = vmatpush3.bf16.msra.mxu0 %v7338_v11  ;;  %6643 = vmatpush3.bf16.msra.mxu1 %v7339_v12  ;;  %v7357_v45 = vld [vmem:[%s7971_s27 + $0xe0] sm:$0xff]   ;;  %v7362_v50 = vld [vmem:[%s7971_s27 + $0x88] sm:$0xff]   ;;  %v7366_v54 = vld [vmem:[%s7971_s27 + $0x138] sm:$0xff]   ;;  %s9015_s7 = scalar_lea.vmem %s9014_s28, %s9013_s17 }
  0x64   : > { %6624 = vmatprep.subr.bf16.mxu0 %v7725_v8  ;;  %6644 = vmatprep.subr.bf16.mxu1 %v7725_v8  ;;  %v7363_v51 = vld [vmem:[%s7971_s27 + $0xc8] sm:$0xff]   ;;  %v7364_v52 = vld [vmem:[%s7971_s27 + $0x80] sm:$0xff]   ;;  %v7367_v55 = vld [vmem:[%s7971_s27 + $0x178] sm:$0xff]   ;;  %s9020_s9 = scalar_lea.vmem %s9019_s30, %s7939_s0 }
  0x65   : > { %v7365_v53 = vld [vmem:[%s7971_s27 + $0xc0] sm:$0xff]   ;;  %v7368_v56 = vld [vmem:[%s7971_s27 + $0x130] sm:$0xff]   ;;  %v7370_v58 = vld [vmem:[%s7971_s27 + $0x128] sm:$0xff]  }
  0x66   : > { %v7369_v57 = vld [vmem:[%s7971_s27 + $0x170] sm:$0xff]   ;;  %v7371_v59 = vld [vmem:[%s7971_s27 + $0x168] sm:$0xff]   ;;  %v7372_v60 = vld [vmem:[%s7971_s27 + $0x120] sm:$0xff]  }
  0x67   : > { %6625 = vmatpush3.bf16.msra.mxu0 %v7340_v13  ;;  %6645 = vmatpush3.bf16.msra.mxu1 %v7341_v14  ;;  %v7373_v61 = vld [vmem:[%s7971_s27 + $0x160] sm:$0xff]   ;;  %v7374_v62 = vld [vmem:[%s7971_s27 + $0x118] sm:$0xff]   ;;  %v7376_v0 = vld [vmem:[%s7971_s27 + $0x110] sm:$0xff]  }
  0x68   : > { %6626 = vmatprep.subr.bf16.mxu0 %v7725_v8  ;;  %6646 = vmatprep.subr.bf16.mxu1 %v7725_v8  ;;  %v7375_v63 = vld [vmem:[%s7971_s27 + $0x158] sm:$0xff]   ;;  %v7384_v9 = vld [vmem:[%s7971_s27 + $0x1b0] sm:$0xff]   ;;  %v7386_v11 = vld [vmem:[%s7971_s27 + $0x1a8] sm:$0xff]  }
  0x69   : > { %v7382_v6 = vld [vmem:[%s7971_s27 + $0x1b8] sm:$0xff]   ;;  %v7385_v10 = vld [vmem:[%s7971_s27 + $0x1f0] sm:$0xff]   ;;  %v7387_v12 = vld [vmem:[%s7971_s27 + $0x1e8] sm:$0xff]  }
  0x6a   : > { %v7383_v7 = vld [vmem:[%s7971_s27 + $0x1f8] sm:$0xff]   ;;  %v7388_v13 = vld [vmem:[%s7971_s27 + $0x1a0] sm:$0xff]  }
  0x6b   : > { %6627 = vmatpush3.bf16.msra.mxu0 %v7342_v15  ;;  %6647 = vmatpush3.bf16.msra.mxu1 %v7343_v16  ;;  %v7389_v14 = vld [vmem:[%s7971_s27 + $0x1e0] sm:$0xff]   ;;  %v7390_v15 = vld [vmem:[%s7971_s27 + $0x198] sm:$0xff]  }
  0x6c   : > { %6628 = vmatprep.subr.bf16.mxu0 %v7725_v8  ;;  %6648 = vmatprep.subr.bf16.mxu1 %v7725_v8  ;;  %v7391_v16 = vld [vmem:[%s7971_s27 + $0x1d8] sm:$0xff]  }
  0x6f   : > { %6629 = vmatpush3.bf16.msra.mxu0 %v7344_v17  ;;  %6649 = vmatpush3.bf16.msra.mxu1 %v7345_v18  ;;  %v7392_v17 = vld [vmem:[%s7971_s27 + $0x190] sm:$0xff]  }
  0x70   : > { %6630 = vmatprep.subr.bf16.mxu0 %v7725_v8  ;;  %6650 = vmatprep.subr.bf16.mxu1 %v7725_v8  ;;  %v7393_v18 = vld [vmem:[%s7971_s27 + $0x1d0] sm:$0xff]  }
  0x73   : > { %6631 = vmatpush3.bf16.msra.mxu0 %v7346_v19  ;;  %6651 = vmatpush3.bf16.msra.mxu1 %v7347_v20  ;;  %v7394_v19 = vld [vmem:[%s7971_s27 + $0x188] sm:$0xff]  }
  0x74   : > { %6632 = vmatprep.subr.bf16.mxu0 %v7725_v8  ;;  %6652 = vmatprep.subr.bf16.mxu1 %v7725_v8  ;;  %v7395_v20 = vld [vmem:[%s7971_s27 + $0x1c8] sm:$0xff]  }
  0x77   : > { %6633 = vmatpush3.bf16.msra.mxu0 %v7348_v21  ;;  %6653 = vmatpush3.bf16.msra.mxu1 %v7349_v22  ;;  %v7396_v21 = vld [vmem:[%s7971_s27 + $0x180] sm:$0xff]  }
  0x78   : > { %6658 = vmatprep.subr.bf16.mxu0 %v7725_v8  ;;  %6678 = vmatprep.subr.bf16.mxu1 %v7725_v8  ;;  %v7397_v22 = vld [vmem:[%s7971_s27 + $0x1c0] sm:$0xff]  }
  0xe9   : > { %v1377_v2 = vpop.xlane.xlu0 %1376 }
  0xea   : > { %v1379_v3 = vmul.f32 0.0078125, %v1377_v2  ;;  %v7378_v2 = vld [vmem:[%s7971_s27 + $0x108] sm:$0xff]  }
  0xec   : > { %v8060_v4 = vsub.f32 %v1144_v1, %v1379_v3  ;;  %v7377_v1 = vld [vmem:[%s7971_s27 + $0x150] sm:$0xff]   ;;  %v7379_v3 = vld [vmem:[%s7971_s27 + $0x148] sm:$0xff]  }
  0xee   : > { %v1381_v5 = vmul.f32 %v8060_v4, %v8060_v4 }
  0xf0   : > { %1382 = vadd.xlane.f32.xlu0 %v1381_v5  ;;  %v7381_v5 = vld [vmem:[%s7971_s27 + $0x140] sm:$0xff]  }
 0x179   : > { %v1383_v23 = vpop.xlane.xlu0 %1382 }
 0x17a   : > { %v1384_v24 = vmul.f32 0.007874016, %v1383_v23  ;;  %v7398_v23 = vld [vmem:[%s7971_s27 + $0x238] sm:$0xff]  }
 0x17c   : > { %7582 = vrsqrt.f32 %v1384_v24  ;;  %vm1387_vm1 = vcmp.eq.f32.partialorder %v1384_v24, inf  ;;  %v1390_v27 = vand.u32 2147483648, %v1384_v24  ;;  %vm1389_vm2 = vcmp.eq.f32.partialorder %v1384_v24, 0.0 }
 0x189   : > { %v7583_v25 = vpop.eup %7582 }
 0x18a   : > { %v1386_v26 = vmul.f32 %v7583_v25, %v1384_v24  ;;  %v7400_v25 = vld [vmem:[%s7971_s27 + $0x230] sm:$0xff]  }
 0x18c   : > { %v1388_v28 = vsel %vm1387_vm1, %v1384_v24, %v1386_v26  ;;  %v7399_v24 = vld [vmem:[%s7971_s27 + $0x278] sm:$0xff]   ;;  %v7401_v26 = vld [vmem:[%s7971_s27 + $0x270] sm:$0xff]  }
 0x18d   : > { %v1391_v29 = vsel %vm1389_vm2, %v1390_v27, %v1388_v28  ;;  %v7402_v27 = vld [vmem:[%s7971_s27 + $0x228] sm:$0xff]  }
 0x18e   : > { %v1392_v30 = vadd.f32 1e-06, %v1391_v29  ;;  %v7403_v28 = vld [vmem:[%s7971_s27 + $0x268] sm:$0xff]   ;;  %v7404_v29 = vld [vmem:[%s7971_s27 + $0x220] sm:$0xff]  }
 0x190   : > { %7584 = vrcp.f32 %v1392_v30  ;;  %v7405_v30 = vld [vmem:[%s7971_s27 + $0x260] sm:$0xff]  }
 0x19d   : > { %v7585_v31 = vpop.eup %7584 }
 0x19e   : > { %v1394_v33 = vmul.f32 %v7585_v31, %v8060_v4  ;;  %v7380_v4 = vld [vmem:[%s7971_s27 + $0x100] sm:$0xff]   ;;  %v7406_v31 = vld [vmem:[%s7971_s27 + $0x218] sm:$0xff]  }
 0x1a0   : > { %v1401_v35 = vmul.f32 %v6014_v32, %v1394_v33  ;;  %v7407_v32 = vld [vmem:[%s7971_s27 + $0x258] sm:$0xff]   ;;  %v7408_v33 = vld [vmem:[%s7971_s27 + $0x210] sm:$0xff]  }
 0x1a2   : > { %v1408_v36 = vadd.f32 %v6015_v34, %v1401_v35  ;;  %v7409_v34 = vld [vmem:[%s7971_s27 + $0x250] sm:$0xff]   ;;  %v7410_v35 = vld [vmem:[%s7971_s27 + $0x208] sm:$0xff]  }
 0x1a4   : > { %v8115_v39 = vpack.c.bf16 %v1408_v36, %v1408_v36  ;;  %v7411_v36 = vld [vmem:[%s7971_s27 + $0x248] sm:$0xff]  }
 0x1a6   : > { %6635 = vmatmul.mubr.bf16.vlgmr.msra.gmra.mxu0 %v8115_v39  ;;  %6655 = vmatmul.mubr.bf16.vlgmr.msra.gmra.mxu1 %v8115_v39 }
 0x1a7   : > { %6659 = vmatpush3.bf16.msra.mxu0 %v7350_v37  ;;  %6679 = vmatpush3.bf16.msra.mxu1 %v7351_v38  ;;  %v7412_v37 = vld [vmem:[%s7971_s27 + $0x200] sm:$0xff]  }
 0x1a8   : > { %6660 = vmatprep.subr.bf16.mxu0 %v7725_v8  ;;  %6680 = vmatprep.subr.bf16.mxu1 %v7725_v8  ;;  %v7413_v38 = vld [vmem:[%s7971_s27 + $0x240] sm:$0xff]  }
 0x1a9   : > { %6674 = vmatprep.mubr.msk.bf16.mxu0 %vm7726_vm0, %v7725_v8  ;;  %6694 = vmatprep.mubr.msk.bf16.mxu1 %vm7726_vm0, %v7725_v8 }
 0x1ab   : > { %6661 = vmatpush3.bf16.msra.mxu0 %v7352_v40  ;;  %6681 = vmatpush3.bf16.msra.mxu1 %v7353_v41  ;;  %v7414_v40 = vld [vmem:[%s7971_s27 + $0x2b8] sm:$0xff]  }
 0x1ac   : > { %6662 = vmatprep.subr.bf16.mxu0 %v7725_v8  ;;  %6682 = vmatprep.subr.bf16.mxu1 %v7725_v8  ;;  %v7415_v41 = vld [vmem:[%s7971_s27 + $0x2f8] sm:$0xff]  }
 0x1af   : > { %6663 = vmatpush3.bf16.msra.mxu0 %v7354_v42  ;;  %6683 = vmatpush3.bf16.msra.mxu1 %v7355_v43  ;;  %v7416_v42 = vld [vmem:[%s7971_s27 + $0x2b0] sm:$0xff]  }
 0x1b0   : > { %6664 = vmatprep.subr.bf16.mxu0 %v7725_v8  ;;  %6684 = vmatprep.subr.bf16.mxu1 %v7725_v8  ;;  %v7417_v43 = vld [vmem:[%s7971_s27 + $0x2f0] sm:$0xff]  }
 0x1b3   : > { %6665 = vmatpush3.bf16.msra.mxu0 %v7356_v44  ;;  %6685 = vmatpush3.bf16.msra.mxu1 %v7357_v45  ;;  %v7418_v44 = vld [vmem:[%s7971_s27 + $0x2a8] sm:$0xff]  }
 0x1b4   : > { %6666 = vmatprep.subr.bf16.mxu0 %v7725_v8  ;;  %6686 = vmatprep.subr.bf16.mxu1 %v7725_v8  ;;  %v7419_v45 = vld [vmem:[%s7971_s27 + $0x2e8] sm:$0xff]  }
 0x1b7   : > { %6667 = vmatpush3.bf16.msra.mxu0 %v7358_v46  ;;  %6687 = vmatpush3.bf16.msra.mxu1 %v7359_v47  ;;  %v7420_v46 = vld [vmem:[%s7971_s27 + $0x2a0] sm:$0xff]  }
 0x1b8   : > { %6668 = vmatprep.subr.bf16.mxu0 %v7725_v8  ;;  %6688 = vmatprep.subr.bf16.mxu1 %v7725_v8  ;;  %v7421_v47 = vld [vmem:[%s7971_s27 + $0x2e0] sm:$0xff]  }
 0x1bb   : > { %6669 = vmatpush3.bf16.msra.mxu0 %v7360_v48  ;;  %6689 = vmatpush3.bf16.msra.mxu1 %v7361_v49  ;;  %v7422_v48 = vld [vmem:[%s7971_s27 + $0x298] sm:$0xff]  }
 0x1bc   : > { %6670 = vmatprep.subr.bf16.mxu0 %v7725_v8  ;;  %6690 = vmatprep.subr.bf16.mxu1 %v7725_v8  ;;  %v7423_v49 = vld [vmem:[%s7971_s27 + $0x2d8] sm:$0xff]  }
 0x1bf   : > { %6671 = vmatpush3.bf16.msra.mxu0 %v7362_v50  ;;  %6691 = vmatpush3.bf16.msra.mxu1 %v7363_v51  ;;  %v7424_v50 = vld [vmem:[%s7971_s27 + $0x290] sm:$0xff]  }
 0x1c0   : > { %6672 = vmatprep.subr.bf16.mxu0 %v7725_v8  ;;  %6692 = vmatprep.subr.bf16.mxu1 %v7725_v8  ;;  %v7425_v51 = vld [vmem:[%s7971_s27 + $0x2d0] sm:$0xff]  }
 0x1c3   : > { %6673 = vmatpush3.bf16.msra.mxu0 %v7364_v52  ;;  %6693 = vmatpush3.bf16.msra.mxu1 %v7365_v53  ;;  %v7426_v52 = vld [vmem:[%s7971_s27 + $0x288] sm:$0xff]  }
 0x1c4   : > { %6698 = vmatprep.subr.bf16.mxu0 %v7725_v8  ;;  %6718 = vmatprep.subr.bf16.mxu1 %v7725_v8  ;;  %v7427_v53 = vld [vmem:[%s7971_s27 + $0x2c8] sm:$0xff]  }
 0x1c6   : > { %6675 = vmatmul.mubr.bf16.vlgmr.msra.gmra.mxu0 %v8115_v39  ;;  %6695 = vmatmul.mubr.bf16.vlgmr.msra.gmra.mxu1 %v8115_v39 }
 0x1c7   : > { %6699 = vmatpush3.bf16.msra.mxu0 %v7366_v54  ;;  %6719 = vmatpush3.bf16.msra.mxu1 %v7367_v55  ;;  %v7428_v54 = vld [vmem:[%s7971_s27 + $0x280] sm:$0xff]  }
 0x1c8   : > { %6700 = vmatprep.subr.bf16.mxu0 %v7725_v8  ;;  %6720 = vmatprep.subr.bf16.mxu1 %v7725_v8  ;;  %v7429_v55 = vld [vmem:[%s7971_s27 + $0x2c0] sm:$0xff]   ;;  %s9017_s27 = sld [smem:[#allocation38_spill]] }
 0x1c9   : > { %6714 = vmatprep.mubr.msk.bf16.mxu0 %vm7726_vm0, %v7725_v8  ;;  %6734 = vmatprep.mubr.msk.bf16.mxu1 %vm7726_vm0, %v7725_v8 }
 0x1cb   : > { %6701 = vmatpush3.bf16.msra.mxu0 %v7368_v56  ;;  %6721 = vmatpush3.bf16.msra.mxu1 %v7369_v57 }
 0x1cc   : > { %6702 = vmatprep.subr.bf16.mxu0 %v7725_v8  ;;  %6722 = vmatprep.subr.bf16.mxu1 %v7725_v8 }
 0x1cf   : > { %6703 = vmatpush3.bf16.msra.mxu0 %v7370_v58  ;;  %6723 = vmatpush3.bf16.msra.mxu1 %v7371_v59 }
 0x1d0   : > { %6704 = vmatprep.subr.bf16.mxu0 %v7725_v8  ;;  %6724 = vmatprep.subr.bf16.mxu1 %v7725_v8 }
 0x1d3   : > { %6705 = vmatpush3.bf16.msra.mxu0 %v7372_v60  ;;  %6725 = vmatpush3.bf16.msra.mxu1 %v7373_v61 }
 0x1d4   : > { %6706 = vmatprep.subr.bf16.mxu0 %v7725_v8  ;;  %6726 = vmatprep.subr.bf16.mxu1 %v7725_v8 }
 0x1d7   : > { %6707 = vmatpush3.bf16.msra.mxu0 %v7374_v62  ;;  %6727 = vmatpush3.bf16.msra.mxu1 %v7375_v63 }
 0x1d8   : > { %6708 = vmatprep.subr.bf16.mxu0 %v7725_v8  ;;  %6728 = vmatprep.subr.bf16.mxu1 %v7725_v8 }
 0x1db   : > { %6709 = vmatpush3.bf16.msra.mxu0 %v7376_v0  ;;  %6729 = vmatpush3.bf16.msra.mxu1 %v7377_v1 }
 0x1dc   : > { %6710 = vmatprep.subr.bf16.mxu0 %v7725_v8  ;;  %6730 = vmatprep.subr.bf16.mxu1 %v7725_v8 }
 0x1df   : > { %6711 = vmatpush3.bf16.msra.mxu0 %v7378_v2  ;;  %6731 = vmatpush3.bf16.msra.mxu1 %v7379_v3 }
 0x1e0   : > { %6712 = vmatprep.subr.bf16.mxu0 %v7725_v8  ;;  %6732 = vmatprep.subr.bf16.mxu1 %v7725_v8 }
 0x1e3   : > { %6713 = vmatpush3.bf16.msra.mxu0 %v7380_v4  ;;  %6733 = vmatpush3.bf16.msra.mxu1 %v7381_v5 }
 0x1e4   : > { %6738 = vmatprep.subr.bf16.mxu0 %v7725_v8  ;;  %6758 = vmatprep.subr.bf16.mxu1 %v7725_v8 }
 0x1e6   : > { %6715 = vmatmul.mubr.bf16.vlgmr.msra.gmra.mxu0 %v8115_v39  ;;  %6735 = vmatmul.mubr.bf16.vlgmr.msra.gmra.mxu1 %v8115_v39 }
 0x1e7   : > { %6739 = vmatpush3.bf16.msra.mxu0 %v7382_v6  ;;  %6759 = vmatpush3.bf16.msra.mxu1 %v7383_v7  ;;  %v6020_v7 = vld [vmem:[%s7981_s19 + $0x4] ss:$0 sm:$0xff] }
 0x1e8   : > { %6740 = vmatprep.subr.bf16.mxu0 %v7725_v8  ;;  %6760 = vmatprep.subr.bf16.mxu1 %v7725_v8 }
 0x1e9   : > { %6754 = vmatprep.mubr.msk.bf16.mxu0 %vm7726_vm0, %v7725_v8  ;;  %6774 = vmatprep.mubr.msk.bf16.mxu1 %vm7726_vm0, %v7725_v8 }
 0x1eb   : > { %6741 = vmatpush3.bf16.msra.mxu0 %v7384_v9  ;;  %6761 = vmatpush3.bf16.msra.mxu1 %v7385_v10  ;;  %v6021_v9 = vld [vmem:[%s7981_s19 + $0x5] ss:$0 sm:$0xff] }
 0x1ec   : > { %6742 = vmatprep.subr.bf16.mxu0 %v7725_v8  ;;  %6762 = vmatprep.subr.bf16.mxu1 %v7725_v8 }
 0x1ef   : > { %6743 = vmatpush3.bf16.msra.mxu0 %v7386_v11  ;;  %6763 = vmatpush3.bf16.msra.mxu1 %v7387_v12 }
 0x1f0   : > { %6744 = vmatprep.subr.bf16.mxu0 %v7725_v8  ;;  %6764 = vmatprep.subr.bf16.mxu1 %v7725_v8 }
 0x1f3   : > { %6745 = vmatpush3.bf16.msra.mxu0 %v7388_v13  ;;  %6765 = vmatpush3.bf16.msra.mxu1 %v7389_v14 }
 0x1f4   : > { %6746 = vmatprep.subr.bf16.mxu0 %v7725_v8  ;;  %6766 = vmatprep.subr.bf16.mxu1 %v7725_v8 }
 0x1f7   : > { %6747 = vmatpush3.bf16.msra.mxu0 %v7390_v15  ;;  %6767 = vmatpush3.bf16.msra.mxu1 %v7391_v16 }
 0x1f8   : > { %6748 = vmatprep.subr.bf16.mxu0 %v7725_v8  ;;  %6768 = vmatprep.subr.bf16.mxu1 %v7725_v8 }
 0x1fb   : > { %6749 = vmatpush3.bf16.msra.mxu0 %v7392_v17  ;;  %6769 = vmatpush3.bf16.msra.mxu1 %v7393_v18  ;;  %v6016_v18 = vld [vmem:[%s7981_s19] ss:$0 sm:$0xff] }
 0x1fc   : > { %6750 = vmatprep.subr.bf16.mxu0 %v7725_v8  ;;  %6770 = vmatprep.subr.bf16.mxu1 %v7725_v8 }
 0x1ff   : > { %6751 = vmatpush3.bf16.msra.mxu0 %v7394_v19  ;;  %6771 = vmatpush3.bf16.msra.mxu1 %v7395_v20  ;;  %v6017_v19 = vld [vmem:[%s7981_s19 + $0x1] ss:$0 sm:$0xff] }
 0x200   : > { %6752 = vmatprep.subr.bf16.mxu0 %v7725_v8  ;;  %6772 = vmatprep.subr.bf16.mxu1 %v7725_v8 }
 0x203   : > { %6753 = vmatpush3.bf16.msra.mxu0 %v7396_v21  ;;  %6773 = vmatpush3.bf16.msra.mxu1 %v7397_v22 }
 0x204   : > { %6778 = vmatprep.subr.bf16.mxu0 %v7725_v8  ;;  %6798 = vmatprep.subr.bf16.mxu1 %v7725_v8 }
 0x206   : > { %6755 = vmatmul.mubr.bf16.vlgmr.msra.gmra.mxu0 %v8115_v39  ;;  %6775 = vmatmul.mubr.bf16.vlgmr.msra.gmra.mxu1 %v8115_v39 }
 0x207   : > { %6779 = vmatpush3.bf16.msra.mxu0 %v7398_v23  ;;  %6799 = vmatpush3.bf16.msra.mxu1 %v7399_v24 }
 0x208   : > { %6780 = vmatprep.subr.bf16.mxu0 %v7725_v8  ;;  %6800 = vmatprep.subr.bf16.mxu1 %v7725_v8 }
 0x209   : > { %6794 = vmatprep.mubr.msk.bf16.mxu0 %vm7726_vm0, %v7725_v8  ;;  %6814 = vmatprep.mubr.msk.bf16.mxu1 %vm7726_vm0, %v7725_v8 }
 0x20b   : > { %6781 = vmatpush3.bf16.msra.mxu0 %v7400_v25  ;;  %6801 = vmatpush3.bf16.msra.mxu1 %v7401_v26 }
 0x20c   : > { %6782 = vmatprep.subr.bf16.mxu0 %v7725_v8  ;;  %6802 = vmatprep.subr.bf16.mxu1 %v7725_v8 }
 0x20f   : > { %6783 = vmatpush3.bf16.msra.mxu0 %v7402_v27  ;;  %6803 = vmatpush3.bf16.msra.mxu1 %v7403_v28 }
 0x210   : > { %6784 = vmatprep.subr.bf16.mxu0 %v7725_v8  ;;  %6804 = vmatprep.subr.bf16.mxu1 %v7725_v8 }
 0x213   : > { %6785 = vmatpush3.bf16.msra.mxu0 %v7404_v29  ;;  %6805 = vmatpush3.bf16.msra.mxu1 %v7405_v30  ;;  %v6022_v30 = vld [vmem:[%s7981_s19 + $0x6] ss:$0 sm:$0xff] }
 0x214   : > { %6786 = vmatprep.subr.bf16.mxu0 %v7725_v8  ;;  %6806 = vmatprep.subr.bf16.mxu1 %v7725_v8 }
 0x217   : > { %6787 = vmatpush3.bf16.msra.mxu0 %v7406_v31  ;;  %6807 = vmatpush3.bf16.msra.mxu1 %v7407_v32  ;;  %v6023_v31 = vld [vmem:[%s7981_s19 + $0x7] ss:$0 sm:$0xff] }
 0x218   : > { %6788 = vmatprep.subr.bf16.mxu0 %v7725_v8  ;;  %6808 = vmatprep.subr.bf16.mxu1 %v7725_v8 }
 0x21b   : > { %6789 = vmatpush3.bf16.msra.mxu0 %v7408_v33  ;;  %6809 = vmatpush3.bf16.msra.mxu1 %v7409_v34 }
 0x21c   : > { %6790 = vmatprep.subr.bf16.mxu0 %v7725_v8  ;;  %6810 = vmatprep.subr.bf16.mxu1 %v7725_v8 }
 0x21f   : > { %6791 = vmatpush3.bf16.msra.mxu0 %v7410_v35  ;;  %6811 = vmatpush3.bf16.msra.mxu1 %v7411_v36 }
 0x220   : > { %6792 = vmatprep.subr.bf16.mxu0 %v7725_v8  ;;  %6812 = vmatprep.subr.bf16.mxu1 %v7725_v8 }
 0x223   : > { %6793 = vmatpush3.bf16.msra.mxu0 %v7412_v37  ;;  %6813 = vmatpush3.bf16.msra.mxu1 %v7413_v38 }
 0x224   : > { %6818 = vmatprep.subr.bf16.mxu0 %v7725_v8  ;;  %6838 = vmatprep.subr.bf16.mxu1 %v7725_v8 }
 0x226   : > { %6795 = vmatmul.mubr.bf16.vlgmr.msra.gmra.mxu0 %v8115_v39  ;;  %6815 = vmatmul.mubr.bf16.vlgmr.msra.gmra.mxu1 %v8115_v39 }
 0x227   : > { %6819 = vmatpush3.bf16.msra.mxu0 %v7414_v40  ;;  %6839 = vmatpush3.bf16.msra.mxu1 %v7415_v41  ;;  %v6018_v41 = vld [vmem:[%s7981_s19 + $0x2] ss:$0 sm:$0xff] }
 0x228   : > { %6820 = vmatprep.subr.bf16.mxu0 %v7725_v8  ;;  %6840 = vmatprep.subr.bf16.mxu1 %v7725_v8 }
 0x229   : > { %6834 = vmatprep.mubr.msk.bf16.mxu0 %vm7726_vm0, %v7725_v8  ;;  %6854 = vmatprep.mubr.msk.bf16.mxu1 %vm7726_vm0, %v7725_v8 }
 0x22b   : > { %6821 = vmatpush3.bf16.msra.mxu0 %v7416_v42  ;;  %6841 = vmatpush3.bf16.msra.mxu1 %v7417_v43  ;;  %v6019_v42 = vld [vmem:[%s7981_s19 + $0x3] ss:$0 sm:$0xff] }
 0x22c   : > { %6822 = vmatprep.subr.bf16.mxu0 %v7725_v8  ;;  %6842 = vmatprep.subr.bf16.mxu1 %v7725_v8 }
 0x22f   : > { %6823 = vmatpush3.bf16.msra.mxu0 %v7418_v44  ;;  %6843 = vmatpush3.bf16.msra.mxu1 %v7419_v45 }
 0x230   : > { %6824 = vmatprep.subr.bf16.mxu0 %v7725_v8  ;;  %6844 = vmatprep.subr.bf16.mxu1 %v7725_v8 }
 0x233   : > { %6825 = vmatpush3.bf16.msra.mxu0 %v7420_v46  ;;  %6845 = vmatpush3.bf16.msra.mxu1 %v7421_v47 }
 0x234   : > { %6826 = vmatprep.subr.bf16.mxu0 %v7725_v8  ;;  %6846 = vmatprep.subr.bf16.mxu1 %v7725_v8 }
 0x237   : > { %6827 = vmatpush3.bf16.msra.mxu0 %v7422_v48  ;;  %6847 = vmatpush3.bf16.msra.mxu1 %v7423_v49 }
 0x238   : > { %6828 = vmatprep.subr.bf16.mxu0 %v7725_v8  ;;  %6848 = vmatprep.subr.bf16.mxu1 %v7725_v8 }
 0x23b   : > { %6829 = vmatpush3.bf16.msra.mxu0 %v7424_v50  ;;  %6849 = vmatpush3.bf16.msra.mxu1 %v7425_v51 }
 0x23c   : > { %6830 = vmatprep.subr.bf16.mxu0 %v7725_v8  ;;  %6850 = vmatprep.subr.bf16.mxu1 %v7725_v8 }
 0x23f   : > { %6831 = vmatpush3.bf16.msra.mxu0 %v7426_v52  ;;  %6851 = vmatpush3.bf16.msra.mxu1 %v7427_v53  ;;  %v6024_v53 = vld [vmem:[%s7981_s19 + $0x8] ss:$0 sm:$0xff] }
 0x240   : > { %6832 = vmatprep.subr.bf16.mxu0 %v7725_v8  ;;  %6852 = vmatprep.subr.bf16.mxu1 %v7725_v8 }
 0x243   : > { %6833 = vmatpush3.bf16.msra.mxu0 %v7428_v54  ;;  %6853 = vmatpush3.bf16.msra.mxu1 %v7429_v55  ;;  %v6025_v54 = vld [vmem:[%s7981_s19 + $0x9] ss:$0 sm:$0xff] }
 0x244   : > { %6858 = vmatprep.subr.bf16.mxu0 %v7725_v8  ;;  %6864 = vmatprep.subr.bf16.mxu1 %v7725_v8 }
 0x246   : > { %6835 = vmatmul.mubr.bf16.vlgmr.msra.gmra.mxu0 %v8115_v39  ;;  %6855 = vmatmul.mubr.bf16.vlgmr.msra.gmra.mxu1 %v8115_v39 }
 0x247   : > { %6860 = vmatprep.mubr.msk.bf16.mxu0 %vm7726_vm0, %v7725_v8  ;;  %6866 = vmatprep.mubr.msk.bf16.mxu1 %vm7726_vm0, %v7725_v8 }
 0x266   : > { %v1564_v56 = vpop.f32.mrf.mxu0  ;;  %v1652_v57 = vpop.f32.mrf.mxu1 }
 0x267   : > { %v1565_v26 = vadd.f32 %v6016_v18, %v1564_v56  ;;  %v1653_v27 = vadd.f32 %v6017_v19, %v1652_v57 }
 0x268   : > { %v6636_v58 = vpop.f32.mrf.mxu0  ;;  %v6656_v59 = vpop.f32.mrf.mxu1 }
 0x269   : > { %v2538_v28 = vpack.c.bf16 %v1565_v26, %v1565_v26  ;;  %v2539_v29 = vpack.c.bf16 %v1653_v27, %v1653_v27 }
 0x26a   : > { %v1567_v60 = vpop.f32.mrf.mxu0  ;;  %v1655_v61 = vpop.f32.mrf.mxu1 }
 0x26c   : > { %v6637_v62 = vpop.f32.mrf.mxu0  ;;  %v6657_v63 = vpop.f32.mrf.mxu1 }
 0x286   : > { %v1740_v0 = vpop.f32.mrf.mxu0  ;;  %v1828_v1 = vpop.f32.mrf.mxu1 }
 0x287   : > { %v1741_v49 = vadd.f32 %v6018_v41, %v1740_v0  ;;  %v1829_v50 = vadd.f32 %v6019_v42, %v1828_v1 }
 0x288   : > { %v6676_v2 = vpop.f32.mrf.mxu0  ;;  %v6696_v39 = vpop.f32.mrf.mxu1 }
 0x289   : > { %v2540_v51 = vpack.c.bf16 %v1741_v49, %v1741_v49  ;;  %v2541_v52 = vpack.c.bf16 %v1829_v50, %v1829_v50 }
 0x28a   : > { %v1743_v3 = vpop.f32.mrf.mxu0  ;;  %v1831_v4 = vpop.f32.mrf.mxu1 }
 0x28c   : > { %v6677_v5 = vpop.f32.mrf.mxu0  ;;  %v6697_v6 = vpop.f32.mrf.mxu1 }
 0x2a6   : > { %v1916_v10 = vpop.f32.mrf.mxu0  ;;  %v2004_v11 = vpop.f32.mrf.mxu1 }
 0x2a7   : > { %v1917_v12 = vadd.f32 %v6020_v7, %v1916_v10  ;;  %v2005_v13 = vadd.f32 %v6021_v9, %v2004_v11 }
 0x2a8   : > { %v6716_v14 = vpop.f32.mrf.mxu0  ;;  %v6736_v15 = vpop.f32.mrf.mxu1 }
 0x2a9   : > { %v2542_v16 = vpack.c.bf16 %v1917_v12, %v1917_v12  ;;  %v2543_v17 = vpack.c.bf16 %v2005_v13, %v2005_v13  ;;  %v1146_v13 = vlaneseq }
 0x2aa   : > { %v1919_v20 = vpop.f32.mrf.mxu0  ;;  %v2007_v21 = vpop.f32.mrf.mxu1 }
 0x2ab   : > { %v2551_v22 = vsel %vm2546_vm3, %v2542_v16, 0  ;;  %v2597_v23 = vsel %vm2546_vm3, %v2543_v17, 0  ;;  %v8349_v14 = vshrl.u32 %v1146_v13, 7  ;;  %v1149_v15 = vand.u32 127, %v1146_v13 }
 0x2ac   : > { %v6717_v24 = vpop.f32.mrf.mxu0  ;;  %v6737_v25 = vpop.f32.mrf.mxu1  ;;  %6859 = vmatpush3.bf16.xpose.msra.mxu0 %v2551_v22  ;;  %6865 = vmatpush3.bf16.xpose.msra.mxu1 %v2597_v23 }
 0x2ad   : > { %6870 = vmatprep.subr.bf16.mxu0 %v7725_v8  ;;  %6876 = vmatprep.subr.bf16.mxu1 %v7725_v8  ;;  %vm1150_vm5 = vcmp.ge.s32.totalorder %v8349_v14, %v1149_v15 }
 0x2b3   : > { %6861 = vmatmul.mubr.msk.bf16.vlgmr.msra.gmra.mxu0 %vm2546_vm3, %v2538_v28  ;;  %6867 = vmatmul.mubr.msk.bf16.vlgmr.msra.gmra.mxu1 %vm2546_vm3, %v2539_v29 }
 0x2b4   : > { %6872 = vmatprep.mubr.msk.bf16.mxu0 %vm7726_vm0, %v7725_v8  ;;  %6878 = vmatprep.mubr.msk.bf16.mxu1 %vm7726_vm0, %v7725_v8 }
 0x2c6   : > { %v2092_v32 = vpop.f32.mrf.mxu0  ;;  %v2180_v33 = vpop.f32.mrf.mxu1 }
 0x2c7   : > { %v2093_v34 = vadd.f32 %v6022_v30, %v2092_v32  ;;  %v2181_v35 = vadd.f32 %v6023_v31, %v2180_v33 }
 0x2c8   : > { %v6756_v36 = vpop.f32.mrf.mxu0  ;;  %v6776_v37 = vpop.f32.mrf.mxu1 }
 0x2c9   : > { %v2544_v38 = vpack.c.bf16 %v2093_v34, %v2093_v34  ;;  %v2545_v40 = vpack.c.bf16 %v2181_v35, %v2181_v35 }
 0x2ca   : > { %v2095_v43 = vpop.f32.mrf.mxu0  ;;  %v2183_v44 = vpop.f32.mrf.mxu1 }
 0x2cb   : > { %v2643_v45 = vsel %vm2546_vm3, %v2544_v38, 0  ;;  %v2689_v46 = vsel %vm2546_vm3, %v2545_v40, 0 }
 0x2cc   : > { %v6757_v47 = vpop.f32.mrf.mxu0  ;;  %v6777_v48 = vpop.f32.mrf.mxu1  ;;  %6871 = vmatpush3.bf16.xpose.msra.mxu0 %v2643_v45  ;;  %6877 = vmatpush3.bf16.xpose.msra.mxu1 %v2689_v46 }
 0x2cd   : > { %6882 = vmatprep.subr.bf16.mxu0 %v7725_v8  ;;  %6888 = vmatprep.subr.bf16.mxu1 %v7725_v8 }
 0x2d3   : > { %6873 = vmatmul.mubr.msk.bf16.vlgmr.msra.gmra.mxu0 %vm2546_vm3, %v2540_v51  ;;  %6879 = vmatmul.mubr.msk.bf16.vlgmr.msra.gmra.mxu1 %vm2546_vm3, %v2541_v52 }
 0x2d4   : > { %6884 = vmatprep.mubr.msk.bf16.mxu0 %vm7726_vm0, %v7725_v8  ;;  %6890 = vmatprep.mubr.msk.bf16.mxu1 %vm7726_vm0, %v7725_v8 }
 0x2e6   : > { %v2268_v55 = vpop.f32.mrf.mxu0  ;;  %v2356_v56 = vpop.f32.mrf.mxu1 }
 0x2e7   : > { %v2269_v57 = vadd.f32 %v6024_v53, %v2268_v55  ;;  %v2357_v58 = vadd.f32 %v6025_v54, %v2356_v56 }
 0x2e8   : > { %v6796_v59 = vpop.f32.mrf.mxu0  ;;  %v6816_v60 = vpop.f32.mrf.mxu1 }
 0x2e9   : > { %v2786_v61 = vpack.c.bf16 %v2269_v57, %v2269_v57  ;;  %v2787_v62 = vpack.c.bf16 %v2357_v58, %v2357_v58 }
 0x2ea   : > { %v2271_v63 = vpop.f32.mrf.mxu0  ;;  %v2359_v0 = vpop.f32.mrf.mxu1 }
 0x2eb   : > { %v2795_v1 = vsel %vm2793_vm4, %v2786_v61, 0  ;;  %v2841_v2 = vsel %vm2793_vm4, %v2787_v62, 0  ;;  %v6026_v63 = vld [vmem:[%s7981_s19 + $0xa] ss:$0 sm:$0xff] }
 0x2ec   : > { %v6797_v39 = vpop.f32.mrf.mxu0  ;;  %v6817_v3 = vpop.f32.mrf.mxu1  ;;  %6883 = vmatpush3.bf16.msra.mxu0 %v2795_v1  ;;  %6889 = vmatpush3.bf16.msra.mxu1 %v2841_v2  ;;  %v6027_v1 = vld [vmem:[%s7981_s19 + $0xb] ss:$0 sm:$0xff]  ;;  %s9006_s19 = sld [smem:[#allocation31_spill]] }
 0x2ed   : > { %6894 = vmatprep.subr.bf16.mxu0 %v7725_v8  ;;  %6900 = vmatprep.subr.bf16.mxu1 %v7725_v8 }
 0x2f2   : > { %s9007_s6 = scalar_lea.vmem %s9006_s19, %s7939_s0 }
 0x306   : > { %v8345_v4 = vpop.f32.mrf.mxu0  ;;  %v8347_v5 = vpop.f32.mrf.mxu1 }
 0x307   : > { %v2445_v0 = vadd.f32 %v6026_v63, %v8345_v4  ;;  %v2533_v3 = vadd.f32 %v6027_v1, %v8347_v5 }
 0x308   : > { %v6836_v6 = vpop.f32.mrf.mxu0  ;;  %v6856_v7 = vpop.f32.mrf.mxu1 }
 0x309   : > { %v2788_v39 = vpack.c.bf16 %v2445_v0, %v2445_v0  ;;  %v6144_v0 = vld [vmem:[%s9007_s6] ss:$0 sm:$0xff] }
 0x30a   : > { %v2447_v9 = vpop.f32.mrf.mxu0  ;;  %v2535_v10 = vpop.f32.mrf.mxu1 }
 0x30b   : > { %v2887_v10 = vsel %vm2793_vm4, %v2788_v39, 0 }
 0x30c   : > { %v6837_v11 = vpop.f32.mrf.mxu0  ;;  %v6857_v12 = vpop.f32.mrf.mxu1 }
 0x30d   : > { %v2789_v11 = vpack.c.bf16 %v2533_v3, %v2533_v3 }
 0x30f   : > { %v2933_v4 = vsel %vm2793_vm4, %v2789_v11, 0 }
 0x373   : > { %v2587_v16 = vpop.f32.mrf.mxu0  ;;  %v2633_v17 = vpop.f32.mrf.mxu1 }
 0x374   : > { %v2733_v18 = vsel %vm1150_vm5, %v2587_v16, -1e+09  ;;  %v2734_v22 = vsel %vm1150_vm5, %v2633_v17, -1e+09 }
 0x375   : > { %v6862_v19 = vpop.f32.mrf.mxu0  ;;  %v6868_v20 = vpop.f32.mrf.mxu1  ;;  %v2738_v21 = vsel %vm2737_vm6, %v2733_v18, -inf  ;;  %v2741_v27 = vsel %vm2737_vm6, %v2734_v22, -inf }
 0x376   : > { %2739 = vmax.xlane.f32.xlu1 %v2738_v21  ;;  %v7430_v21 = vld [vmem:[%s7976_s22 + $0x8] sm:$0xff]  }
 0x377   : > { %v2590_v23 = vpop.f32.mrf.mxu0  ;;  %v2636_v24 = vpop.f32.mrf.mxu1 }
 0x378   : > { %v7431_v23 = vld [vmem:[%s7976_s22] sm:$0xff]   ;;  %v7432_v24 = vld [vmem:[%s7976_s22 + $0x18] sm:$0xff]  }
 0x379   : > { %v6863_v25 = vpop.f32.mrf.mxu0  ;;  %v6869_v26 = vpop.f32.mrf.mxu1 }
 0x37a   : > { %2742 = vmax.xlane.f32.xlu1 %v2741_v27  ;;  %v7433_v25 = vld [vmem:[%s7976_s22 + $0x10] sm:$0xff]   ;;  %v7434_v27 = vld [vmem:[%s7976_s22 + $0x28] sm:$0xff]  }
 0x393   : > { %v2679_v28 = vpop.f32.mrf.mxu0  ;;  %v2725_v29 = vpop.f32.mrf.mxu1 }
 0x394   : > { %v2735_v30 = vsel %vm1150_vm5, %v2679_v28, -1e+09  ;;  %v2736_v31 = vsel %vm1150_vm5, %v2725_v29, -1e+09 }
 0x395   : > { %v6874_v32 = vpop.f32.mrf.mxu0  ;;  %v6880_v33 = vpop.f32.mrf.mxu1  ;;  %v2747_v34 = vsel %vm2737_vm6, %v2736_v31, -inf  ;;  %v2744_v35 = vsel %vm2737_vm6, %v2735_v30, -inf }
 0x396   : > { %2748 = vmax.xlane.f32.xlu1 %v2747_v34  ;;  %2745 = vmax.xlane.f32.xlu0 %v2744_v35  ;;  %v7435_v32 = vld [vmem:[%s7976_s22 + $0x38] sm:$0xff]   ;;  %v7436_v33 = vld [vmem:[%s7976_s22 + $0x20] sm:$0xff]  }
 0x397   : > { %v2682_v36 = vpop.f32.mrf.mxu0  ;;  %v2728_v37 = vpop.f32.mrf.mxu1 }
 0x399   : > { %v6875_v38 = vpop.f32.mrf.mxu0  ;;  %v6881_v40 = vpop.f32.mrf.mxu1 }
 0x39a   : > { %v7437_v38 = vld [vmem:[%s7976_s22 + $0x30] sm:$0xff]   ;;  %s9018_s22 = scalar_lea.vmem %s9017_s27, %s7939_s0 }
 0x3ff   : > { %v2740_v41 = vpop.xlane.xlu1 %2739 }
 0x400   : > { %v2750_v42 = vsub.f32 %v2733_v18, %v2740_v41 }
 0x402   : > { %v2754_v43 = vmul.f32 1.442695, %v2750_v42 }
 0x403   : > { %v2743_v44 = vpop.xlane.xlu1 %2742 }
 0x404   : > { %7586 = vpow2.f32 %v2754_v43  ;;  %v2751_v45 = vsub.f32 %v2734_v22, %v2743_v44 }
 0x406   : > { %v2756_v46 = vmul.f32 1.442695, %v2751_v45 }
 0x408   : > { %7588 = vpow2.f32 %v2756_v46 }
 0x411   : > { %v7587_v47 = vpop.eup %7586 }
 0x412   : > { %v2762_v48 = vsel %vm2737_vm6, %v7587_v47, 0.0 }
 0x413   : > { %2763 = vadd.xlane.f32.xlu0 %v2762_v48 }
 0x415   : > { %v7589_v49 = vpop.eup %7588 }
 0x416   : > { %v2765_v50 = vsel %vm2737_vm6, %v7589_v49, 0.0 }
 0x417   : > { %2766 = vadd.xlane.f32.xlu1 %v2765_v50 }
 0x41f   : > { %v2749_v51 = vpop.xlane.xlu1 %2748  ;;  %v2746_v52 = vpop.xlane.xlu0 %2745 }
 0x420   : > { %v2753_v53 = vsub.f32 %v2736_v31, %v2749_v51  ;;  %v2752_v54 = vsub.f32 %v2735_v30, %v2746_v52 }
 0x422   : > { %v2760_v55 = vmul.f32 1.442695, %v2753_v53  ;;  %v2758_v56 = vmul.f32 1.442695, %v2752_v54 }
 0x424   : > { %7590 = vpow2.f32 %v2760_v55 }
 0x425   : > { %7592 = vpow2.f32 %v2758_v56 }
 0x431   : > { %v7591_v57 = vpop.eup %7590 }
 0x432   : > { %v7593_v58 = vpop.eup %7592  ;;  %v2771_v59 = vsel %vm2737_vm6, %v7591_v57, 0.0 }
 0x433   : > { %2772 = vadd.xlane.f32.xlu1 %v2771_v59  ;;  %v2768_v60 = vsel %vm2737_vm6, %v7593_v58, 0.0 }
 0x434   : > { %2769 = vadd.xlane.f32.xlu0 %v2768_v60 }
 0x49c   : > { %v2764_v61 = vpop.xlane.xlu0 %2763 }
 0x49d   : > { %7594 = vrcp.f32 %v2764_v61 }
 0x4a0   : > { %v2767_v62 = vpop.xlane.xlu1 %2766 }
 0x4a1   : > { %7596 = vrcp.f32 %v2767_v62 }
 0x4aa   : > { %v7595_v2 = vpop.eup %7594 }
 0x4ab   : > { %v2778_v6 = vmul.f32 %v7595_v2, %v7587_v47 }
 0x4ad   : > { %v2782_v7 = vpack.c.bf16 %v2778_v6, %v2778_v6 }
 0x4ae   : > { %v7597_v9 = vpop.eup %7596 }
 0x4af   : > { %6885 = vmatmul.mubr.msk.bf16.vlgmr.msra.gmra.mxu0 %vm2737_vm6, %v2782_v7  ;;  %v2779_v12 = vmul.f32 %v7597_v9, %v7589_v49 }
 0x4b0   : > { %6895 = vmatpush3.bf16.msra.mxu0 %v2887_v10  ;;  %6896 = vmatprep.mubr.msk.bf16.mxu0 %vm7726_vm0, %v7725_v8  ;;  %v7626_v10 = vld [vmem:[#allocation2] sm:$0xff] }
 0x4b1   : > { %v2783_v13 = vpack.c.bf16 %v2779_v12, %v2779_v12  ;;  %6906 = vmatprep.subr.bf16.mxu0 %v7725_v8 }
 0x4b3   : > { %6891 = vmatmul.mubr.msk.bf16.vlgmr.msra.gmra.mxu1 %vm2737_vm6, %v2783_v13 }
 0x4b4   : > { %6901 = vmatpush3.bf16.msra.mxu1 %v2933_v4  ;;  %6902 = vmatprep.mubr.msk.bf16.mxu1 %vm7726_vm0, %v7725_v8 }
 0x4b5   : > { %6914 = vmatprep.subr.bf16.mxu1 %v7725_v8 }
 0x4bc   : > { %v2773_v5 = vpop.xlane.xlu1 %2772 }
 0x4bd   : > { %7598 = vrcp.f32 %v2773_v5  ;;  %v2770_v15 = vpop.xlane.xlu0 %2769 }
 0x4be   : > { %7600 = vrcp.f32 %v2770_v15  ;;  %v7438_v15 = vld [vmem:[%s8000_s8 + $0x38] sm:$0xff]  }
 0x4ca   : > { %v7599_v16 = vpop.eup %7598 }
 0x4cb   : > { %v7601_v17 = vpop.eup %7600  ;;  %v2781_v18 = vmul.f32 %v7599_v16, %v7591_v57  ;;  %v7439_v16 = vld [vmem:[%s8000_s8 + $0x78] sm:$0xff]  }
 0x4cc   : > { %v2780_v19 = vmul.f32 %v7601_v17, %v7593_v58  ;;  %v7440_v17 = vld [vmem:[%s8000_s8 + $0x30] sm:$0xff]  }
 0x4cd   : > { %v2785_v20 = vpack.c.bf16 %v2781_v18, %v2781_v18  ;;  %v7441_v18 = vld [vmem:[%s8000_s8 + $0x70] sm:$0xff]  }
 0x4ce   : > { %v2784_v22 = vpack.c.bf16 %v2780_v19, %v2780_v19  ;;  %v7442_v19 = vld [vmem:[%s8000_s8 + $0x28] sm:$0xff]  }
 0x4cf   : > { %6903 = vmatmul.mubr.msk.bf16.vlgmr.msra.gmra.mxu1 %vm2737_vm6, %v2785_v20  ;;  %v7443_v20 = vld [vmem:[%s8000_s8 + $0x68] sm:$0xff]  }
 0x4d0   : > { %6897 = vmatmul.mubr.msk.bf16.vlgmr.msra.gmra.mxu0 %vm2737_vm6, %v2784_v22  ;;  %6918 = vmatprep.mubr.msk.bf16.mxu1 %vm7726_vm0, %v7725_v8  ;;  %v7445_v22 = vld [vmem:[%s8000_s8 + $0x60] sm:$0xff]  }
 0x4d1   : > { %6907 = vmatpush3.bf16.msra.mxu0 %v7430_v21  ;;  %6910 = vmatprep.mubr.msk.bf16.mxu0 %vm7726_vm0, %v7725_v8  ;;  %v7444_v21 = vld [vmem:[%s8000_s8 + $0x20] sm:$0xff]  }
 0x4d2   : > { %6908 = vmatprep.subr.bf16.mxu0 %v7725_v8  ;;  %6915 = vmatpush3.bf16.msra.mxu1 %v7432_v24  ;;  %v7447_v24 = vld [vmem:[%s8000_s8 + $0x58] sm:$0xff]  }
 0x4d3   : > { %6916 = vmatprep.subr.bf16.mxu1 %v7725_v8 }
 0x4d5   : > { %6909 = vmatpush3.bf16.msra.mxu0 %v7431_v23  ;;  %v7446_v23 = vld [vmem:[%s8000_s8 + $0x18] sm:$0xff]  }
 0x4d6   : > { %6922 = vmatprep.subr.bf16.mxu0 %v7725_v8  ;;  %6917 = vmatpush3.bf16.msra.mxu1 %v7433_v25  ;;  %v7448_v25 = vld [vmem:[%s8000_s8 + $0x10] sm:$0xff]  }
 0x4d7   : > { %6930 = vmatprep.subr.bf16.mxu1 %v7725_v8 }
 0x56f   : > { %v2831_v26 = vpop.f32.mrf.mxu0 }
 0x570   : > { %v2975_v28 = vpack.c.bf16 %v2831_v26, %v2831_v26  ;;  %v7449_v26 = vld [vmem:[%s8000_s8 + $0x50] sm:$0xff]  }
 0x571   : > { %v6886_v29 = vpop.f32.mrf.mxu0 }
 0x572   : > { %6911 = vmatmul.mubr.msk.bf16.vlgmr.msra.gmra.mxu0 %vm2546_vm3, %v2975_v28  ;;  %v7451_v28 = vld [vmem:[%s8000_s8 + $0x48] sm:$0xff]   ;;  %v7452_v29 = vld [vmem:[%s8000_s8] sm:$0xff]  }
 0x573   : > { %v2834_v30 = vpop.f32.mrf.mxu0  ;;  %v2877_v31 = vpop.f32.mrf.mxu1  ;;  %6923 = vmatpush3.bf16.msra.mxu0 %v7434_v27  ;;  %6926 = vmatprep.mubr.msk.bf16.mxu0 %vm7726_vm0, %v7725_v8  ;;  %v7450_v27 = vld [vmem:[%s8000_s8 + $0x8] sm:$0xff]  }
 0x574   : > { %v2976_v34 = vpack.c.bf16 %v2877_v31, %v2877_v31  ;;  %6924 = vmatprep.subr.bf16.mxu0 %v7725_v8  ;;  %v7453_v30 = vld [vmem:[%s8000_s8 + $0x40] sm:$0xff]  }
 0x575   : > { %v6887_v35 = vpop.f32.mrf.mxu0  ;;  %v6892_v36 = vpop.f32.mrf.mxu1 }
 0x576   : > { %6919 = vmatmul.mubr.msk.bf16.vlgmr.msra.gmra.mxu1 %vm2546_vm3, %v2976_v34 }
 0x577   : > { %v2880_v37 = vpop.f32.mrf.mxu1  ;;  %6931 = vmatpush3.bf16.msra.mxu1 %v7435_v32  ;;  %6925 = vmatpush3.bf16.msra.mxu0 %v7436_v33 }
 0x578   : > { %6932 = vmatprep.subr.bf16.mxu1 %v7725_v8  ;;  %6934 = vmatprep.mubr.msk.bf16.mxu1 %vm7726_vm0, %v7725_v8 }
 0x579   : > { %v6893_v40 = vpop.f32.mrf.mxu1  ;;  %6938 = vmatprep.subr.bf16.mxu0 %v7725_v8 }
 0x57b   : > { %6933 = vmatpush3.bf16.msra.mxu1 %v7437_v38 }
 0x57c   : > { %6958 = vmatprep.subr.bf16.mxu1 %v7725_v8 }
 0x58f   : > { %v2969_v41 = vpop.f32.mrf.mxu1 }
 0x590   : > { %v2923_v42 = vpop.f32.mrf.mxu0  ;;  %v2978_v43 = vpack.c.bf16 %v2969_v41, %v2969_v41  ;;  %v6145_v41 = vld [vmem:[%s9009_s26] ss:$0 sm:$0xff]  ;;  %s9022_s26 = sld [smem:[#allocation9_spill]] }
 0x591   : > { %v2977_v44 = vpack.c.bf16 %v2923_v42, %v2923_v42  ;;  %v6904_v45 = vpop.f32.mrf.mxu1 }
 0x592   : > { %v6898_v46 = vpop.f32.mrf.mxu0  ;;  %6935 = vmatmul.mubr.msk.bf16.vlgmr.msra.gmra.mxu1 %vm2546_vm3, %v2978_v43  ;;  %v6146_v43 = vld [vmem:[%s9010_s15] ss:$0 sm:$0xff] }
 0x593   : > { %6927 = vmatmul.mubr.msk.bf16.vlgmr.msra.gmra.mxu0 %vm2546_vm3, %v2977_v44  ;;  %v2972_v47 = vpop.f32.mrf.mxu1  ;;  %6974 = vmatprep.mubr.msk.bf16.mxu1 %vm7726_vm0, %v7725_v8  ;;  %v7454_v46 = vld [vmem:[%s8000_s8 + $0xb8] sm:$0xff]  }
 0x594   : > { %v2926_v48 = vpop.f32.mrf.mxu0  ;;  %6954 = vmatprep.mubr.msk.bf16.mxu0 %vm7726_vm0, %v7725_v8  ;;  %6939 = vmatpush3.bf16.msra.mxu0 %v7438_v15  ;;  %v7455_v47 = vld [vmem:[%s8000_s8 + $0xf8] sm:$0xff]   ;;  %v7484_v15 = vld [vmem:[%s8012_s24] sm:$0xff]  }
 0x595   : > { %v6905_v49 = vpop.f32.mrf.mxu1  ;;  %6959 = vmatpush3.bf16.msra.mxu1 %v7439_v16  ;;  %6940 = vmatprep.subr.bf16.mxu0 %v7725_v8  ;;  %v7485_v16 = vld [vmem:[%s8012_s24 + $0x40] sm:$0xff]  }
 0x596   : > { %v6899_v50 = vpop.f32.mrf.mxu0  ;;  %6960 = vmatprep.subr.bf16.mxu1 %v7725_v8  ;;  %v7456_v49 = vld [vmem:[%s8000_s8 + $0xb0] sm:$0xff]   ;;  %p6311_p1 = scmp.ne.s32.totalorder %s9022_s26, 1 }
 0x597   : > { %v7457_v50 = vld [vmem:[%s8000_s8 + $0xf0] sm:$0xff]   ;;  %s9023_s12 = sld [smem:[#allocation44_spill]] (!%p6311_p1) }
 0x598   : > { %6941 = vmatpush3.bf16.msra.mxu0 %v7440_v17 }
 0x599   : > { %6961 = vmatpush3.bf16.msra.mxu1 %v7441_v18  ;;  %6942 = vmatprep.subr.bf16.mxu0 %v7725_v8  ;;  %v7486_v18 = vld [vmem:[%s8012_s24 + $0xb8] sm:$0xff]  }
 0x59a   : > { %6962 = vmatprep.subr.bf16.mxu1 %v7725_v8 }
 0x59c   : > { %6943 = vmatpush3.bf16.msra.mxu0 %v7442_v19  ;;  %v7487_v19 = vld [vmem:[%s8012_s24 + $0xf8] sm:$0xff]  }
 0x59d   : > { %6963 = vmatpush3.bf16.msra.mxu1 %v7443_v20  ;;  %6944 = vmatprep.subr.bf16.mxu0 %v7725_v8  ;;  %v7488_v20 = vld [vmem:[%s8012_s24 + $0xb0] sm:$0xff]  }
 0x59e   : > { %6964 = vmatprep.subr.bf16.mxu1 %v7725_v8 }
 0x5a0   : > { %6945 = vmatpush3.bf16.msra.mxu0 %v7444_v21  ;;  %v7489_v21 = vld [vmem:[%s8012_s24 + $0xf0] sm:$0xff]  }
 0x5a1   : > { %6965 = vmatpush3.bf16.msra.mxu1 %v7445_v22  ;;  %6946 = vmatprep.subr.bf16.mxu0 %v7725_v8  ;;  %v7490_v22 = vld [vmem:[%s8012_s24 + $0xa8] sm:$0xff]  }
 0x5a2   : > { %6966 = vmatprep.subr.bf16.mxu1 %v7725_v8 }
 0x5a4   : > { %6947 = vmatpush3.bf16.msra.mxu0 %v7446_v23  ;;  %v7491_v23 = vld [vmem:[%s8012_s24 + $0xe8] sm:$0xff]  }
 0x5a5   : > { %6967 = vmatpush3.bf16.msra.mxu1 %v7447_v24  ;;  %6948 = vmatprep.subr.bf16.mxu0 %v7725_v8  ;;  %v7492_v24 = vld [vmem:[%s8012_s24 + $0xa0] sm:$0xff]  }
 0x5a6   : > { %6968 = vmatprep.subr.bf16.mxu1 %v7725_v8 }
 0x5a8   : > { %6949 = vmatpush3.bf16.msra.mxu0 %v7448_v25  ;;  %v7493_v25 = vld [vmem:[%s8012_s24 + $0xe0] sm:$0xff]  }
 0x5a9   : > { %6969 = vmatpush3.bf16.msra.mxu1 %v7449_v26  ;;  %6950 = vmatprep.subr.bf16.mxu0 %v7725_v8  ;;  %v7494_v26 = vld [vmem:[%s8012_s24 + $0x98] sm:$0xff]  }
 0x5aa   : > { %6970 = vmatprep.subr.bf16.mxu1 %v7725_v8 }
 0x5ac   : > { %6951 = vmatpush3.bf16.msra.mxu0 %v7450_v27  ;;  %v7495_v27 = vld [vmem:[%s8012_s24 + $0xd8] sm:$0xff]  }
 0x5ad   : > { %6971 = vmatpush3.bf16.msra.mxu1 %v7451_v28  ;;  %6952 = vmatprep.subr.bf16.mxu0 %v7725_v8  ;;  %v7496_v28 = vld [vmem:[%s8012_s24 + $0x90] sm:$0xff]  }
 0x5ae   : > { %6972 = vmatprep.subr.bf16.mxu1 %v7725_v8 }
 0x5b0   : > { %6953 = vmatpush3.bf16.msra.mxu0 %v7452_v29  ;;  %v7497_v29 = vld [vmem:[%s8012_s24 + $0xd0] sm:$0xff]  }
 0x5b1   : > { %6973 = vmatpush3.bf16.msra.mxu1 %v7453_v30  ;;  %6978 = vmatprep.subr.bf16.mxu0 %v7725_v8  ;;  %v7498_v30 = vld [vmem:[%s8012_s24 + $0x88] sm:$0xff]  }
 0x5b2   : > { %6998 = vmatprep.subr.bf16.mxu1 %v7725_v8 }
 0x632   : > { %v3028_v51 = vpop.f32.mrf.mxu0 }
 0x634   : > { %v6912_v52 = vpop.f32.mrf.mxu0 }
 0x635   : > { %v7459_v52 = vld [vmem:[%s8000_s8 + $0xe8] sm:$0xff]  }
 0x636   : > { %v3031_v53 = vpop.f32.mrf.mxu0  ;;  %v3083_v54 = vpop.f32.mrf.mxu1 }
 0x637   : > { %v3199_v59 = vadd.f32 %v3083_v54, %v3028_v51  ;;  %v7458_v51 = vld [vmem:[%s8000_s8 + $0xa8] sm:$0xff]   ;;  %v7460_v53 = vld [vmem:[%s8000_s8 + $0xa0] sm:$0xff]  }
 0x638   : > { %v6913_v55 = vpop.f32.mrf.mxu0  ;;  %v6920_v56 = vpop.f32.mrf.mxu1  ;;  %v7461_v54 = vld [vmem:[%s8000_s8 + $0xe0] sm:$0xff]  }
 0x639   : > { %v7462_v55 = vld [vmem:[%s8000_s8 + $0x98] sm:$0xff]  }
 0x63a   : > { %v3086_v57 = vpop.f32.mrf.mxu1  ;;  %v7463_v56 = vld [vmem:[%s8000_s8 + $0xd8] sm:$0xff]  }
 0x63b   : > { %v7464_v57 = vld [vmem:[%s8000_s8 + $0x90] sm:$0xff]  }
 0x63c   : > { %v6921_v58 = vpop.f32.mrf.mxu1 }
 0x63d   : > { %v7465_v58 = vld [vmem:[%s8000_s8 + $0xd0] sm:$0xff]  }
 0x652   : > { %v3193_v60 = vpop.f32.mrf.mxu1 }
 0x653   : > { %v3138_v61 = vpop.f32.mrf.mxu0 }
 0x654   : > { %v3200_v62 = vadd.f32 %v3199_v59, %v3138_v61  ;;  %v6936_v63 = vpop.f32.mrf.mxu1  ;;  %v7466_v59 = vld [vmem:[%s8000_s8 + $0x88] sm:$0xff]   ;;  %v7468_v61 = vld [vmem:[%s8000_s8 + $0x80] sm:$0xff]  }
 0x655   : > { %v6928_v1 = vpop.f32.mrf.mxu0  ;;  %v7470_v63 = vld [vmem:[%s8012_s24 + $0x38] sm:$0xff]  }
 0x656   : > { %v3201_v2 = vadd.f32 %v3200_v62, %v3193_v60  ;;  %v3196_v39 = vpop.f32.mrf.mxu1  ;;  %v7467_v60 = vld [vmem:[%s8000_s8 + $0xc8] sm:$0xff]   ;;  %v7469_v62 = vld [vmem:[%s8000_s8 + $0xc0] sm:$0xff]   ;;  %v7472_v1 = vld [vmem:[%s8012_s24 + $0x30] sm:$0xff]   ;;  %s9011_s8 = sld [smem:[#allocation21_spill]] }
 0x657   : > { %v3141_v3 = vpop.f32.mrf.mxu0  ;;  %v7474_v39 = vld [vmem:[%s8012_s24 + $0x28] sm:$0xff]  }
 0x658   : > { %v3208_v6 = vadd.f32 %v6144_v0, %v3201_v2  ;;  %v6937_v7 = vpop.f32.mrf.mxu1  ;;  %v7471_v0 = vld [vmem:[%s8012_s24 + $0x78] sm:$0xff]   ;;  %v7473_v2 = vld [vmem:[%s8012_s24 + $0x70] sm:$0xff]   ;;  %v7475_v3 = vld [vmem:[%s8012_s24 + $0x68] sm:$0xff]  }
 0x659   : > { %v6929_v9 = vpop.f32.mrf.mxu0  ;;  %v7477_v7 = vld [vmem:[%s8012_s24 + $0x60] sm:$0xff]  }
 0x65a   : > { %v8421_v11 = vadd.f32 %v7626_v10, %v3208_v6  ;;  %v7476_v6 = vld [vmem:[%s8012_s24 + $0x20] sm:$0xff]   ;;  %v7478_v9 = vld [vmem:[%s8012_s24 + $0x18] sm:$0xff]  }
 0x65b   : > { %v7479_v10 = vld [vmem:[%s8012_s24 + $0x58] sm:$0xff]  }
 0x65c   : > { %3433 = vadd.xlane.f32.xlu0 %v8421_v11  ;;  %v8543_v17 = vld [vmem:[%s9011_s8] sm:$0xf]  ;;  %s9024_s8 = sld [smem:[#allocation45_spill]] (!%p6311_p1) }
 0x6e5   : > { %v3434_v12 = vpop.xlane.xlu0 %3433 }
 0x6e6   : > { %v3435_v13 = vmul.f32 0.0078125, %v3434_v12  ;;  %v7480_v12 = vld [vmem:[%s8012_s24 + $0x10] sm:$0xff]  }
 0x6e8   : > { %v8425_v4 = vsub.f32 %v8421_v11, %v3435_v13  ;;  %v7481_v13 = vld [vmem:[%s8012_s24 + $0x50] sm:$0xff]  }
 0x6ea   : > { %v3437_v5 = vmul.f32 %v8425_v4, %v8425_v4 }
 0x6ec   : > { %3438 = vadd.xlane.f32.xlu1 %v3437_v5  ;;  %v7483_v5 = vld [vmem:[%s8012_s24 + $0x48] sm:$0xff]  }
 0x775   : > { %v3439_v31 = vpop.xlane.xlu1 %3438 }
 0x776   : > { %v3440_v32 = vmul.f32 0.007874016, %v3439_v31  ;;  %v7499_v31 = vld [vmem:[%s8012_s24 + $0xc8] sm:$0xff]  }
 0x778   : > { %7602 = vrsqrt.f32 %v3440_v32  ;;  %vm3443_vm7 = vcmp.eq.f32.partialorder %v3440_v32, inf  ;;  %v3446_v35 = vand.u32 2147483648, %v3440_v32  ;;  %vm3445_vm8 = vcmp.eq.f32.partialorder %v3440_v32, 0.0 }
 0x785   : > { %v7603_v33 = vpop.eup %7602 }
 0x786   : > { %v3442_v34 = vmul.f32 %v7603_v33, %v3440_v32  ;;  %v7501_v33 = vld [vmem:[%s8012_s24 + $0xc0] sm:$0xff]  }
 0x788   : > { %v3444_v36 = vsel %vm3443_vm7, %v3440_v32, %v3442_v34  ;;  %v7500_v32 = vld [vmem:[%s8012_s24 + $0x80] sm:$0xff]   ;;  %v7502_v34 = vld [vmem:[%s8012_s24 + $0x138] sm:$0xff]  }
 0x789   : > { %v3447_v37 = vsel %vm3445_vm8, %v3446_v35, %v3444_v36  ;;  %v7503_v35 = vld [vmem:[%s8012_s24 + $0x178] sm:$0xff]   ;;  %v7504_v36 = vld [vmem:[%s8012_s24 + $0x130] sm:$0xff]  }
 0x78a   : > { %v3448_v38 = vadd.f32 1e-06, %v3447_v37  ;;  %v7505_v37 = vld [vmem:[%s8012_s24 + $0x170] sm:$0xff]  }
 0x78c   : > { %7604 = vrcp.f32 %v3448_v38  ;;  %v7506_v38 = vld [vmem:[%s8012_s24 + $0x128] sm:$0xff]  }
 0x799   : > { %v7605_v40 = vpop.eup %7604 }
 0x79a   : > { %v3450_v42 = vmul.f32 %v7605_v40, %v8425_v4  ;;  %v7482_v4 = vld [vmem:[%s8012_s24 + $0x8] sm:$0xff]  }
 0x79b   : > { %v7507_v40 = vld [vmem:[%s8012_s24 + $0x168] sm:$0xff]  }
 0x79c   : > { %v3457_v44 = vmul.f32 %v6145_v41, %v3450_v42  ;;  %v7508_v41 = vld [vmem:[%s8012_s24 + $0x120] sm:$0xff]  }
 0x79d   : > { %v7509_v42 = vld [vmem:[%s8012_s24 + $0x160] sm:$0xff]  }
 0x79e   : > { %v3464_v45 = vadd.f32 %v6146_v43, %v3457_v44  ;;  %v7510_v43 = vld [vmem:[%s8012_s24 + $0x118] sm:$0xff]  }
 0x79f   : > { %v7511_v44 = vld [vmem:[%s8012_s24 + $0x158] sm:$0xff]  }
 0x7a0   : > { %v3465_v48 = vpack.c.bf16 %v3464_v45, %v3464_v45  ;;  %v7512_v45 = vld [vmem:[%s8012_s24 + $0x110] sm:$0xff]  }
 0x7a2   : > { %6955 = vmatmul.mubr.bf16.vlgmr.msra.gmra.mxu0 %v3465_v48  ;;  %6975 = vmatmul.mubr.bf16.vlgmr.msra.gmra.mxu1 %v3465_v48 }
 0x7a3   : > { %6979 = vmatpush3.bf16.msra.mxu0 %v7454_v46  ;;  %6999 = vmatpush3.bf16.msra.mxu1 %v7455_v47  ;;  %v7513_v46 = vld [vmem:[%s8012_s24 + $0x150] sm:$0xff]   ;;  %v7514_v47 = vld [vmem:[%s8012_s24 + $0x108] sm:$0xff]  }
 0x7a4   : > { %6980 = vmatprep.subr.bf16.mxu0 %v7725_v8  ;;  %7000 = vmatprep.subr.bf16.mxu1 %v7725_v8 }
 0x7a5   : > { %6994 = vmatprep.mubr.msk.bf16.mxu0 %vm7726_vm0, %v7725_v8  ;;  %7014 = vmatprep.mubr.msk.bf16.mxu1 %vm7726_vm0, %v7725_v8 }
 0x7a7   : > { %6981 = vmatpush3.bf16.msra.mxu0 %v7456_v49  ;;  %7001 = vmatpush3.bf16.msra.mxu1 %v7457_v50  ;;  %v7516_v49 = vld [vmem:[%s8012_s24 + $0x100] sm:$0xff]  }
 0x7a8   : > { %6982 = vmatprep.subr.bf16.mxu0 %v7725_v8  ;;  %7002 = vmatprep.subr.bf16.mxu1 %v7725_v8  ;;  %v7517_v50 = vld [vmem:[%s8012_s24 + $0x140] sm:$0xff]  }
 0x7ab   : > { %6983 = vmatpush3.bf16.msra.mxu0 %v7458_v51  ;;  %7003 = vmatpush3.bf16.msra.mxu1 %v7459_v52  ;;  %v7518_v51 = vld [vmem:[%s8012_s24 + $0x1b8] sm:$0xff]  }
 0x7ac   : > { %6984 = vmatprep.subr.bf16.mxu0 %v7725_v8  ;;  %7004 = vmatprep.subr.bf16.mxu1 %v7725_v8  ;;  %v7519_v52 = vld [vmem:[%s8012_s24 + $0x1f8] sm:$0xff]  }
 0x7af   : > { %6985 = vmatpush3.bf16.msra.mxu0 %v7460_v53  ;;  %7005 = vmatpush3.bf16.msra.mxu1 %v7461_v54  ;;  %v7520_v53 = vld [vmem:[%s8012_s24 + $0x1b0] sm:$0xff]  }
 0x7b0   : > { %6986 = vmatprep.subr.bf16.mxu0 %v7725_v8  ;;  %7006 = vmatprep.subr.bf16.mxu1 %v7725_v8  ;;  %v7521_v54 = vld [vmem:[%s8012_s24 + $0x1f0] sm:$0xff]  }
 0x7b3   : > { %6987 = vmatpush3.bf16.msra.mxu0 %v7462_v55  ;;  %7007 = vmatpush3.bf16.msra.mxu1 %v7463_v56  ;;  %v7522_v55 = vld [vmem:[%s8012_s24 + $0x1a8] sm:$0xff]  }
 0x7b4   : > { %6988 = vmatprep.subr.bf16.mxu0 %v7725_v8  ;;  %7008 = vmatprep.subr.bf16.mxu1 %v7725_v8  ;;  %v7523_v56 = vld [vmem:[%s8012_s24 + $0x1e8] sm:$0xff]  }
 0x7b7   : > { %6989 = vmatpush3.bf16.msra.mxu0 %v7464_v57  ;;  %7009 = vmatpush3.bf16.msra.mxu1 %v7465_v58  ;;  %v7524_v57 = vld [vmem:[%s8012_s24 + $0x1a0] sm:$0xff]  }
 0x7b8   : > { %6990 = vmatprep.subr.bf16.mxu0 %v7725_v8  ;;  %7010 = vmatprep.subr.bf16.mxu1 %v7725_v8  ;;  %v7525_v58 = vld [vmem:[%s8012_s24 + $0x1e0] sm:$0xff]  }
 0x7bb   : > { %6991 = vmatpush3.bf16.msra.mxu0 %v7466_v59  ;;  %7011 = vmatpush3.bf16.msra.mxu1 %v7467_v60  ;;  %v7526_v59 = vld [vmem:[%s8012_s24 + $0x198] sm:$0xff]  }
 0x7bc   : > { %6992 = vmatprep.subr.bf16.mxu0 %v7725_v8  ;;  %7012 = vmatprep.subr.bf16.mxu1 %v7725_v8  ;;  %v7527_v60 = vld [vmem:[%s8012_s24 + $0x1d8] sm:$0xff]  }
 0x7bf   : > { %6993 = vmatpush3.bf16.msra.mxu0 %v7468_v61  ;;  %7013 = vmatpush3.bf16.msra.mxu1 %v7469_v62  ;;  %v7528_v61 = vld [vmem:[%s8012_s24 + $0x190] sm:$0xff]  }
 0x7c0   : > { %7018 = vmatprep.subr.bf16.mxu0 %v7725_v8  ;;  %7038 = vmatprep.subr.bf16.mxu1 %v7725_v8  ;;  %v7529_v62 = vld [vmem:[%s8012_s24 + $0x1d0] sm:$0xff]  }
 0x7c2   : > { %6995 = vmatmul.mubr.bf16.vlgmr.msra.gmra.mxu0 %v3465_v48  ;;  %7015 = vmatmul.mubr.bf16.vlgmr.msra.gmra.mxu1 %v3465_v48  ;;  %v7515_v48 = vld [vmem:[%s8012_s24 + $0x148] sm:$0xff]  }
 0x7c3   : > { %7019 = vmatpush3.bf16.msra.mxu0 %v7470_v63  ;;  %7039 = vmatpush3.bf16.msra.mxu1 %v7471_v0  ;;  %v7530_v63 = vld [vmem:[%s8012_s24 + $0x188] sm:$0xff]  }
 0x7c4   : > { %7020 = vmatprep.subr.bf16.mxu0 %v7725_v8  ;;  %7040 = vmatprep.subr.bf16.mxu1 %v7725_v8  ;;  %v7531_v0 = vld [vmem:[%s8012_s24 + $0x1c8] sm:$0xff]  }
 0x7c5   : > { %7034 = vmatprep.mubr.msk.bf16.mxu0 %vm7726_vm0, %v7725_v8  ;;  %7054 = vmatprep.mubr.msk.bf16.mxu1 %vm7726_vm0, %v7725_v8 }
 0x7c7   : > { %7021 = vmatpush3.bf16.msra.mxu0 %v7472_v1  ;;  %7041 = vmatpush3.bf16.msra.mxu1 %v7473_v2  ;;  %v7532_v1 = vld [vmem:[%s8012_s24 + $0x180] sm:$0xff]  }
 0x7c8   : > { %7022 = vmatprep.subr.bf16.mxu0 %v7725_v8  ;;  %7042 = vmatprep.subr.bf16.mxu1 %v7725_v8  ;;  %v7533_v2 = vld [vmem:[%s8012_s24 + $0x1c0] sm:$0xff]   ;;  %s9012_s24 = sld [smem:[#allocation22_spill]] }
 0x7cb   : > { %7023 = vmatpush3.bf16.msra.mxu0 %v7474_v39  ;;  %7043 = vmatpush3.bf16.msra.mxu1 %v7475_v3 }
 0x7cc   : > { %7024 = vmatprep.subr.bf16.mxu0 %v7725_v8  ;;  %7044 = vmatprep.subr.bf16.mxu1 %v7725_v8 }
 0x7cf   : > { %7025 = vmatpush3.bf16.msra.mxu0 %v7476_v6  ;;  %7045 = vmatpush3.bf16.msra.mxu1 %v7477_v7 }
 0x7d0   : > { %7026 = vmatprep.subr.bf16.mxu0 %v7725_v8  ;;  %7046 = vmatprep.subr.bf16.mxu1 %v7725_v8 }
 0x7d3   : > { %7027 = vmatpush3.bf16.msra.mxu0 %v7478_v9  ;;  %7047 = vmatpush3.bf16.msra.mxu1 %v7479_v10 }
 0x7d4   : > { %7028 = vmatprep.subr.bf16.mxu0 %v7725_v8  ;;  %7048 = vmatprep.subr.bf16.mxu1 %v7725_v8 }
 0x7d7   : > { %7029 = vmatpush3.bf16.msra.mxu0 %v7480_v12  ;;  %7049 = vmatpush3.bf16.msra.mxu1 %v7481_v13 }
 0x7d8   : > { %7030 = vmatprep.subr.bf16.mxu0 %v7725_v8  ;;  %7050 = vmatprep.subr.bf16.mxu1 %v7725_v8 }
 0x7db   : > { %7031 = vmatpush3.bf16.msra.mxu0 %v7482_v4  ;;  %7051 = vmatpush3.bf16.msra.mxu1 %v7483_v5 }
 0x7dc   : > { %7032 = vmatprep.subr.bf16.mxu0 %v7725_v8  ;;  %7052 = vmatprep.subr.bf16.mxu1 %v7725_v8 }
 0x7df   : > { %7033 = vmatpush3.bf16.msra.mxu0 %v7484_v15  ;;  %7053 = vmatpush3.bf16.msra.mxu1 %v7485_v16 }
 0x7e0   : > { %7058 = vmatprep.subr.bf16.mxu0 %v7725_v8  ;;  %7078 = vmatprep.subr.bf16.mxu1 %v7725_v8 }
 0x7e2   : > { %7035 = vmatmul.mubr.bf16.vlgmr.msra.gmra.mxu0 %v8543_v17  ;;  %7055 = vmatmul.mubr.bf16.vlgmr.msra.gmra.mxu1 %v8543_v17 }
 0x7e3   : > { %7059 = vmatpush3.bf16.msra.mxu0 %v7486_v18  ;;  %7079 = vmatpush3.bf16.msra.mxu1 %v7487_v19 }
 0x7e4   : > { %7060 = vmatprep.subr.bf16.mxu0 %v7725_v8  ;;  %7080 = vmatprep.subr.bf16.mxu1 %v7725_v8 }
 0x7e5   : > { %7074 = vmatprep.mubr.msk.bf16.mxu0 %vm7726_vm0, %v7725_v8  ;;  %7094 = vmatprep.mubr.msk.bf16.mxu1 %vm7726_vm0, %v7725_v8 }
 0x7e7   : > { %7061 = vmatpush3.bf16.msra.mxu0 %v7488_v20  ;;  %7081 = vmatpush3.bf16.msra.mxu1 %v7489_v21  ;;  %v6183_v21 = vld [vmem:[%s8017_s21] ss:$0 sm:$0xff] }
 0x7e8   : > { %7062 = vmatprep.subr.bf16.mxu0 %v7725_v8  ;;  %7082 = vmatprep.subr.bf16.mxu1 %v7725_v8 }
 0x7eb   : > { %7063 = vmatpush3.bf16.msra.mxu0 %v7490_v22  ;;  %7083 = vmatpush3.bf16.msra.mxu1 %v7491_v23  ;;  %v6184_v22 = vld [vmem:[%s8017_s21 + $0x1] ss:$0 sm:$0xff] }
 0x7ec   : > { %7064 = vmatprep.subr.bf16.mxu0 %v7725_v8  ;;  %7084 = vmatprep.subr.bf16.mxu1 %v7725_v8 }
 0x7ef   : > { %7065 = vmatpush3.bf16.msra.mxu0 %v7492_v24  ;;  %7085 = vmatpush3.bf16.msra.mxu1 %v7493_v25 }
 0x7f0   : > { %7066 = vmatprep.subr.bf16.mxu0 %v7725_v8  ;;  %7086 = vmatprep.subr.bf16.mxu1 %v7725_v8 }
 0x7f3   : > { %7067 = vmatpush3.bf16.msra.mxu0 %v7494_v26  ;;  %7087 = vmatpush3.bf16.msra.mxu1 %v7495_v27 }
 0x7f4   : > { %7068 = vmatprep.subr.bf16.mxu0 %v7725_v8  ;;  %7088 = vmatprep.subr.bf16.mxu1 %v7725_v8 }
 0x7f7   : > { %7069 = vmatpush3.bf16.msra.mxu0 %v7496_v28  ;;  %7089 = vmatpush3.bf16.msra.mxu1 %v7497_v29 }
 0x7f8   : > { %7070 = vmatprep.subr.bf16.mxu0 %v7725_v8  ;;  %7090 = vmatprep.subr.bf16.mxu1 %v7725_v8 }
 0x7fb   : > { %7071 = vmatpush3.bf16.msra.mxu0 %v7498_v30  ;;  %7091 = vmatpush3.bf16.msra.mxu1 %v7499_v31  ;;  %v6147_v31 = vld [vmem:[%s9012_s24] ss:$0 sm:$0xff] }
 0x7fc   : > { %7072 = vmatprep.subr.bf16.mxu0 %v7725_v8  ;;  %7092 = vmatprep.subr.bf16.mxu1 %v7725_v8 }
 0x7ff   : > { %7073 = vmatpush3.bf16.msra.mxu0 %v7500_v32  ;;  %7093 = vmatpush3.bf16.msra.mxu1 %v7501_v33  ;;  %v6148_v32 = vld [vmem:[%s9012_s24 + $0x1] ss:$0 sm:$0xff] }
 0x800   : > { %7098 = vmatprep.subr.bf16.mxu0 %v7725_v8  ;;  %7118 = vmatprep.subr.bf16.mxu1 %v7725_v8 }
 0x802   : > { %7075 = vmatmul.mubr.bf16.vlgmr.msra.gmra.mxu0 %v8543_v17  ;;  %7095 = vmatmul.mubr.bf16.vlgmr.msra.gmra.mxu1 %v8543_v17 }
 0x803   : > { %7099 = vmatpush3.bf16.msra.mxu0 %v7502_v34  ;;  %7119 = vmatpush3.bf16.msra.mxu1 %v7503_v35 }
 0x804   : > { %7100 = vmatprep.subr.bf16.mxu0 %v7725_v8  ;;  %7120 = vmatprep.subr.bf16.mxu1 %v7725_v8 }
 0x805   : > { %7114 = vmatprep.mubr.msk.bf16.mxu0 %vm7726_vm0, %v7725_v8  ;;  %7134 = vmatprep.mubr.msk.bf16.mxu1 %vm7726_vm0, %v7725_v8 }
 0x807   : > { %7101 = vmatpush3.bf16.msra.mxu0 %v7504_v36  ;;  %7121 = vmatpush3.bf16.msra.mxu1 %v7505_v37 }
 0x808   : > { %7102 = vmatprep.subr.bf16.mxu0 %v7725_v8  ;;  %7122 = vmatprep.subr.bf16.mxu1 %v7725_v8 }
 0x80b   : > { %7103 = vmatpush3.bf16.msra.mxu0 %v7506_v38  ;;  %7123 = vmatpush3.bf16.msra.mxu1 %v7507_v40 }
 0x80c   : > { %7104 = vmatprep.subr.bf16.mxu0 %v7725_v8  ;;  %7124 = vmatprep.subr.bf16.mxu1 %v7725_v8 }
 0x80f   : > { %7105 = vmatpush3.bf16.msra.mxu0 %v7508_v41  ;;  %7125 = vmatpush3.bf16.msra.mxu1 %v7509_v42 }
 0x810   : > { %7106 = vmatprep.subr.bf16.mxu0 %v7725_v8  ;;  %7126 = vmatprep.subr.bf16.mxu1 %v7725_v8 }
 0x813   : > { %7107 = vmatpush3.bf16.msra.mxu0 %v7510_v43  ;;  %7127 = vmatpush3.bf16.msra.mxu1 %v7511_v44  ;;  %v6185_v44 = vld [vmem:[%s8017_s21 + $0x2] ss:$0 sm:$0xff] }
 0x814   : > { %7108 = vmatprep.subr.bf16.mxu0 %v7725_v8  ;;  %7128 = vmatprep.subr.bf16.mxu1 %v7725_v8 }
 0x817   : > { %7109 = vmatpush3.bf16.msra.mxu0 %v7512_v45  ;;  %7129 = vmatpush3.bf16.msra.mxu1 %v7513_v46  ;;  %v6186_v45 = vld [vmem:[%s8017_s21 + $0x3] ss:$0 sm:$0xff] }
 0x818   : > { %7110 = vmatprep.subr.bf16.mxu0 %v7725_v8  ;;  %7130 = vmatprep.subr.bf16.mxu1 %v7725_v8 }
 0x81b   : > { %7111 = vmatpush3.bf16.msra.mxu0 %v7514_v47  ;;  %7131 = vmatpush3.bf16.msra.mxu1 %v7515_v48 }
 0x81c   : > { %7112 = vmatprep.subr.bf16.mxu0 %v7725_v8  ;;  %7132 = vmatprep.subr.bf16.mxu1 %v7725_v8 }
 0x81f   : > { %7113 = vmatpush3.bf16.msra.mxu0 %v7516_v49  ;;  %7133 = vmatpush3.bf16.msra.mxu1 %v7517_v50 }
 0x820   : > { %7138 = vmatprep.subr.bf16.mxu0 %v7725_v8  ;;  %7158 = vmatprep.subr.bf16.mxu1 %v7725_v8 }
 0x822   : > { %7115 = vmatmul.mubr.bf16.vlgmr.msra.gmra.mxu0 %v8543_v17  ;;  %7135 = vmatmul.mubr.bf16.vlgmr.msra.gmra.mxu1 %v8543_v17 }
 0x823   : > { %7139 = vmatpush3.bf16.msra.mxu0 %v7518_v51  ;;  %7159 = vmatpush3.bf16.msra.mxu1 %v7519_v52 }
 0x824   : > { %7140 = vmatprep.subr.bf16.mxu0 %v7725_v8  ;;  %7160 = vmatprep.subr.bf16.mxu1 %v7725_v8 }
 0x825   : > { %7154 = vmatprep.mubr.msk.bf16.mxu0 %vm7726_vm0, %v7725_v8  ;;  %7174 = vmatprep.mubr.msk.bf16.mxu1 %vm7726_vm0, %v7725_v8 }
 0x827   : > { %7141 = vmatpush3.bf16.msra.mxu0 %v7520_v53  ;;  %7161 = vmatpush3.bf16.msra.mxu1 %v7521_v54  ;;  %v6149_v54 = vld [vmem:[%s9012_s24 + $0x2] ss:$0 sm:$0xff] }
 0x828   : > { %7142 = vmatprep.subr.bf16.mxu0 %v7725_v8  ;;  %7162 = vmatprep.subr.bf16.mxu1 %v7725_v8 }
 0x82b   : > { %7143 = vmatpush3.bf16.msra.mxu0 %v7522_v55  ;;  %7163 = vmatpush3.bf16.msra.mxu1 %v7523_v56  ;;  %v6150_v55 = vld [vmem:[%s9012_s24 + $0x3] ss:$0 sm:$0xff] }
 0x82c   : > { %7144 = vmatprep.subr.bf16.mxu0 %v7725_v8  ;;  %7164 = vmatprep.subr.bf16.mxu1 %v7725_v8 }
 0x82f   : > { %7145 = vmatpush3.bf16.msra.mxu0 %v7524_v57  ;;  %7165 = vmatpush3.bf16.msra.mxu1 %v7525_v58 }
 0x830   : > { %7146 = vmatprep.subr.bf16.mxu0 %v7725_v8  ;;  %7166 = vmatprep.subr.bf16.mxu1 %v7725_v8 }
 0x833   : > { %7147 = vmatpush3.bf16.msra.mxu0 %v7526_v59  ;;  %7167 = vmatpush3.bf16.msra.mxu1 %v7527_v60 }
 0x834   : > { %7148 = vmatprep.subr.bf16.mxu0 %v7725_v8  ;;  %7168 = vmatprep.subr.bf16.mxu1 %v7725_v8 }
 0x837   : > { %7149 = vmatpush3.bf16.msra.mxu0 %v7528_v61  ;;  %7169 = vmatpush3.bf16.msra.mxu1 %v7529_v62 }
 0x838   : > { %7150 = vmatprep.subr.bf16.mxu0 %v7725_v8  ;;  %7170 = vmatprep.subr.bf16.mxu1 %v7725_v8 }
 0x83b   : > { %7151 = vmatpush3.bf16.msra.mxu0 %v7530_v63  ;;  %7171 = vmatpush3.bf16.msra.mxu1 %v7531_v0 }
 0x83c   : > { %7152 = vmatprep.subr.bf16.mxu0 %v7725_v8  ;;  %7172 = vmatprep.subr.bf16.mxu1 %v7725_v8 }
 0x83f   : > { %7153 = vmatpush3.bf16.msra.mxu0 %v7532_v1  ;;  %7173 = vmatpush3.bf16.msra.mxu1 %v7533_v2  ;;  %v6187_v2 = vld [vmem:[%s8017_s21 + $0x4] ss:$0 sm:$0xff] }
 0x840   : > { %7178 = vmatprep.subr.bf16.mxu0 %v7725_v8  ;;  %7184 = vmatprep.subr.bf16.mxu1 %v7725_v8 }
 0x842   : > { %7155 = vmatmul.mubr.bf16.vlgmr.msra.gmra.mxu0 %v8543_v17  ;;  %7175 = vmatmul.mubr.bf16.vlgmr.msra.gmra.mxu1 %v8543_v17 }
 0x843   : > { %7180 = vmatprep.mubr.msk.bf16.mxu0 %vm7726_vm0, %v7725_v8  ;;  %7186 = vmatprep.mubr.msk.bf16.mxu1 %vm7726_vm0, %v7725_v8 }
 0x862   : > { %v3572_v39 = vpop.f32.mrf.mxu0  ;;  %v3660_v3 = vpop.f32.mrf.mxu1 }
 0x863   : > { %v3573_v40 = vadd.f32 %v6147_v31, %v3572_v39  ;;  %v3661_v41 = vadd.f32 %v6148_v32, %v3660_v3  ;;  %v6188_v39 = vld [vmem:[%s8017_s21 + $0x5] ss:$0 sm:$0xff] }
 0x864   : > { %v6956_v6 = vpop.f32.mrf.mxu0  ;;  %v6976_v7 = vpop.f32.mrf.mxu1 }
 0x865   : > { %v4594_v42 = vpack.c.bf16 %v3573_v40, %v3573_v40  ;;  %v4595_v43 = vpack.c.bf16 %v3661_v41, %v3661_v41 }
 0x866   : > { %v3575_v9 = vpop.f32.mrf.mxu0  ;;  %v3663_v10 = vpop.f32.mrf.mxu1 }
 0x868   : > { %v6957_v12 = vpop.f32.mrf.mxu0  ;;  %v6977_v13 = vpop.f32.mrf.mxu1 }
 0x882   : > { %v3748_v4 = vpop.f32.mrf.mxu0  ;;  %v3836_v5 = vpop.f32.mrf.mxu1 }
 0x883   : > { %v3749_v62 = vadd.f32 %v6149_v54, %v3748_v4  ;;  %v3837_v63 = vadd.f32 %v6150_v55, %v3836_v5 }
 0x884   : > { %v6996_v15 = vpop.f32.mrf.mxu0  ;;  %v7016_v16 = vpop.f32.mrf.mxu1 }
 0x885   : > { %v4596_v0 = vpack.c.bf16 %v3749_v62, %v3749_v62  ;;  %v4597_v1 = vpack.c.bf16 %v3837_v63, %v3837_v63 }
 0x886   : > { %v3751_v17 = vpop.f32.mrf.mxu0  ;;  %v3839_v18 = vpop.f32.mrf.mxu1 }
 0x888   : > { %v6997_v19 = vpop.f32.mrf.mxu0  ;;  %v7017_v20 = vpop.f32.mrf.mxu1 }
 0x8a2   : > { %v3972_v23 = vpop.f32.mrf.mxu0  ;;  %v4060_v24 = vpop.f32.mrf.mxu1 }
 0x8a3   : > { %v3973_v25 = vadd.f32 %v6183_v21, %v3972_v23  ;;  %v4061_v26 = vadd.f32 %v6184_v22, %v4060_v24 }
 0x8a4   : > { %v7036_v27 = vpop.f32.mrf.mxu0  ;;  %v7056_v28 = vpop.f32.mrf.mxu1 }
 0x8a5   : > { %v4598_v29 = vpack.c.bf16 %v3973_v25, %v3973_v25  ;;  %v4599_v30 = vpack.c.bf16 %v4061_v26, %v4061_v26  ;;  %v1151_v28 = vld [vmem:[%s9015_s7] sm:$0x1] }
 0x8a6   : > { %v3975_v33 = vpop.f32.mrf.mxu0  ;;  %v4063_v34 = vpop.f32.mrf.mxu1  ;;  %vm1152_vm9 = vcmp.gt.f32.partialorder %v1151_v28, 0.0 }
 0x8a7   : > { %v4606_v35 = vsel %vm2546_vm3, %v4598_v29, 0  ;;  %v4652_v36 = vsel %vm2546_vm3, %v4599_v30, 0  ;;  %v4789_v29 = vsub.s32 0, %v8349_v14  ;;  %v7727_v30 = vmov 0  }
 0x8a8   : > { %v7037_v37 = vpop.f32.mrf.mxu0  ;;  %v7057_v38 = vpop.f32.mrf.mxu1  ;;  %7179 = vmatpush3.bf16.xpose.msra.mxu0 %v4606_v35  ;;  %7185 = vmatpush3.bf16.xpose.msra.mxu1 %v4652_v36  ;;  %v4786_v31 = vsel %vm1152_vm9, 1, %v7727_v30 }
 0x8a9   : > { %7190 = vmatprep.subr.bf16.mxu0 %v7725_v8  ;;  %7196 = vmatprep.subr.bf16.mxu1 %v7725_v8  ;;  %v4790_v32 = vrot.slane %v4786_v31, %v4789_v29 }
 0x8ab   : > { %vm4791_vm10 = vcmp.eq.s32.totalorder %v4790_v32, 1 }
 0x8af   : > { %7181 = vmatmul.mubr.msk.bf16.vlgmr.msra.gmra.mxu0 %vm2546_vm3, %v4594_v42  ;;  %7187 = vmatmul.mubr.msk.bf16.vlgmr.msra.gmra.mxu1 %vm2546_vm3, %v4595_v43 }
 0x8b0   : > { %7192 = vmatprep.mubr.msk.bf16.mxu0 %vm7726_vm0, %v7725_v8  ;;  %7198 = vmatprep.mubr.msk.bf16.mxu1 %vm7726_vm0, %v7725_v8 }
 0x8c2   : > { %v4148_v46 = vpop.f32.mrf.mxu0  ;;  %v4236_v47 = vpop.f32.mrf.mxu1 }
 0x8c3   : > { %v4149_v48 = vadd.f32 %v6185_v44, %v4148_v46  ;;  %v4237_v49 = vadd.f32 %v6186_v45, %v4236_v47 }
 0x8c4   : > { %v7076_v50 = vpop.f32.mrf.mxu0  ;;  %v7096_v51 = vpop.f32.mrf.mxu1 }
 0x8c5   : > { %v4600_v52 = vpack.c.bf16 %v4149_v48, %v4149_v48  ;;  %v4601_v53 = vpack.c.bf16 %v4237_v49, %v4237_v49 }
 0x8c6   : > { %v4151_v56 = vpop.f32.mrf.mxu0  ;;  %v4239_v57 = vpop.f32.mrf.mxu1 }
 0x8c7   : > { %v4698_v58 = vsel %vm2546_vm3, %v4600_v52, 0  ;;  %v4744_v59 = vsel %vm2546_vm3, %v4601_v53, 0 }
 0x8c8   : > { %v7077_v60 = vpop.f32.mrf.mxu0  ;;  %v7097_v61 = vpop.f32.mrf.mxu1  ;;  %7191 = vmatpush3.bf16.xpose.msra.mxu0 %v4698_v58  ;;  %7197 = vmatpush3.bf16.xpose.msra.mxu1 %v4744_v59 }
 0x8c9   : > { %7202 = vmatprep.subr.bf16.mxu0 %v7725_v8  ;;  %7208 = vmatprep.subr.bf16.mxu1 %v7725_v8 }
 0x8cf   : > { %7193 = vmatmul.mubr.msk.bf16.vlgmr.msra.gmra.mxu0 %vm2546_vm3, %v4596_v0  ;;  %7199 = vmatmul.mubr.msk.bf16.vlgmr.msra.gmra.mxu1 %vm2546_vm3, %v4597_v1 }
 0x8d0   : > { %7204 = vmatprep.mubr.msk.bf16.mxu0 %vm7726_vm0, %v7725_v8  ;;  %7210 = vmatprep.mubr.msk.bf16.mxu1 %vm7726_vm0, %v7725_v8 }
 0x8e2   : > { %v4324_v3 = vpop.f32.mrf.mxu0  ;;  %v4412_v6 = vpop.f32.mrf.mxu1 }
 0x8e3   : > { %v4325_v7 = vadd.f32 %v6187_v2, %v4324_v3  ;;  %v4413_v9 = vadd.f32 %v6188_v39, %v4412_v6 }
 0x8e4   : > { %v7116_v10 = vpop.f32.mrf.mxu0  ;;  %v7136_v12 = vpop.f32.mrf.mxu1 }
 0x8e5   : > { %v4844_v13 = vpack.c.bf16 %v4325_v7, %v4325_v7  ;;  %v4845_v4 = vpack.c.bf16 %v4413_v9, %v4413_v9 }
 0x8e6   : > { %v4327_v5 = vpop.f32.mrf.mxu0  ;;  %v4415_v15 = vpop.f32.mrf.mxu1 }
 0x8e7   : > { %v4852_v16 = vsel %vm2793_vm4, %v4844_v13, 0  ;;  %v4898_v17 = vsel %vm2793_vm4, %v4845_v4, 0 }
 0x8e8   : > { %v7117_v18 = vpop.f32.mrf.mxu0  ;;  %v7137_v19 = vpop.f32.mrf.mxu1  ;;  %7203 = vmatpush3.bf16.msra.mxu0 %v4852_v16  ;;  %7209 = vmatpush3.bf16.msra.mxu1 %v4898_v17 }
 0x8e9   : > { %7214 = vmatprep.subr.bf16.mxu0 %v7725_v8  ;;  %7220 = vmatprep.subr.bf16.mxu1 %v7725_v8  ;;  %v6190_v18 = vld [vmem:[%s8017_s21 + $0x7] ss:$0 sm:$0xff]  ;;  %v6189_v19 = vld [vmem:[%s8017_s21 + $0x6] ss:$0 sm:$0xff] }
 0x902   : > { %v8701_v20 = vpop.f32.mrf.mxu0  ;;  %v8703_v21 = vpop.f32.mrf.mxu1 }
 0x904   : > { %v7156_v22 = vpop.f32.mrf.mxu0  ;;  %v7176_v23 = vpop.f32.mrf.mxu1 }
 0x905   : > { %v4589_v22 = vadd.f32 %v6190_v18, %v8703_v21  ;;  %v4501_v23 = vadd.f32 %v6189_v19, %v8701_v20 }
 0x906   : > { %v4503_v24 = vpop.f32.mrf.mxu0  ;;  %v4591_v25 = vpop.f32.mrf.mxu1 }
 0x907   : > { %v4846_v28 = vpack.c.bf16 %v4501_v23, %v4501_v23 }
 0x908   : > { %v7157_v26 = vpop.f32.mrf.mxu0  ;;  %v7177_v27 = vpop.f32.mrf.mxu1 }
 0x909   : > { %v4847_v26 = vpack.c.bf16 %v4589_v22, %v4589_v22 }
 0x96f   : > { %v4642_v33 = vpop.f32.mrf.mxu0  ;;  %v4688_v34 = vpop.f32.mrf.mxu1 }
 0x970   : > { %v4792_v35 = vsel %vm4791_vm10, %v4642_v33, -1e+09  ;;  %v4793_v36 = vsel %vm4791_vm10, %v4688_v34, -1e+09  ;;  %v4990_v34 = vsel %vm2793_vm4, %v4847_v26, 0 }
 0x971   : > { %v7182_v37 = vpop.f32.mrf.mxu0  ;;  %v7188_v38 = vpop.f32.mrf.mxu1  ;;  %v4799_v40 = vsel %vm2737_vm6, %v4793_v36, -inf  ;;  %v4796_v41 = vsel %vm2737_vm6, %v4792_v35, -inf }
 0x972   : > { %4800 = vmax.xlane.f32.xlu1 %v4799_v40  ;;  %4797 = vmax.xlane.f32.xlu0 %v4796_v41  ;;  %v7535_v41 = vld [vmem:[%s8022_s20 + $0x18] sm:$0xff]  }
 0x973   : > { %v4645_v42 = vpop.f32.mrf.mxu0  ;;  %v4691_v43 = vpop.f32.mrf.mxu1 }
 0x974   : > { %v7534_v43 = vld [vmem:[%s8022_s20 + $0x8] sm:$0xff]  }
 0x975   : > { %v7183_v44 = vpop.f32.mrf.mxu0  ;;  %v7189_v45 = vpop.f32.mrf.mxu1 }
 0x976   : > { %v7536_v45 = vld [vmem:[%s8022_s20] sm:$0xff]  }
 0x98f   : > { %v4734_v46 = vpop.f32.mrf.mxu0  ;;  %v4780_v47 = vpop.f32.mrf.mxu1 }
 0x990   : > { %v4794_v48 = vsel %vm4791_vm10, %v4734_v46, -1e+09  ;;  %v4795_v49 = vsel %vm4791_vm10, %v4780_v47, -1e+09  ;;  %v7537_v46 = vld [vmem:[%s8022_s20 + $0x10] sm:$0xff]  }
 0x991   : > { %v7194_v50 = vpop.f32.mrf.mxu0  ;;  %v7200_v51 = vpop.f32.mrf.mxu1  ;;  %v4805_v52 = vsel %vm2737_vm6, %v4795_v49, -inf  ;;  %v4802_v53 = vsel %vm2737_vm6, %v4794_v48, -inf }
 0x992   : > { %4806 = vmax.xlane.f32.xlu1 %v4805_v52  ;;  %4803 = vmax.xlane.f32.xlu0 %v4802_v53  ;;  %v7538_v51 = vld [vmem:[%s8022_s20 + $0x28] sm:$0xff]  }
 0x993   : > { %v4737_v54 = vpop.f32.mrf.mxu0  ;;  %v4783_v55 = vpop.f32.mrf.mxu1 }
 0x995   : > { %v7195_v56 = vpop.f32.mrf.mxu0  ;;  %v7201_v57 = vpop.f32.mrf.mxu1 }
 0x996   : > { %v7541_v56 = vld [vmem:[%s8022_s20 + $0x30] sm:$0xff]  }
 0x9fb   : > { %v4801_v58 = vpop.xlane.xlu1 %4800  ;;  %v4798_v59 = vpop.xlane.xlu0 %4797 }
 0x9fc   : > { %v4809_v60 = vsub.f32 %v4793_v36, %v4801_v58  ;;  %v4808_v61 = vsub.f32 %v4792_v35, %v4798_v59  ;;  %v4944_v35 = vsel %vm2793_vm4, %v4846_v28, 0  ;;  %v7540_v58 = vld [vmem:[%s8022_s20 + $0x20] sm:$0xff]  }
 0x9fe   : > { %v4814_v62 = vmul.f32 1.442695, %v4809_v60  ;;  %v4812_v63 = vmul.f32 1.442695, %v4808_v61 }
 0xa00   : > { %7606 = vpow2.f32 %v4814_v62 }
 0xa01   : > { %7608 = vpow2.f32 %v4812_v63 }
 0xa0d   : > { %v7607_v0 = vpop.eup %7606 }
 0xa0e   : > { %v7609_v1 = vpop.eup %7608  ;;  %v4823_v2 = vsel %vm2737_vm6, %v7607_v0, 0.0 }
 0xa0f   : > { %4824 = vadd.xlane.f32.xlu1 %v4823_v2  ;;  %v4820_v39 = vsel %vm2737_vm6, %v7609_v1, 0.0 }
 0xa10   : > { %4821 = vadd.xlane.f32.xlu0 %v4820_v39 }
 0xa1b   : > { %v4807_v3 = vpop.xlane.xlu1 %4806  ;;  %v4804_v6 = vpop.xlane.xlu0 %4803 }
 0xa1c   : > { %v4811_v7 = vsub.f32 %v4795_v49, %v4807_v3  ;;  %v4810_v9 = vsub.f32 %v4794_v48, %v4804_v6  ;;  %v7539_v48 = vld [vmem:[%s8022_s20 + $0x38] sm:$0xff]  }
 0xa1e   : > { %v4818_v10 = vmul.f32 1.442695, %v4811_v7  ;;  %v4816_v12 = vmul.f32 1.442695, %v4810_v9 }
 0xa20   : > { %7610 = vpow2.f32 %v4818_v10 }
 0xa21   : > { %7612 = vpow2.f32 %v4816_v12 }
 0xa2d   : > { %v7611_v13 = vpop.eup %7610 }
 0xa2e   : > { %v7613_v4 = vpop.eup %7612  ;;  %v4829_v5 = vsel %vm2737_vm6, %v7611_v13, 0.0 }
 0xa2f   : > { %4830 = vadd.xlane.f32.xlu1 %v4829_v5  ;;  %v4826_v15 = vsel %vm2737_vm6, %v7613_v4, 0.0 }
 0xa30   : > { %4827 = vadd.xlane.f32.xlu0 %v4826_v15 }
 0xa98   : > { %v4825_v16 = vpop.xlane.xlu1 %4824 }
 0xa99   : > { %7614 = vrcp.f32 %v4825_v16  ;;  %v4822_v17 = vpop.xlane.xlu0 %4821 }
 0xa9a   : > { %7616 = vrcp.f32 %v4822_v17 }
 0xaa6   : > { %v7615_v24 = vpop.eup %7614 }
 0xaa7   : > { %v7617_v25 = vpop.eup %7616  ;;  %v4837_v27 = vmul.f32 %v7615_v24, %v7607_v0 }
 0xaa8   : > { %v4836_v31 = vmul.f32 %v7617_v25, %v7609_v1 }
 0xaa9   : > { %v4841_v32 = vpack.c.bf16 %v4837_v27, %v4837_v27 }
 0xaaa   : > { %v4840_v33 = vpack.c.bf16 %v4836_v31, %v4836_v31 }
 0xaab   : > { %7211 = vmatmul.mubr.msk.bf16.vlgmr.msra.gmra.mxu1 %vm2737_vm6, %v4841_v32 }
 0xaac   : > { %7205 = vmatmul.mubr.msk.bf16.vlgmr.msra.gmra.mxu0 %vm2737_vm6, %v4840_v33  ;;  %7221 = vmatpush3.bf16.msra.mxu1 %v4990_v34 }
 0xaad   : > { %7215 = vmatpush3.bf16.msra.mxu0 %v4944_v35  ;;  %7216 = vmatprep.mubr.msk.bf16.mxu0 %vm7726_vm0, %v7725_v8 }
 0xaae   : > { %7222 = vmatprep.mubr.msk.bf16.mxu1 %vm7726_vm0, %v7725_v8  ;;  %7226 = vmatprep.subr.bf16.mxu0 %v7725_v8 }
 0xaaf   : > { %7234 = vmatprep.subr.bf16.mxu1 %v7725_v8 }
 0xab8   : > { %v4831_v20 = vpop.xlane.xlu1 %4830 }
 0xab9   : > { %7618 = vrcp.f32 %v4831_v20  ;;  %v4828_v21 = vpop.xlane.xlu0 %4827 }
 0xaba   : > { %7620 = vrcp.f32 %v4828_v21  ;;  %v7544_v21 = vld [vmem:[%s8041_s5 + $0x74] ss:$8 sps:$4 sm:$0xff]  }
 0xac6   : > { %v7619_v36 = vpop.eup %7618 }
 0xac7   : > { %v7621_v37 = vpop.eup %7620  ;;  %v4839_v38 = vmul.f32 %v7619_v36, %v7611_v13  ;;  %v7542_v36 = vld [vmem:[%s8041_s5 + $0x70] ss:$8 sps:$4 sm:$0xff]  }
 0xac8   : > { %v4838_v40 = vmul.f32 %v7621_v37, %v7613_v4  ;;  %v7545_v37 = vld [vmem:[%s8041_s5 + $0x60] ss:$8 sps:$4 sm:$0xff]  }
 0xac9   : > { %v4843_v42 = vpack.c.bf16 %v4839_v38, %v4839_v38  ;;  %v7550_v38 = vld [vmem:[%s8041_s5 + $0x54] ss:$8 sps:$4 sm:$0xff]  }
 0xaca   : > { %v4842_v44 = vpack.c.bf16 %v4838_v40, %v4838_v40  ;;  %v7548_v40 = vld [vmem:[%s8041_s5 + $0x50] ss:$8 sps:$4 sm:$0xff]  }
 0xacb   : > { %7223 = vmatmul.mubr.msk.bf16.vlgmr.msra.gmra.mxu1 %vm2737_vm6, %v4843_v42  ;;  %v7553_v42 = vld [vmem:[%s8041_s5 + $0x44] ss:$8 sps:$4 sm:$0xff]  }
 0xacc   : > { %7217 = vmatmul.mubr.msk.bf16.vlgmr.msra.gmra.mxu0 %vm2737_vm6, %v4842_v44  ;;  %7235 = vmatpush3.bf16.msra.mxu1 %v7535_v41  ;;  %v7551_v41 = vld [vmem:[%s8041_s5 + $0x40] ss:$8 sps:$4 sm:$0xff]   ;;  %v7554_v44 = vld [vmem:[%s8041_s5 + $0x30] ss:$8 sps:$4 sm:$0xff]  }
 0xacd   : > { %7227 = vmatpush3.bf16.msra.mxu0 %v7534_v43  ;;  %7236 = vmatprep.subr.bf16.mxu1 %v7725_v8  ;;  %v7556_v43 = vld [vmem:[%s8041_s5 + $0x34] ss:$8 sps:$4 sm:$0xff]  }
 0xace   : > { %7228 = vmatprep.subr.bf16.mxu0 %v7725_v8  ;;  %7230 = vmatprep.mubr.msk.bf16.mxu0 %vm7726_vm0, %v7725_v8 }
 0xacf   : > { %7238 = vmatprep.mubr.msk.bf16.mxu1 %vm7726_vm0, %v7725_v8 }
 0xad0   : > { %7237 = vmatpush3.bf16.msra.mxu1 %v7537_v46  ;;  %v7557_v46 = vld [vmem:[%s8041_s5 + $0x20] ss:$8 sps:$4 sm:$0xff]  }
 0xad1   : > { %7229 = vmatpush3.bf16.msra.mxu0 %v7536_v45  ;;  %7250 = vmatprep.subr.bf16.mxu1 %v7725_v8  ;;  %v7559_v45 = vld [vmem:[%s8041_s5 + $0x24] ss:$8 sps:$4 sm:$0xff]  }
 0xad2   : > { %7242 = vmatprep.subr.bf16.mxu0 %v7725_v8 }
 0xb6b   : > { %v4934_v47 = vpop.f32.mrf.mxu1 }
 0xb6c   : > { %v4888_v49 = vpop.f32.mrf.mxu0  ;;  %v5033_v50 = vpack.c.bf16 %v4934_v47, %v4934_v47  ;;  %v7562_v47 = vld [vmem:[%s8041_s5 + $0x14] ss:$8 sps:$4 sm:$0xff]  }
 0xb6d   : > { %v5032_v52 = vpack.c.bf16 %v4888_v49, %v4888_v49  ;;  %v7212_v53 = vpop.f32.mrf.mxu1  ;;  %v7565_v49 = vld [vmem:[%s8041_s5 + $0x4] ss:$8 sps:$4 sm:$0xff]  }
 0xb6e   : > { %v7206_v54 = vpop.f32.mrf.mxu0  ;;  %7239 = vmatmul.mubr.msk.bf16.vlgmr.msra.gmra.mxu1 %vm2546_vm3, %v5033_v50  ;;  %v7563_v50 = vld [vmem:[%s8041_s5] ss:$8 sps:$4 sm:$0xff]   ;;  %v7568_v53 = vld [vmem:[%s8051_s29 + $0x70] sm:$0xff]  }
 0xb6f   : > { %7231 = vmatmul.mubr.msk.bf16.vlgmr.msra.gmra.mxu0 %vm2546_vm3, %v5032_v52  ;;  %v4937_v55 = vpop.f32.mrf.mxu1  ;;  %7251 = vmatpush3.bf16.msra.mxu1 %v7539_v48  ;;  %v7560_v48 = vld [vmem:[%s8041_s5 + $0x10] ss:$8 sps:$4 sm:$0xff]  }
 0xb70   : > { %v4891_v57 = vpop.f32.mrf.mxu0  ;;  %7243 = vmatpush3.bf16.msra.mxu0 %v7538_v51  ;;  %7252 = vmatprep.subr.bf16.mxu1 %v7725_v8  ;;  %v7566_v51 = vld [vmem:[%s8051_s29 + $0x78] sm:$0xff]   ;;  %v7569_v54 = vld [vmem:[%s8051_s29 + $0x30] sm:$0xff]   ;;  %v7570_v55 = vld [vmem:[%s8051_s29 + $0x68] sm:$0xff]  }
 0xb71   : > { %v7213_v59 = vpop.f32.mrf.mxu1  ;;  %7244 = vmatprep.subr.bf16.mxu0 %v7725_v8  ;;  %7246 = vmatprep.mubr.msk.bf16.mxu0 %vm7726_vm0, %v7725_v8  ;;  %v7567_v52 = vld [vmem:[%s8051_s29 + $0x38] sm:$0xff]   ;;  %v7572_v57 = vld [vmem:[%s8051_s29 + $0x60] sm:$0xff]  }
 0xb72   : > { %v7207_v60 = vpop.f32.mrf.mxu0  ;;  %7254 = vmatprep.mubr.msk.bf16.mxu1 %vm7726_vm0, %v7725_v8  ;;  %v7574_v59 = vld [vmem:[%s8051_s29 + $0x58] sm:$0xff]  }
 0xb73   : > { %7253 = vmatpush3.bf16.msra.mxu1 %v7541_v56  ;;  %v7571_v56 = vld [vmem:[%s8051_s29 + $0x28] sm:$0xff]   ;;  %v7575_v60 = vld [vmem:[%s8051_s29 + $0x18] sm:$0xff]  }
 0xb74   : > { %7245 = vmatpush3.bf16.msra.mxu0 %v7540_v58  ;;  %6596 = vmatprep.subr.bf16.mxu1 %v7566_v51  ;;  %v7573_v58 = vld [vmem:[%s8051_s29 + $0x20] sm:$0xff]  }
 0xb75   : > { %5443 = vmatprep.subr.bf16.mxu0 %v7544_v21 }
 0xb8b   : > { %v5026_v61 = vpop.f32.mrf.mxu1 }
 0xb8c   : > { %v4980_v62 = vpop.f32.mrf.mxu0  ;;  %v5035_v63 = vpack.c.bf16 %v5026_v61, %v5026_v61  ;;  %v7576_v61 = vld [vmem:[%s8051_s29 + $0x50] sm:$0xff]  }
 0xb8d   : > { %v5034_v0 = vpack.c.bf16 %v4980_v62, %v4980_v62  ;;  %v7224_v1 = vpop.f32.mrf.mxu1  ;;  %v7577_v62 = vld [vmem:[%s8051_s29 + $0x10] sm:$0xff]  }
 0xb8e   : > { %v7218_v2 = vpop.f32.mrf.mxu0  ;;  %7255 = vmatmul.mubr.msk.bf16.vlgmr.msra.gmra.mxu1 %vm2546_vm3, %v5035_v63 }
 0xb8f   : > { %7247 = vmatmul.mubr.msk.bf16.vlgmr.msra.gmra.mxu0 %vm2546_vm3, %v5034_v0  ;;  %v5029_v39 = vpop.f32.mrf.mxu1  ;;  %6597 = vmatpush3.bf16.msra.mxu1 %v7567_v52 }
 0xb90   : > { %v4983_v3 = vpop.f32.mrf.mxu0  ;;  %5475 = vmatprep.mubr.bf16.mxu0 %v7727_v30  ;;  %v6275_v30 = vld [vmem:[%s9016_s25] ss:$0 sm:$0xff]  ;;  %5444 = vmatpush1.bf16.msra.mxu0 %v7542_v36 }
 0xb91   : > { %v7225_v6 = vpop.f32.mrf.mxu1  ;;  %6598 = vmatprep.subr.bf16.mxu1 %v7568_v53 }
 0xb92   : > { %v7219_v7 = vpop.f32.mrf.mxu0 }
 0xb93   : > { %6599 = vmatpush3.bf16.msra.mxu1 %v7569_v54 }
 0xb94   : > { %6600 = vmatprep.subr.bf16.mxu1 %v7570_v55 }
 0xb97   : > { %6601 = vmatpush3.bf16.msra.mxu1 %v7571_v56 }
 0xb98   : > { %6602 = vmatprep.subr.bf16.mxu1 %v7572_v57 }
 0xb9b   : > { %6603 = vmatpush3.bf16.msra.mxu1 %v7573_v58 }
 0xb9c   : > { %6604 = vmatprep.subr.bf16.mxu1 %v7574_v59 }
 0xb9f   : > { %6605 = vmatpush3.bf16.msra.mxu1 %v7575_v60 }
 0xba0   : > { %6606 = vmatprep.subr.bf16.mxu1 %v7576_v61 }
 0xba3   : > { %6607 = vmatpush3.bf16.msra.mxu1 %v7577_v62 }
 0xc2e   : > { %v5140_v8 = vpop.f32.mrf.mxu1 }
 0xc2f   : > { %v5085_v9 = vpop.f32.mrf.mxu0 }
 0xc30   : > { %v7240_v10 = vpop.f32.mrf.mxu1  ;;  %v5256_v16 = vadd.f32 %v5140_v8, %v5085_v9  ;;  %v6276_v9 = vld [vmem:[%s9018_s22] ss:$0 sm:$0xff] }
 0xc31   : > { %v7232_v12 = vpop.f32.mrf.mxu0 }
 0xc32   : > { %v5143_v13 = vpop.f32.mrf.mxu1  ;;  %v6277_v12 = vld [vmem:[%s9020_s9] ss:$0 sm:$0xff] }
 0xc33   : > { %v5088_v4 = vpop.f32.mrf.mxu0 }
 0xc34   : > { %v7241_v5 = vpop.f32.mrf.mxu1 }
 0xc35   : > { %v7233_v15 = vpop.f32.mrf.mxu0 }
 0xc36   : > { %v7578_v15 = vld [vmem:[%s8051_s29 + $0x48] sm:$0xff]  }
 0xc37   : > { %6608 = vmatprep.subr.bf16.mxu1 %v7578_v15 }
 0xc4e   : > { %v5250_v17 = vpop.f32.mrf.mxu1 }
 0xc4f   : > { %v5195_v18 = vpop.f32.mrf.mxu0 }
 0xc50   : > { %v5257_v19 = vadd.f32 %v5256_v16, %v5195_v18  ;;  %v7256_v22 = vpop.f32.mrf.mxu1  ;;  %v7579_v16 = vld [vmem:[%s8051_s29 + $0x8] sm:$0xff]   ;;  %v7581_v18 = vld [vmem:[%s8051_s29] sm:$0xff]  }
 0xc51   : > { %v7248_v23 = vpop.f32.mrf.mxu0  ;;  %6609 = vmatpush3.bf16.msra.mxu1 %v7579_v16  ;;  %v5359_v22 = vsub.s32 1, %v8349_v14  ;;  %v6294_v14 = vld [vmem:[%s1136_s1] ss:$0 sm:$0xff] }
 0xc52   : > { %v5258_v24 = vadd.f32 %v5257_v19, %v5250_v17  ;;  %v5253_v25 = vpop.f32.mrf.mxu1  ;;  %v7580_v17 = vld [vmem:[%s8051_s29 + $0x40] sm:$0xff]  }
 0xc53   : > { %v5198_v26 = vpop.f32.mrf.mxu0  ;;  %6610 = vmatprep.subr.bf16.mxu1 %v7580_v17  ;;  %v5285_v19 = vld [vmem:[%s8046_s23] sm:$0x3] }
 0xc54   : > { %v5265_v27 = vadd.f32 %v6275_v30, %v5258_v24  ;;  %v7257_v28 = vpop.f32.mrf.mxu1  ;;  %v5356_v30 = vrot.slane %v5285_v19, %v4789_v29  ;;  %v5360_v23 = vrot.slane %v5285_v19, %v5359_v22 }
 0xc55   : > { %v7249_v31 = vpop.f32.mrf.mxu0  ;;  %6611 = vmatpush3.bf16.msra.mxu1 %v7581_v18 }
 0xc56   : > { %v8775_v32 = vadd.f32 %v5265_v27, %v8421_v11  ;;  %v7547_v11 = vld [vmem:[%s8041_s5 + $0x64] ss:$8 sps:$4 sm:$0xff]  }
 0xc57   : > { %5445 = vmatprep.subr.bf16.mxu0 %v7547_v11 }
 0xc58   : > { %5319 = vadd.xlane.f32.xlu0 %v8775_v32  ;;  %5446 = vmatpush1.bf16.msra.mxu0 %v7545_v37 }
 0xc59   : > { %5447 = vmatprep.subr.bf16.mxu0 %v7550_v38 }
 0xc5c   : > { %5448 = vmatpush1.bf16.msra.mxu0 %v7548_v40 }
 0xc5d   : > { %5449 = vmatprep.subr.bf16.mxu0 %v7553_v42 }
 0xc60   : > { %5450 = vmatpush1.bf16.msra.mxu0 %v7551_v41 }
 0xc61   : > { %5451 = vmatprep.subr.bf16.mxu0 %v7556_v43 }
 0xc64   : > { %5452 = vmatpush1.bf16.msra.mxu0 %v7554_v44 }
 0xc65   : > { %5453 = vmatprep.subr.bf16.mxu0 %v7559_v45 }
 0xc68   : > { %5454 = vmatpush1.bf16.msra.mxu0 %v7557_v46 }
 0xc69   : > { %5455 = vmatprep.subr.bf16.mxu0 %v7562_v47 }
 0xc6c   : > { %5456 = vmatpush1.bf16.msra.mxu0 %v7560_v48 }
 0xc6d   : > { %5457 = vmatprep.subr.bf16.mxu0 %v7565_v49 }
 0xc70   : > { %5458 = vmatpush1.bf16.msra.mxu0 %v7563_v50 }
 0xce1   : > { %v5320_v33 = vpop.xlane.xlu0 %5319 }
 0xce2   : > { %v5321_v34 = vmul.f32 0.0078125, %v5320_v33 }
 0xce4   : > { %v8779_v35 = vsub.f32 %v8775_v32, %v5321_v34 }
 0xce6   : > { %v5323_v20 = vmul.f32 %v8779_v35, %v8779_v35 }
 0xce8   : > { %5324 = vadd.xlane.f32.xlu1 %v5323_v20 }
 0xd71   : > { %v5325_v63 = vpop.xlane.xlu1 %5324 }
 0xd72   : > { %v5326_v0 = vmul.f32 0.007874016, %v5325_v63 }
 0xd74   : > { %7622 = vrsqrt.f32 %v5326_v0  ;;  %vm5329_vm11 = vcmp.eq.f32.partialorder %v5326_v0, inf  ;;  %v5332_v39 = vand.u32 2147483648, %v5326_v0  ;;  %vm5331_vm12 = vcmp.eq.f32.partialorder %v5326_v0, 0.0 }
 0xd81   : > { %v7623_v1 = vpop.eup %7622 }
 0xd82   : > { %v5328_v2 = vmul.f32 %v7623_v1, %v5326_v0 }
 0xd84   : > { %v5330_v3 = vsel %vm5329_vm11, %v5326_v0, %v5328_v2 }
 0xd85   : > { %v5333_v6 = vsel %vm5331_vm12, %v5332_v39, %v5330_v3 }
 0xd86   : > { %v5334_v7 = vadd.f32 1e-06, %v5333_v6 }
 0xd88   : > { %7624 = vrcp.f32 %v5334_v7 }
 0xd95   : > { %v7625_v8 = vpop.eup %7624 }
 0xd96   : > { %v5336_v10 = vmul.f32 %v7625_v8, %v8779_v35 }
 0xd98   : > { %v5343_v13 = vmul.f32 %v6276_v9, %v5336_v10 }
 0xd9a   : > { %v5350_v4 = vadd.f32 %v6277_v12, %v5343_v13 }
 0xd9c   : > { %v5351_v5 = vpack.c.bf16 %v5350_v4, %v5350_v4 }
 0xd9e   : > { %5476 = vmatmul.mubr.bf16.vlgmr.msra.gmra.mxu0 %v5351_v5 }
 0xe5e   : > { %v5477_v24 = vpop.f32.mrf.mxu0 }
 0xe5f   : > { %v5478_v25 = vadd.f32 %v5477_v24, %v5356_v30 }
 0xe60   : > { %v5479_v26 = vpop.f32.mrf.mxu0 }
 0xe61   : > { %v5480_v27 = vadd.f32 %v5479_v26, %v5360_v23  ;;  %v5484_v28 = vmax.f32 %v5478_v25, 0.0 }
 0xe62   : > { %v5481_v31 = vpop.f32.mrf.mxu0 }
 0xe63   : > { %v5485_v33 = vmax.f32 %v5480_v27, 0.0  ;;  %v5486_v20 = vpack.c.bf16 %v5484_v28, %v5484_v28 }
 0xe64   : > { %v5482_v34 = vpop.f32.mrf.mxu0 }
 0xe65   : > { %v5487_v35 = vpack.c.bf16 %v5485_v33, %v5485_v33 }
 0xe67   : > { %5622 = vmatprep.mubr.bf16.mxu1 %v5487_v35 }
 0xe68   : > { %5623 = vmatmul.mubr.bf16.vlgmr.msra.gmra.mxu1 %v5486_v20 }
 0xf28   : > { %v6612_v21 = vpop.f32.mrf.mxu1 }
 0xf2a   : > { %v6613_v29 = vpop.f32.mrf.mxu1 }
 0xf2b   : > { %v6614_v36 = vadd.f32 %v6613_v29, %v6612_v21 }
 0xf2c   : > { %v6615_v11 = vpop.f32.mrf.mxu1 }
 0xf2d   : > { %v5625_v37 = vadd.f32 %v6614_v36, %v6294_v14  ;;  %5635 = sbr.rel (%p6311_p1) target bundleno = 4215 (0x1077), region = 128 }
 0xf2e   : > { %v6616_v38 = vpop.f32.mrf.mxu1 }
 0xf2f   : > { %v5630_v40 = vadd.f32 %v5625_v37, %v8775_v32 }
 0xf31   : > { %5631 = vst [vmem:[#allocation2] sm:$0xff] %v5630_v40 }
 0xf32   : > { %5638 = vadd.xlane.f32.xlu0 %v5630_v40  ;;  %v6312_v53 = vld [vmem:[%s9023_s12] ss:$0 sm:$0xff] }
 0xf33   : > { %v6313_v55 = vld [vmem:[%s9024_s8] ss:$0 sm:$0xff] }
 0xfbb   : > { %v5639_v41 = vpop.xlane.xlu0 %5638 }
 0xfbc   : > { %v5640_v42 = vmul.f32 0.0078125, %v5639_v41 }
 0xfbe   : > { %v5641_v43 = vsub.f32 %v5630_v40, %v5640_v42 }
 0xfc0   : > { %v5642_v44 = vmul.f32 %v5641_v43, %v5641_v43 }
 0xfc2   : > { %5643 = vadd.xlane.f32.xlu0 %v5642_v44 }
0x104b   : > { %v5644_v45 = vpop.xlane.xlu0 %5643 }
0x104c   : > { %v5645_v46 = vmul.f32 0.007874016, %v5644_v45 }
0x104e   : > { %7627 = vrsqrt.f32 %v5645_v46  ;;  %vm5648_vm13 = vcmp.eq.f32.partialorder %v5645_v46, inf  ;;  %v5651_v49 = vand.u32 2147483648, %v5645_v46  ;;  %vm5650_vm14 = vcmp.eq.f32.partialorder %v5645_v46, 0.0 }
0x105b   : > { %v7628_v47 = vpop.eup %7627 }
0x105c   : > { %v5647_v48 = vmul.f32 %v7628_v47, %v5645_v46 }
0x105e   : > { %v5649_v50 = vsel %vm5648_vm13, %v5645_v46, %v5647_v48 }
0x105f   : > { %v5652_v32 = vsel %vm5650_vm14, %v5651_v49, %v5649_v50 }
0x1060   : > { %v5653_v51 = vadd.f32 1e-06, %v5652_v32 }
0x1062   : > { %7629 = vrcp.f32 %v5653_v51 }
0x106f   : > { %v7630_v52 = vpop.eup %7629 }
0x1070   : > { %v5655_v54 = vmul.f32 %v7630_v52, %v5641_v43 }
0x1072   : > { %v5662_v56 = vmul.f32 %v6312_v53, %v5655_v54 }
0x1074   : > { %v5669_v57 = vadd.f32 %v6313_v55, %v5662_v56 }
0x1076   : > { %5670 = vst [vmem:[%s1047_s13] sm:$0xff] %v5669_v57 }
0x1077 PF: > { %s9025_s24 = sld [smem:[#allocation10_spill]]  ;;  %s5685_s25 = sshll.u32 %s1047_s13, 4  ;;  %s5686_s25 = int_to_ptr.vmem [resolvable:$true] %s5685_s25 }
0x1078   : > { %s9026_s17 = sld [smem:[#allocation7_spill]]  ;;  %s7631_s27 = scalar_lea.vmem %s5686_s25, 128 }
0x1079   : > { %s9028_s20 = sld [smem:[#allocation46_spill]]  ;;  %p7632_p2 = scmp.ne.s32.totalorder %s5686_s25, %s7631_s27 }
0x107a   : > { %s7728_s22 = smov [#allocation3]  }
0x107b   : > { %p7633_p4 = pnand %p7632_p2, %p7908_p3  ;;  %s7635_s19 = sshll.u32 %s7728_s22, 4  ;;  %s7636_s19 = int_to_ptr.vmem [resolvable:$false] %s7635_s19 }
0x107c   : > { %s7637_s6 = scalar_lea.vmem %s7636_s19, 256  ;;  %p7638_p6 = scmp.lt.s32.totalorder %s5686_s25, %s7636_s19 }
0x107d   : > { %s6315_s18 = sshll.u32 %s9025_s24, 7  ;;  %p7634_p5 = pneg %p7633_p4 }
0x107e   : > { %s9029_s5 = sand.u32 1, %s9026_s17   ;;  %p7639_p7 = scmp.lt.s32.totalorder %s7637_s6, %s7631_s27 }
0x107f   : > { %s5683_s21 = scalar_lea.hbm %s9028_s20, %s6315_s18  ;;  %s5672_s2 = scalar_lea.sflag [#allocation4], %s9029_s5 }
0x1080   : > { %p7640_p8 = por %p7639_p7, %p7638_p6 }
0x1082   : > { %p7641_p10 = pnand %p7640_p8, %p7634_p5 }
0x1084   : > { %7644 = shalt.err (!%p7641_p10)
}
0x1085   : > { %s7645_s30 = scalar_lea.hbm %s5683_s21, 128  ;;  %s7649_s9 = scalar_lea.hbm %s9028_s20, 256 }
0x1086   : > { %p7646_p11 = scmp.ne.s32.totalorder %s5683_s21, %s7645_s30  ;;  %p7650_p0 = scmp.lt.s32.totalorder %s5683_s21, %s9028_s20 }
0x1087   : > { %p7651_p1 = scmp.lt.s32.totalorder %s7649_s9, %s7645_s30 }
0x1088   : > { %p7647_p12 = pnand %p7646_p11, %p7908_p3 }
0x1089   : > { %p7652_p2 = por %p7651_p1, %p7650_p0 }
0x108a   : > { %p7648_p13 = pneg %p7647_p12 }
0x108c   : > { %p7653_p4 = pnand %p7652_p2, %p7648_p13 }
0x108e   : > { %7656 = shalt.err (!%p7653_p4)
}
0x108f   : > { %7260 = dma.vmem_to_hbm [thread:$0]  (%p7908_p3), %s5686_s25, 128, %s5683_s21, %s5672_s2  }
0x1090 PF: > { %s9030_s11 = sld [smem:[#allocation13_spill]] }
0x1091   : > { %s9031_s26 = sld [smem:[#allocation6_spill]] }
0x1096   : > { %p7266_p5 = scmp.ge.s32.totalorder %s9030_s11, 2 }
0x1097   : > { %s5697_s1 = sand.u32 1, %s9031_s26  }
0x1098   : > { %p7263_p6 = pnand %p7266_p5, %p7918_p9  ;;  %s5698_s12 = scalar_lea.sflag [#allocation4], %s5697_s1 }
0x109a   : > { %p7264_p7 = pneg %p7263_p6 }
0x109c   : > { %7690 = dma.done.wait (%p7264_p7), %s5698_s12, 128  }
0x109d   : > { %7692 = vsyncadd (%p7264_p7), %s5698_s12, 4294967168  ;;  %s38_s1 = sadd.s32 1, %s9030_s11   ;;  %s9033_s29 = sld [smem:[#allocation7_spill]] }
0x109e   : > { %p35_p8 = scmp.ge.s32.totalorder %s38_s1, 6   ;;  %s9034_s2 = sld [smem:[#allocation8_spill]] }
0x109f   : > { %s9035_s6 = sld [smem:[#allocation18_spill]] }
0x10a0   : > { %s9036_s30 = sld [smem:[#allocation11_spill]]  ;;  %37 = sbr.rel (!%p35_p8) target bundleno = 30 (0x1e), region = 229 }
0x10a1   : > { %s9037_s7 = sld [smem:[#allocation12_spill]] }
0x10a2   : > { %s9038_s3 = sld [smem:[#allocation14_spill]] }
0x10a3   : > { %s9039_s26 = sld [smem:[#allocation16_spill]] }
0x10a5   :  { %5703 = vsyncpa [#allocation4], 1 }
0x10a6   :  { %5705 = vsyncpa [#allocation4 + $0x1], 1 }

</bundles_post_ra>
